<compile_context>
chip_gen: v7x
topology: tpu7x:2x2x1
jax: 0.10.0
libtpu: 0.0.40
codegen_flags: <defaults>
</compile_context>

<pallas_src>
import functools

import jax
import jax.numpy as jnp
from jax import lax
from jax.experimental import pallas as pl
from jax.experimental.pallas import tpu as pltpu


def _round_up(x, m):
    return ((x + m - 1) // m) * m


def _full_spec(shape):
    # Whole-array block (no grid).
    return pl.BlockSpec(shape, lambda *_: (0,) * len(shape))


# ---------------------------------------------------------------------------
# Fused kernel: all LSTM layers + final Linear, single pallas_call.
# Gate order matches PyTorch nn.LSTM: i, f, g, o (each gate padded to Hp lanes).
# ---------------------------------------------------------------------------
def fused_lstm_kernel(x_ref, wih_ref, whh_ref, b_ref, h0_ref, c0_ref,
                      wout_ref, bout_ref, out_ref,
                      act_sc, gx_sc, h_sc, c_sc):
    TB, Din = act_sc.shape
    Bp, Hp = h_sc.shape
    T = TB // Bp
    L = wih_ref.shape[0]

    # Layer-0 input (the embeddings) lives in VMEM scratch; each layer then
    # overwrites it in place with its hidden-state sequence, so inter-layer
    # activations never touch HBM.
    act_sc[...] = x_ref[...]

    for l in range(L):                                   # static layer loop
        # Hoisted input projection: ONE (T*Bp, Din) @ (Din, 4Hp) MXU matmul
        # per layer, plus a single (hoisted) bias broadcast.
        gx_sc[...] = (jnp.dot(act_sc[...], wih_ref[l],
                              preferred_element_type=jnp.float32)
                      + b_ref[l])
        h_sc[...] = h0_ref[l]
        c_sc[...] = c0_ref[l]

        def step(t, carry):
            r0 = pl.multiple_of(t * Bp, Bp)              # aligned sublane start
            gates = gx_sc[pl.ds(r0, Bp), :] + jnp.dot(
                h_sc[...], whh_ref[l], preferred_element_type=jnp.float32)
            # Each gate slice is exactly Hp (multiple of 128) lanes -> dense.
            i = jax.nn.sigmoid(gates[:, 0 * Hp:1 * Hp])
            f = jax.nn.sigmoid(gates[:, 1 * Hp:2 * Hp])
            g = jnp.tanh(gates[:, 2 * Hp:3 * Hp])
            o = jax.nn.sigmoid(gates[:, 3 * Hp:4 * Hp])
            c = f * c_sc[...] + i * g
            h = o * jnp.tanh(c)
            c_sc[...] = c
            h_sc[...] = h
            if l < L - 1:
                # Feed the next layer; safe to overwrite since this layer's
                # gx was already fully precomputed.
                act_sc[pl.ds(r0, Bp), 0:Hp] = h
            return carry

        # T static & small -> full unroll for cross-step scheduling visibility.
        lax.fori_loop(0, T, step, 0, unroll=True)

    # Fused final Linear on the last layer's last hidden state.
    out_ref[...] = (jnp.dot(h_sc[...], wout_ref[...],
                            preferred_element_type=jnp.float32)
                    + bout_ref[...]).astype(out_ref.dtype)


def fused_lstm_forward(x2d, wih, whh, b, h0, c0, w_out, b_out, *, Bp, Hp):
    TB, Din = x2d.shape
    Op = w_out.shape[1]
    return pl.pallas_call(
        fused_lstm_kernel,
        out_shape=jax.ShapeDtypeStruct((Bp, Op), jnp.float32),
        in_specs=[
            _full_spec(x2d.shape),
            _full_spec(wih.shape),
            _full_spec(whh.shape),
            _full_spec(b.shape),
            _full_spec(h0.shape),
            _full_spec(c0.shape),
            _full_spec(w_out.shape),
            _full_spec(b_out.shape),
        ],
        out_specs=_full_spec((Bp, Op)),
        scratch_shapes=[
            pltpu.VMEM((TB, Din), jnp.float32),      # inter-layer activations
            pltpu.VMEM((TB, 4 * Hp), jnp.float32),   # hoisted input projections
            pltpu.VMEM((Bp, Hp), jnp.float32),       # h state
            pltpu.VMEM((Bp, Hp), jnp.float32),       # c state
        ],
    )(x2d, wih, whh, b, h0, c0, w_out, b_out)


# ---------------------------------------------------------------------------
# Padding helpers (zero padding keeps real lanes bit-exact: padded hidden
# columns stay exactly 0 through the recurrence, padded batch rows are sliced
# off at the end).
# ---------------------------------------------------------------------------
def _pad_gate_mat(w, in_pad, H, Hp):
    # w: (in_dim, 4H) gate order (i,f,g,o) -> (in_pad, 4Hp), gate-block padded.
    in_dim = w.shape[0]
    out = jnp.zeros((in_pad, 4 * Hp), w.dtype)
    for g in range(4):
        out = out.at[:in_dim, g * Hp:g * Hp + H].set(w[:, g * H:(g + 1) * H])
    return out


def _pad_gate_vec(b, H, Hp):
    out = jnp.zeros((1, 4 * Hp), b.dtype)
    for g in range(4):
        out = out.at[:, g * Hp:g * Hp + H].set(b[:, g * H:(g + 1) * H])
    return out


# ---------------------------------------------------------------------------
# Parameter init (deterministic, PyTorch-style uniform(-1/sqrt(H), 1/sqrt(H)))
# ---------------------------------------------------------------------------
def init_params(key, vocab_len, emb_dim, hidden_dim, n_layers, out_len):
    keys = jax.random.split(key, 2 + 4 * n_layers + 2)
    k = 1.0 / jnp.sqrt(hidden_dim)
    params = {
        "emb": jax.random.normal(keys[0], (vocab_len, emb_dim), jnp.float32),
        "w_ih": [],
        "w_hh": [],
        "b": [],
    }
    ki = 1
    for l in range(n_layers):
        in_dim = emb_dim if l == 0 else hidden_dim
        # Stored already transposed: (in_dim, 4H) / (H, 4H) so kernel does x @ W.
        params["w_ih"].append(
            jax.random.uniform(keys[ki], (in_dim, 4 * hidden_dim),
                               jnp.float32, -k, k)); ki += 1
        params["w_hh"].append(
            jax.random.uniform(keys[ki], (hidden_dim, 4 * hidden_dim),
                               jnp.float32, -k, k)); ki += 1
        b_ih = jax.random.uniform(keys[ki], (1, 4 * hidden_dim),
                                  jnp.float32, -k, k); ki += 1
        b_hh = jax.random.uniform(keys[ki], (1, 4 * hidden_dim),
                                  jnp.float32, -k, k); ki += 1
        params["b"].append(b_ih + b_hh)   # combined bias (PyTorch has both)
    params["w_out"] = jax.random.uniform(keys[ki], (hidden_dim, out_len),
                                         jnp.float32, -k, k); ki += 1
    params["b_out"] = jax.random.uniform(keys[ki], (1, out_len),
                                         jnp.float32, -k, k)
    return params


# ---------------------------------------------------------------------------
# Forward pass (matches LSTMModel.forward semantics).
# ---------------------------------------------------------------------------
def lstm_model_forward(params, x_ids, state_key, hidden_dim, n_layers):
    B, T = x_ids.shape
    H = hidden_dim
    L = n_layers
    E = params["emb"].shape[1]
    O = params["w_out"].shape[1]

    Hp = _round_up(H, 128)
    Din = _round_up(max(E, H), 128)   # common padded input-feature dim
    Bp = max(_round_up(B, 8), 8)
    Op = _round_up(O, 128)

    # Pad weights into the kernel layout (zeros in padding).
    wih_p = jnp.stack([_pad_gate_mat(params["w_ih"][l], Din, H, Hp)
                       for l in range(L)])                       # (L, Din, 4Hp)
    whh_p = jnp.stack([_pad_gate_mat(params["w_hh"][l], Hp, H, Hp)
                       for l in range(L)])                       # (L, Hp, 4Hp)
    b_p = jnp.stack([_pad_gate_vec(params["b"][l], H, Hp)
                     for l in range(L)])                         # (L, 1, 4Hp)
    w_out_p = jnp.zeros((Hp, Op), jnp.float32).at[:H, :O].set(params["w_out"])
    b_out_p = jnp.zeros((1, Op), jnp.float32).at[:, :O].set(params["b_out"])

    # torch.rand -> uniform [0, 1); fresh random initial states each call.
    kh, kc = jax.random.split(state_key)
    h0 = jax.random.uniform(kh, (L, B, H), jnp.float32)
    c0 = jax.random.uniform(kc, (L, B, H), jnp.float32)
    h0_p = jnp.zeros((L, Bp, Hp), jnp.float32).at[:, :B, :H].set(h0)
    c0_p = jnp.zeros((L, Bp, Hp), jnp.float32).at[:, :B, :H].set(c0)

    # Embedding lookup (gather) kept as plain-JAX glue.
    emb = jnp.take(params["emb"], x_ids, axis=0)                 # (B, T, E)
    x_tm = jnp.transpose(emb, (1, 0, 2))                         # (T, B, E)
    x_p = jnp.zeros((T, Bp, Din), jnp.float32).at[:, :B, :E].set(x_tm)
    x2d = x_p.reshape(T * Bp, Din)                               # time-major rows

    out_p = fused_lstm_forward(x2d, wih_p, whh_p, b_p, h0_p, c0_p,
                               w_out_p, b_out_p, Bp=Bp, Hp=Hp)   # (Bp, Op)
    return out_p[:B, :O]


if __name__ == "__main__":
    VOCAB, EMB, HIDDEN, LAYERS, OUT = 50, 32, 32, 2, 10
    B, T = 2, 8

    root = jax.random.PRNGKey(0)
    k_param, k_input, k_state = jax.random.split(root, 3)

    params = init_params(k_param, VOCAB, EMB, HIDDEN, LAYERS, OUT)
    x_ids = jax.random.randint(k_input, (B, T), 0, VOCAB, dtype=jnp.int32)

    fwd = jax.jit(functools.partial(lstm_model_forward,
                                    hidden_dim=HIDDEN, n_layers=LAYERS))
    out = fwd(params, x_ids, k_state)
    out = jax.block_until_ready(out)
    assert out.shape == (B, OUT) and out.dtype == jnp.float32
    print("KERNEL_OK")
</pallas_src>

<mosaic_0001>
module attributes {stable_mosaic.version = 11 : i64} {
  func.func @fused_lstm_kernel(%arg0: memref<64x128xf32, #tpu.memory_space<vmem>>, %arg1: memref<2x128x512xf32, #tpu.memory_space<vmem>>, %arg2: memref<2x128x512xf32, #tpu.memory_space<vmem>>, %arg3: memref<2x1x512xf32, #tpu.memory_space<vmem>>, %arg4: memref<2x8x128xf32, #tpu.memory_space<vmem>>, %arg5: memref<2x8x128xf32, #tpu.memory_space<vmem>>, %arg6: memref<128x128xf32, #tpu.memory_space<vmem>>, %arg7: memref<1x128xf32, #tpu.memory_space<vmem>>, %arg8: memref<8x128xf32, #tpu.memory_space<vmem>>, %arg9: memref<64x128xf32, #tpu.memory_space<vmem>>, %arg10: memref<64x512xf32, #tpu.memory_space<vmem>>, %arg11: memref<8x128xf32, #tpu.memory_space<vmem>>, %arg12: memref<8x128xf32, #tpu.memory_space<vmem>>) attributes {dimension_semantics = [], scalar_prefetch = 0 : i64, scratch_operands = 4 : i64, tpu.core_type = #tpu.core_type<tc>} {
    %c0 = arith.constant 0 : index
    %c0_0 = arith.constant 0 : index
    %0 = vector.load %arg0[%c0, %c0_0] : memref<64x128xf32, #tpu.memory_space<vmem>>, vector<64x128xf32>
    %c0_1 = arith.constant 0 : index
    %c0_2 = arith.constant 0 : index
    %1 = vector.load %arg9[%c0_1, %c0_2] : memref<64x128xf32, #tpu.memory_space<vmem>>, vector<64x128xf32>
    tpu.vector_store %arg9[%c0_1, %c0_2], %0 {strides = array<i32>} : memref<64x128xf32, #tpu.memory_space<vmem>>, vector<64x128xf32>,
    %c0_3 = arith.constant 0 : index
    %c0_4 = arith.constant 0 : index
    %2 = vector.load %arg9[%c0_3, %c0_4] : memref<64x128xf32, #tpu.memory_space<vmem>>, vector<64x128xf32>
    %c0_5 = arith.constant 0 : index
    %c0_6 = arith.constant 0 : index
    %c0_7 = arith.constant 0 : index
    %3 = vector.load %arg1[%c0_5, %c0_6, %c0_7] : memref<2x128x512xf32, #tpu.memory_space<vmem>>, vector<1x128x512xf32>
    %4 = vector.shape_cast %3 : vector<1x128x512xf32> to vector<128x512xf32>
    %cst = arith.constant dense<0.000000e+00> : vector<64x512xf32>
    %5 = tpu.matmul %2, %4, %cst {dimension_numbers = #tpu.dot_dimension_numbers<[1], [0], [0], [1], [0, 0, 1, 1], [], []>} : vector<64x128xf32>, vector<128x512xf32>, vector<64x512xf32> -> vector<64x512xf32>
    %c0_8 = arith.constant 0 : index
    %c0_9 = arith.constant 0 : index
    %c0_10 = arith.constant 0 : index
    %6 = vector.load %arg3[%c0_8, %c0_9, %c0_10] : memref<2x1x512xf32, #tpu.memory_space<vmem>>, vector<1x1x512xf32>
    %7 = vector.shape_cast %6 : vector<1x1x512xf32> to vector<1x512xf32>
    %8 = vector.broadcast %7 : vector<1x512xf32> to vector<64x512xf32>
    %9 = arith.addf %5, %8 : vector<64x512xf32>
    %c0_11 = arith.constant 0 : index
    %c0_12 = arith.constant 0 : index
    %10 = vector.load %arg10[%c0_11, %c0_12] : memref<64x512xf32, #tpu.memory_space<vmem>>, vector<64x512xf32>
    tpu.vector_store %arg10[%c0_11, %c0_12], %9 {strides = array<i32>} : memref<64x512xf32, #tpu.memory_space<vmem>>, vector<64x512xf32>,
    %c0_13 = arith.constant 0 : index
    %c0_14 = arith.constant 0 : index
    %c0_15 = arith.constant 0 : index
    %11 = vector.load %arg4[%c0_13, %c0_14, %c0_15] : memref<2x8x128xf32, #tpu.memory_space<vmem>>, vector<1x8x128xf32>
    %12 = vector.shape_cast %11 : vector<1x8x128xf32> to vector<8x128xf32>
    %c0_16 = arith.constant 0 : index
    %c0_17 = arith.constant 0 : index
    %13 = vector.load %arg11[%c0_16, %c0_17] : memref<8x128xf32, #tpu.memory_space<vmem>>, vector<8x128xf32>
    tpu.vector_store %arg11[%c0_16, %c0_17], %12 {strides = array<i32>} : memref<8x128xf32, #tpu.memory_space<vmem>>, vector<8x128xf32>,
    %c0_18 = arith.constant 0 : index
    %c0_19 = arith.constant 0 : index
    %c0_20 = arith.constant 0 : index
    %14 = vector.load %arg5[%c0_18, %c0_19, %c0_20] : memref<2x8x128xf32, #tpu.memory_space<vmem>>, vector<1x8x128xf32>
    %15 = vector.shape_cast %14 : vector<1x8x128xf32> to vector<8x128xf32>
    %c0_21 = arith.constant 0 : index
    %c0_22 = arith.constant 0 : index
    %16 = vector.load %arg12[%c0_21, %c0_22] : memref<8x128xf32, #tpu.memory_space<vmem>>, vector<8x128xf32>
    tpu.vector_store %arg12[%c0_21, %c0_22], %15 {strides = array<i32>} : memref<8x128xf32, #tpu.memory_space<vmem>>, vector<8x128xf32>,
    %c0_i32 = arith.constant 0 : i32
    %c8_i32 = arith.constant 8 : i32
    %17 = arith.muli %c0_i32, %c8_i32 : i32
    %18 = tpu.assume_multiple %17, 8 : i32
    %19 = arith.index_cast %18 : i32 to index
    %c0_23 = arith.constant 0 : index
    %20 = vector.load %arg10[%19, %c0_23] : memref<64x512xf32, #tpu.memory_space<vmem>>, vector<8x512xf32>
    %c0_24 = arith.constant 0 : index
    %c0_25 = arith.constant 0 : index
    %21 = vector.load %arg11[%c0_24, %c0_25] : memref<8x128xf32, #tpu.memory_space<vmem>>, vector<8x128xf32>
    %c0_26 = arith.constant 0 : index
    %c0_27 = arith.constant 0 : index
    %c0_28 = arith.constant 0 : index
    %22 = vector.load %arg2[%c0_26, %c0_27, %c0_28] : memref<2x128x512xf32, #tpu.memory_space<vmem>>, vector<1x128x512xf32>
    %23 = vector.shape_cast %22 : vector<1x128x512xf32> to vector<128x512xf32>
    %cst_29 = arith.constant dense<0.000000e+00> : vector<8x512xf32>
    %24 = tpu.matmul %21, %23, %cst_29 {dimension_numbers = #tpu.dot_dimension_numbers<[1], [0], [0], [1], [0, 0, 1, 1], [], []>} : vector<8x128xf32>, vector<128x512xf32>, vector<8x512xf32> -> vector<8x512xf32>
    %25 = arith.addf %20, %24 : vector<8x512xf32>
    %26 = vector.extract_strided_slice %25 {offsets = [0, 0], sizes = [8, 128], strides = [1, 1]} : vector<8x512xf32> to vector<8x128xf32>
    %27 = arith.negf %26 : vector<8x128xf32>
    %28 = math.exp %27 : vector<8x128xf32>
    %cst_30 = arith.constant 1.000000e+00 : f32
    %29 = vector.broadcast %cst_30 : f32 to vector<8x128xf32>
    %30 = arith.addf %29, %28 : vector<8x128xf32>
    %31 = arith.divf %29, %30 : vector<8x128xf32>
    %32 = vector.extract_strided_slice %25 {offsets = [0, 128], sizes = [8, 128], strides = [1, 1]} : vector<8x512xf32> to vector<8x128xf32>
    %33 = arith.negf %32 : vector<8x128xf32>
    %34 = math.exp %33 : vector<8x128xf32>
    %cst_31 = arith.constant 1.000000e+00 : f32
    %35 = vector.broadcast %cst_31 : f32 to vector<8x128xf32>
    %36 = arith.addf %35, %34 : vector<8x128xf32>
    %37 = arith.divf %35, %36 : vector<8x128xf32>
    %38 = vector.extract_strided_slice %25 {offsets = [0, 256], sizes = [8, 128], strides = [1, 1]} : vector<8x512xf32> to vector<8x128xf32>
    %39 = math.tanh %38 : vector<8x128xf32>
    %40 = vector.extract_strided_slice %25 {offsets = [0, 384], sizes = [8, 128], strides = [1, 1]} : vector<8x512xf32> to vector<8x128xf32>
    %41 = arith.negf %40 : vector<8x128xf32>
    %42 = math.exp %41 : vector<8x128xf32>
    %cst_32 = arith.constant 1.000000e+00 : f32
    %43 = vector.broadcast %cst_32 : f32 to vector<8x128xf32>
    %44 = arith.addf %43, %42 : vector<8x128xf32>
    %45 = arith.divf %43, %44 : vector<8x128xf32>
    %c0_33 = arith.constant 0 : index
    %c0_34 = arith.constant 0 : index
    %46 = vector.load %arg12[%c0_33, %c0_34] : memref<8x128xf32, #tpu.memory_space<vmem>>, vector<8x128xf32>
    %47 = arith.mulf %37, %46 : vector<8x128xf32>
    %48 = arith.mulf %31, %39 : vector<8x128xf32>
    %49 = arith.addf %47, %48 : vector<8x128xf32>
    %50 = math.tanh %49 : vector<8x128xf32>
    %51 = arith.mulf %45, %50 : vector<8x128xf32>
    %c0_35 = arith.constant 0 : index
    %c0_36 = arith.constant 0 : index
    %52 = vector.load %arg12[%c0_35, %c0_36] : memref<8x128xf32, #tpu.memory_space<vmem>>, vector<8x128xf32>
    tpu.vector_store %arg12[%c0_35, %c0_36], %49 {strides = array<i32>} : memref<8x128xf32, #tpu.memory_space<vmem>>, vector<8x128xf32>,
    %c0_37 = arith.constant 0 : index
    %c0_38 = arith.constant 0 : index
    %53 = vector.load %arg11[%c0_37, %c0_38] : memref<8x128xf32, #tpu.memory_space<vmem>>, vector<8x128xf32>
    tpu.vector_store %arg11[%c0_37, %c0_38], %51 {strides = array<i32>} : memref<8x128xf32, #tpu.memory_space<vmem>>, vector<8x128xf32>,
    %54 = arith.index_cast %18 : i32 to index
    %c0_39 = arith.constant 0 : index
    %55 = vector.load %arg9[%54, %c0_39] : memref<64x128xf32, #tpu.memory_space<vmem>>, vector<8x128xf32>
    tpu.vector_store %arg9[%54, %c0_39], %51 {strides = array<i32>} : memref<64x128xf32, #tpu.memory_space<vmem>>, vector<8x128xf32>,
    %c1_i32 = arith.constant 1 : i32
    %c8_i32_40 = arith.constant 8 : i32
    %56 = arith.muli %c1_i32, %c8_i32_40 : i32
    %57 = tpu.assume_multiple %56, 8 : i32
    %58 = arith.index_cast %57 : i32 to index
    %c0_41 = arith.constant 0 : index
    %59 = vector.load %arg10[%58, %c0_41] : memref<64x512xf32, #tpu.memory_space<vmem>>, vector<8x512xf32>
    %c0_42 = arith.constant 0 : index
    %c0_43 = arith.constant 0 : index
    %60 = vector.load %arg11[%c0_42, %c0_43] : memref<8x128xf32, #tpu.memory_space<vmem>>, vector<8x128xf32>
    %c0_44 = arith.constant 0 : index
    %c0_45 = arith.constant 0 : index
    %c0_46 = arith.constant 0 : index
    %61 = vector.load %arg2[%c0_44, %c0_45, %c0_46] : memref<2x128x512xf32, #tpu.memory_space<vmem>>, vector<1x128x512xf32>
    %62 = vector.shape_cast %61 : vector<1x128x512xf32> to vector<128x512xf32>
    %cst_47 = arith.constant dense<0.000000e+00> : vector<8x512xf32>
    %63 = tpu.matmul %60, %62, %cst_47 {dimension_numbers = #tpu.dot_dimension_numbers<[1], [0], [0], [1], [0, 0, 1, 1], [], []>} : vector<8x128xf32>, vector<128x512xf32>, vector<8x512xf32> -> vector<8x512xf32>
    %64 = arith.addf %59, %63 : vector<8x512xf32>
    %65 = vector.extract_strided_slice %64 {offsets = [0, 0], sizes = [8, 128], strides = [1, 1]} : vector<8x512xf32> to vector<8x128xf32>
    %66 = arith.negf %65 : vector<8x128xf32>
    %67 = math.exp %66 : vector<8x128xf32>
    %cst_48 = arith.constant 1.000000e+00 : f32
    %68 = vector.broadcast %cst_48 : f32 to vector<8x128xf32>
    %69 = arith.addf %68, %67 : vector<8x128xf32>
    %70 = arith.divf %68, %69 : vector<8x128xf32>
    %71 = vector.extract_strided_slice %64 {offsets = [0, 128], sizes = [8, 128], strides = [1, 1]} : vector<8x512xf32> to vector<8x128xf32>
    %72 = arith.negf %71 : vector<8x128xf32>
    %73 = math.exp %72 : vector<8x128xf32>
    %cst_49 = arith.constant 1.000000e+00 : f32
    %74 = vector.broadcast %cst_49 : f32 to vector<8x128xf32>
    %75 = arith.addf %74, %73 : vector<8x128xf32>
    %76 = arith.divf %74, %75 : vector<8x128xf32>
    %77 = vector.extract_strided_slice %64 {offsets = [0, 256], sizes = [8, 128], strides = [1, 1]} : vector<8x512xf32> to vector<8x128xf32>
    %78 = math.tanh %77 : vector<8x128xf32>
    %79 = vector.extract_strided_slice %64 {offsets = [0, 384], sizes = [8, 128], strides = [1, 1]} : vector<8x512xf32> to vector<8x128xf32>
    %80 = arith.negf %79 : vector<8x128xf32>
    %81 = math.exp %80 : vector<8x128xf32>
    %cst_50 = arith.constant 1.000000e+00 : f32
    %82 = vector.broadcast %cst_50 : f32 to vector<8x128xf32>
    %83 = arith.addf %82, %81 : vector<8x128xf32>
    %84 = arith.divf %82, %83 : vector<8x128xf32>
    %c0_51 = arith.constant 0 : index
    %c0_52 = arith.constant 0 : index
    %85 = vector.load %arg12[%c0_51, %c0_52] : memref<8x128xf32, #tpu.memory_space<vmem>>, vector<8x128xf32>
    %86 = arith.mulf %76, %85 : vector<8x128xf32>
    %87 = arith.mulf %70, %78 : vector<8x128xf32>
    %88 = arith.addf %86, %87 : vector<8x128xf32>
    %89 = math.tanh %88 : vector<8x128xf32>
    %90 = arith.mulf %84, %89 : vector<8x128xf32>
    %c0_53 = arith.constant 0 : index
    %c0_54 = arith.constant 0 : index
    %91 = vector.load %arg12[%c0_53, %c0_54] : memref<8x128xf32, #tpu.memory_space<vmem>>, vector<8x128xf32>
    tpu.vector_store %arg12[%c0_53, %c0_54], %88 {strides = array<i32>} : memref<8x128xf32, #tpu.memory_space<vmem>>, vector<8x128xf32>,
    %c0_55 = arith.constant 0 : index
    %c0_56 = arith.constant 0 : index
    %92 = vector.load %arg11[%c0_55, %c0_56] : memref<8x128xf32, #tpu.memory_space<vmem>>, vector<8x128xf32>
    tpu.vector_store %arg11[%c0_55, %c0_56], %90 {strides = array<i32>} : memref<8x128xf32, #tpu.memory_space<vmem>>, vector<8x128xf32>,
    %93 = arith.index_cast %57 : i32 to index
    %c0_57 = arith.constant 0 : index
    %94 = vector.load %arg9[%93, %c0_57] : memref<64x128xf32, #tpu.memory_space<vmem>>, vector<8x128xf32>
    tpu.vector_store %arg9[%93, %c0_57], %90 {strides = array<i32>} : memref<64x128xf32, #tpu.memory_space<vmem>>, vector<8x128xf32>,
    %c2_i32 = arith.constant 2 : i32
    %c8_i32_58 = arith.constant 8 : i32
    %95 = arith.muli %c2_i32, %c8_i32_58 : i32
    %96 = tpu.assume_multiple %95, 8 : i32
    %97 = arith.index_cast %96 : i32 to index
    %c0_59 = arith.constant 0 : index
    %98 = vector.load %arg10[%97, %c0_59] : memref<64x512xf32, #tpu.memory_space<vmem>>, vector<8x512xf32>
    %c0_60 = arith.constant 0 : index
    %c0_61 = arith.constant 0 : index
    %99 = vector.load %arg11[%c0_60, %c0_61] : memref<8x128xf32, #tpu.memory_space<vmem>>, vector<8x128xf32>
    %c0_62 = arith.constant 0 : index
    %c0_63 = arith.constant 0 : index
    %c0_64 = arith.constant 0 : index
    %100 = vector.load %arg2[%c0_62, %c0_63, %c0_64] : memref<2x128x512xf32, #tpu.memory_space<vmem>>, vector<1x128x512xf32>
    %101 = vector.shape_cast %100 : vector<1x128x512xf32> to vector<128x512xf32>
    %cst_65 = arith.constant dense<0.000000e+00> : vector<8x512xf32>
    %102 = tpu.matmul %99, %101, %cst_65 {dimension_numbers = #tpu.dot_dimension_numbers<[1], [0], [0], [1], [0, 0, 1, 1], [], []>} : vector<8x128xf32>, vector<128x512xf32>, vector<8x512xf32> -> vector<8x512xf32>
    %103 = arith.addf %98, %102 : vector<8x512xf32>
    %104 = vector.extract_strided_slice %103 {offsets = [0, 0], sizes = [8, 128], strides = [1, 1]} : vector<8x512xf32> to vector<8x128xf32>
    %105 = arith.negf %104 : vector<8x128xf32>
    %106 = math.exp %105 : vector<8x128xf32>
    %cst_66 = arith.constant 1.000000e+00 : f32
    %107 = vector.broadcast %cst_66 : f32 to vector<8x128xf32>
    %108 = arith.addf %107, %106 : vector<8x128xf32>
    %109 = arith.divf %107, %108 : vector<8x128xf32>
    %110 = vector.extract_strided_slice %103 {offsets = [0, 128], sizes = [8, 128], strides = [1, 1]} : vector<8x512xf32> to vector<8x128xf32>
    %111 = arith.negf %110 : vector<8x128xf32>
    %112 = math.exp %111 : vector<8x128xf32>
    %cst_67 = arith.constant 1.000000e+00 : f32
    %113 = vector.broadcast %cst_67 : f32 to vector<8x128xf32>
    %114 = arith.addf %113, %112 : vector<8x128xf32>
    %115 = arith.divf %113, %114 : vector<8x128xf32>
    %116 = vector.extract_strided_slice %103 {offsets = [0, 256], sizes = [8, 128], strides = [1, 1]} : vector<8x512xf32> to vector<8x128xf32>
    %117 = math.tanh %116 : vector<8x128xf32>
    %118 = vector.extract_strided_slice %103 {offsets = [0, 384], sizes = [8, 128], strides = [1, 1]} : vector<8x512xf32> to vector<8x128xf32>
    %119 = arith.negf %118 : vector<8x128xf32>
    %120 = math.exp %119 : vector<8x128xf32>
    %cst_68 = arith.constant 1.000000e+00 : f32
    %121 = vector.broadcast %cst_68 : f32 to vector<8x128xf32>
    %122 = arith.addf %121, %120 : vector<8x128xf32>
    %123 = arith.divf %121, %122 : vector<8x128xf32>
    %c0_69 = arith.constant 0 : index
    %c0_70 = arith.constant 0 : index
    %124 = vector.load %arg12[%c0_69, %c0_70] : memref<8x128xf32, #tpu.memory_space<vmem>>, vector<8x128xf32>
    %125 = arith.mulf %115, %124 : vector<8x128xf32>
    %126 = arith.mulf %109, %117 : vector<8x128xf32>
    %127 = arith.addf %125, %126 : vector<8x128xf32>
    %128 = math.tanh %127 : vector<8x128xf32>
    %129 = arith.mulf %123, %128 : vector<8x128xf32>
    %c0_71 = arith.constant 0 : index
    %c0_72 = arith.constant 0 : index
    %130 = vector.load %arg12[%c0_71, %c0_72] : memref<8x128xf32, #tpu.memory_space<vmem>>, vector<8x128xf32>
    tpu.vector_store %arg12[%c0_71, %c0_72], %127 {strides = array<i32>} : memref<8x128xf32, #tpu.memory_space<vmem>>, vector<8x128xf32>,
    %c0_73 = arith.constant 0 : index
    %c0_74 = arith.constant 0 : index
    %131 = vector.load %arg11[%c0_73, %c0_74] : memref<8x128xf32, #tpu.memory_space<vmem>>, vector<8x128xf32>
    tpu.vector_store %arg11[%c0_73, %c0_74], %129 {strides = array<i32>} : memref<8x128xf32, #tpu.memory_space<vmem>>, vector<8x128xf32>,
    %132 = arith.index_cast %96 : i32 to index
    %c0_75 = arith.constant 0 : index
    %133 = vector.load %arg9[%132, %c0_75] : memref<64x128xf32, #tpu.memory_space<vmem>>, vector<8x128xf32>
    tpu.vector_store %arg9[%132, %c0_75], %129 {strides = array<i32>} : memref<64x128xf32, #tpu.memory_space<vmem>>, vector<8x128xf32>,
    %c3_i32 = arith.constant 3 : i32
    %c8_i32_76 = arith.constant 8 : i32
    %134 = arith.muli %c3_i32, %c8_i32_76 : i32
    %135 = tpu.assume_multiple %134, 8 : i32
    %136 = arith.index_cast %135 : i32 to index
    %c0_77 = arith.constant 0 : index
    %137 = vector.load %arg10[%136, %c0_77] : memref<64x512xf32, #tpu.memory_space<vmem>>, vector<8x512xf32>
    %c0_78 = arith.constant 0 : index
    %c0_79 = arith.constant 0 : index
    %138 = vector.load %arg11[%c0_78, %c0_79] : memref<8x128xf32, #tpu.memory_space<vmem>>, vector<8x128xf32>
    %c0_80 = arith.constant 0 : index
    %c0_81 = arith.constant 0 : index
    %c0_82 = arith.constant 0 : index
    %139 = vector.load %arg2[%c0_80, %c0_81, %c0_82] : memref<2x128x512xf32, #tpu.memory_space<vmem>>, vector<1x128x512xf32>
    %140 = vector.shape_cast %139 : vector<1x128x512xf32> to vector<128x512xf32>
    %cst_83 = arith.constant dense<0.000000e+00> : vector<8x512xf32>
    %141 = tpu.matmul %138, %140, %cst_83 {dimension_numbers = #tpu.dot_dimension_numbers<[1], [0], [0], [1], [0, 0, 1, 1], [], []>} : vector<8x128xf32>, vector<128x512xf32>, vector<8x512xf32> -> vector<8x512xf32>
    %142 = arith.addf %137, %141 : vector<8x512xf32>
    %143 = vector.extract_strided_slice %142 {offsets = [0, 0], sizes = [8, 128], strides = [1, 1]} : vector<8x512xf32> to vector<8x128xf32>
    %144 = arith.negf %143 : vector<8x128xf32>
    %145 = math.exp %144 : vector<8x128xf32>
    %cst_84 = arith.constant 1.000000e+00 : f32
    %146 = vector.broadcast %cst_84 : f32 to vector<8x128xf32>
    %147 = arith.addf %146, %145 : vector<8x128xf32>
    %148 = arith.divf %146, %147 : vector<8x128xf32>
    %149 = vector.extract_strided_slice %142 {offsets = [0, 128], sizes = [8, 128], strides = [1, 1]} : vector<8x512xf32> to vector<8x128xf32>
    %150 = arith.negf %149 : vector<8x128xf32>
    %151 = math.exp %150 : vector<8x128xf32>
    %cst_85 = arith.constant 1.000000e+00 : f32
    %152 = vector.broadcast %cst_85 : f32 to vector<8x128xf32>
    %153 = arith.addf %152, %151 : vector<8x128xf32>
    %154 = arith.divf %152, %153 : vector<8x128xf32>
    %155 = vector.extract_strided_slice %142 {offsets = [0, 256], sizes = [8, 128], strides = [1, 1]} : vector<8x512xf32> to vector<8x128xf32>
    %156 = math.tanh %155 : vector<8x128xf32>
    %157 = vector.extract_strided_slice %142 {offsets = [0, 384], sizes = [8, 128], strides = [1, 1]} : vector<8x512xf32> to vector<8x128xf32>
    %158 = arith.negf %157 : vector<8x128xf32>
    %159 = math.exp %158 : vector<8x128xf32>
    %cst_86 = arith.constant 1.000000e+00 : f32
    %160 = vector.broadcast %cst_86 : f32 to vector<8x128xf32>
    %161 = arith.addf %160, %159 : vector<8x128xf32>
    %162 = arith.divf %160, %161 : vector<8x128xf32>
    %c0_87 = arith.constant 0 : index
    %c0_88 = arith.constant 0 : index
    %163 = vector.load %arg12[%c0_87, %c0_88] : memref<8x128xf32, #tpu.memory_space<vmem>>, vector<8x128xf32>
    %164 = arith.mulf %154, %163 : vector<8x128xf32>
    %165 = arith.mulf %148, %156 : vector<8x128xf32>
    %166 = arith.addf %164, %165 : vector<8x128xf32>
    %167 = math.tanh %166 : vector<8x128xf32>
    %168 = arith.mulf %162, %167 : vector<8x128xf32>
    %c0_89 = arith.constant 0 : index
    %c0_90 = arith.constant 0 : index
    %169 = vector.load %arg12[%c0_89, %c0_90] : memref<8x128xf32, #tpu.memory_space<vmem>>, vector<8x128xf32>
    tpu.vector_store %arg12[%c0_89, %c0_90], %166 {strides = array<i32>} : memref<8x128xf32, #tpu.memory_space<vmem>>, vector<8x128xf32>,
    %c0_91 = arith.constant 0 : index
    %c0_92 = arith.constant 0 : index
    %170 = vector.load %arg11[%c0_91, %c0_92] : memref<8x128xf32, #tpu.memory_space<vmem>>, vector<8x128xf32>
    tpu.vector_store %arg11[%c0_91, %c0_92], %168 {strides = array<i32>} : memref<8x128xf32, #tpu.memory_space<vmem>>, vector<8x128xf32>,
    %171 = arith.index_cast %135 : i32 to index
    %c0_93 = arith.constant 0 : index
    %172 = vector.load %arg9[%171, %c0_93] : memref<64x128xf32, #tpu.memory_space<vmem>>, vector<8x128xf32>
    tpu.vector_store %arg9[%171, %c0_93], %168 {strides = array<i32>} : memref<64x128xf32, #tpu.memory_space<vmem>>, vector<8x128xf32>,
    %c4_i32 = arith.constant 4 : i32
    %c8_i32_94 = arith.constant 8 : i32
    %173 = arith.muli %c4_i32, %c8_i32_94 : i32
    %174 = tpu.assume_multiple %173, 8 : i32
    %175 = arith.index_cast %174 : i32 to index
    %c0_95 = arith.constant 0 : index
    %176 = vector.load %arg10[%175, %c0_95] : memref<64x512xf32, #tpu.memory_space<vmem>>, vector<8x512xf32>
    %c0_96 = arith.constant 0 : index
    %c0_97 = arith.constant 0 : index
    %177 = vector.load %arg11[%c0_96, %c0_97] : memref<8x128xf32, #tpu.memory_space<vmem>>, vector<8x128xf32>
    %c0_98 = arith.constant 0 : index
    %c0_99 = arith.constant 0 : index
    %c0_100 = arith.constant 0 : index
    %178 = vector.load %arg2[%c0_98, %c0_99, %c0_100] : memref<2x128x512xf32, #tpu.memory_space<vmem>>, vector<1x128x512xf32>
    %179 = vector.shape_cast %178 : vector<1x128x512xf32> to vector<128x512xf32>
    %cst_101 = arith.constant dense<0.000000e+00> : vector<8x512xf32>
    %180 = tpu.matmul %177, %179, %cst_101 {dimension_numbers = #tpu.dot_dimension_numbers<[1], [0], [0], [1], [0, 0, 1, 1], [], []>} : vector<8x128xf32>, vector<128x512xf32>, vector<8x512xf32> -> vector<8x512xf32>
    %181 = arith.addf %176, %180 : vector<8x512xf32>
    %182 = vector.extract_strided_slice %181 {offsets = [0, 0], sizes = [8, 128], strides = [1, 1]} : vector<8x512xf32> to vector<8x128xf32>
    %183 = arith.negf %182 : vector<8x128xf32>
    %184 = math.exp %183 : vector<8x128xf32>
    %cst_102 = arith.constant 1.000000e+00 : f32
    %185 = vector.broadcast %cst_102 : f32 to vector<8x128xf32>
    %186 = arith.addf %185, %184 : vector<8x128xf32>
    %187 = arith.divf %185, %186 : vector<8x128xf32>
    %188 = vector.extract_strided_slice %181 {offsets = [0, 128], sizes = [8, 128], strides = [1, 1]} : vector<8x512xf32> to vector<8x128xf32>
    %189 = arith.negf %188 : vector<8x128xf32>
    %190 = math.exp %189 : vector<8x128xf32>
    %cst_103 = arith.constant 1.000000e+00 : f32
    %191 = vector.broadcast %cst_103 : f32 to vector<8x128xf32>
    %192 = arith.addf %191, %190 : vector<8x128xf32>
    %193 = arith.divf %191, %192 : vector<8x128xf32>
    %194 = vector.extract_strided_slice %181 {offsets = [0, 256], sizes = [8, 128], strides = [1, 1]} : vector<8x512xf32> to vector<8x128xf32>
    %195 = math.tanh %194 : vector<8x128xf32>
    %196 = vector.extract_strided_slice %181 {offsets = [0, 384], sizes = [8, 128], strides = [1, 1]} : vector<8x512xf32> to vector<8x128xf32>
    %197 = arith.negf %196 : vector<8x128xf32>
    %198 = math.exp %197 : vector<8x128xf32>
    %cst_104 = arith.constant 1.000000e+00 : f32
    %199 = vector.broadcast %cst_104 : f32 to vector<8x128xf32>
    %200 = arith.addf %199, %198 : vector<8x128xf32>
    %201 = arith.divf %199, %200 : vector<8x128xf32>
    %c0_105 = arith.constant 0 : index
    %c0_106 = arith.constant 0 : index
    %202 = vector.load %arg12[%c0_105, %c0_106] : memref<8x128xf32, #tpu.memory_space<vmem>>, vector<8x128xf32>
    %203 = arith.mulf %193, %202 : vector<8x128xf32>
    %204 = arith.mulf %187, %195 : vector<8x128xf32>
    %205 = arith.addf %203, %204 : vector<8x128xf32>
    %206 = math.tanh %205 : vector<8x128xf32>
    %207 = arith.mulf %201, %206 : vector<8x128xf32>
    %c0_107 = arith.constant 0 : index
    %c0_108 = arith.constant 0 : index
    %208 = vector.load %arg12[%c0_107, %c0_108] : memref<8x128xf32, #tpu.memory_space<vmem>>, vector<8x128xf32>
    tpu.vector_store %arg12[%c0_107, %c0_108], %205 {strides = array<i32>} : memref<8x128xf32, #tpu.memory_space<vmem>>, vector<8x128xf32>,
    %c0_109 = arith.constant 0 : index
    %c0_110 = arith.constant 0 : index
    %209 = vector.load %arg11[%c0_109, %c0_110] : memref<8x128xf32, #tpu.memory_space<vmem>>, vector<8x128xf32>
    tpu.vector_store %arg11[%c0_109, %c0_110], %207 {strides = array<i32>} : memref<8x128xf32, #tpu.memory_space<vmem>>, vector<8x128xf32>,
    %210 = arith.index_cast %174 : i32 to index
    %c0_111 = arith.constant 0 : index
    %211 = vector.load %arg9[%210, %c0_111] : memref<64x128xf32, #tpu.memory_space<vmem>>, vector<8x128xf32>
    tpu.vector_store %arg9[%210, %c0_111], %207 {strides = array<i32>} : memref<64x128xf32, #tpu.memory_space<vmem>>, vector<8x128xf32>,
    %c5_i32 = arith.constant 5 : i32
    %c8_i32_112 = arith.constant 8 : i32
    %212 = arith.muli %c5_i32, %c8_i32_112 : i32
    %213 = tpu.assume_multiple %212, 8 : i32
    %214 = arith.index_cast %213 : i32 to index
    %c0_113 = arith.constant 0 : index
    %215 = vector.load %arg10[%214, %c0_113] : memref<64x512xf32, #tpu.memory_space<vmem>>, vector<8x512xf32>
    %c0_114 = arith.constant 0 : index
    %c0_115 = arith.constant 0 : index
    %216 = vector.load %arg11[%c0_114, %c0_115] : memref<8x128xf32, #tpu.memory_space<vmem>>, vector<8x128xf32>
    %c0_116 = arith.constant 0 : index
    %c0_117 = arith.constant 0 : index
    %c0_118 = arith.constant 0 : index
    %217 = vector.load %arg2[%c0_116, %c0_117, %c0_118] : memref<2x128x512xf32, #tpu.memory_space<vmem>>, vector<1x128x512xf32>
    %218 = vector.shape_cast %217 : vector<1x128x512xf32> to vector<128x512xf32>
    %cst_119 = arith.constant dense<0.000000e+00> : vector<8x512xf32>
    %219 = tpu.matmul %216, %218, %cst_119 {dimension_numbers = #tpu.dot_dimension_numbers<[1], [0], [0], [1], [0, 0, 1, 1], [], []>} : vector<8x128xf32>, vector<128x512xf32>, vector<8x512xf32> -> vector<8x512xf32>
    %220 = arith.addf %215, %219 : vector<8x512xf32>
    %221 = vector.extract_strided_slice %220 {offsets = [0, 0], sizes = [8, 128], strides = [1, 1]} : vector<8x512xf32> to vector<8x128xf32>
    %222 = arith.negf %221 : vector<8x128xf32>
    %223 = math.exp %222 : vector<8x128xf32>
    %cst_120 = arith.constant 1.000000e+00 : f32
    %224 = vector.broadcast %cst_120 : f32 to vector<8x128xf32>
    %225 = arith.addf %224, %223 : vector<8x128xf32>
    %226 = arith.divf %224, %225 : vector<8x128xf32>
    %227 = vector.extract_strided_slice %220 {offsets = [0, 128], sizes = [8, 128], strides = [1, 1]} : vector<8x512xf32> to vector<8x128xf32>
    %228 = arith.negf %227 : vector<8x128xf32>
    %229 = math.exp %228 : vector<8x128xf32>
    %cst_121 = arith.constant 1.000000e+00 : f32
    %230 = vector.broadcast %cst_121 : f32 to vector<8x128xf32>
    %231 = arith.addf %230, %229 : vector<8x128xf32>
    %232 = arith.divf %230, %231 : vector<8x128xf32>
    %233 = vector.extract_strided_slice %220 {offsets = [0, 256], sizes = [8, 128], strides = [1, 1]} : vector<8x512xf32> to vector<8x128xf32>
    %234 = math.tanh %233 : vector<8x128xf32>
    %235 = vector.extract_strided_slice %220 {offsets = [0, 384], sizes = [8, 128], strides = [1, 1]} : vector<8x512xf32> to vector<8x128xf32>
    %236 = arith.negf %235 : vector<8x128xf32>
    %237 = math.exp %236 : vector<8x128xf32>
    %cst_122 = arith.constant 1.000000e+00 : f32
    %238 = vector.broadcast %cst_122 : f32 to vector<8x128xf32>
    %239 = arith.addf %238, %237 : vector<8x128xf32>
    %240 = arith.divf %238, %239 : vector<8x128xf32>
    %c0_123 = arith.constant 0 : index
    %c0_124 = arith.constant 0 : index
    %241 = vector.load %arg12[%c0_123, %c0_124] : memref<8x128xf32, #tpu.memory_space<vmem>>, vector<8x128xf32>
    %242 = arith.mulf %232, %241 : vector<8x128xf32>
    %243 = arith.mulf %226, %234 : vector<8x128xf32>
    %244 = arith.addf %242, %243 : vector<8x128xf32>
    %245 = math.tanh %244 : vector<8x128xf32>
    %246 = arith.mulf %240, %245 : vector<8x128xf32>
    %c0_125 = arith.constant 0 : index
    %c0_126 = arith.constant 0 : index
    %247 = vector.load %arg12[%c0_125, %c0_126] : memref<8x128xf32, #tpu.memory_space<vmem>>, vector<8x128xf32>
    tpu.vector_store %arg12[%c0_125, %c0_126], %244 {strides = array<i32>} : memref<8x128xf32, #tpu.memory_space<vmem>>, vector<8x128xf32>,
    %c0_127 = arith.constant 0 : index
    %c0_128 = arith.constant 0 : index
    %248 = vector.load %arg11[%c0_127, %c0_128] : memref<8x128xf32, #tpu.memory_space<vmem>>, vector<8x128xf32>
    tpu.vector_store %arg11[%c0_127, %c0_128], %246 {strides = array<i32>} : memref<8x128xf32, #tpu.memory_space<vmem>>, vector<8x128xf32>,
    %249 = arith.index_cast %213 : i32 to index
    %c0_129 = arith.constant 0 : index
    %250 = vector.load %arg9[%249, %c0_129] : memref<64x128xf32, #tpu.memory_space<vmem>>, vector<8x128xf32>
    tpu.vector_store %arg9[%249, %c0_129], %246 {strides = array<i32>} : memref<64x128xf32, #tpu.memory_space<vmem>>, vector<8x128xf32>,
    %c6_i32 = arith.constant 6 : i32
    %c8_i32_130 = arith.constant 8 : i32
    %251 = arith.muli %c6_i32, %c8_i32_130 : i32
    %252 = tpu.assume_multiple %251, 8 : i32
    %253 = arith.index_cast %252 : i32 to index
    %c0_131 = arith.constant 0 : index
    %254 = vector.load %arg10[%253, %c0_131] : memref<64x512xf32, #tpu.memory_space<vmem>>, vector<8x512xf32>
    %c0_132 = arith.constant 0 : index
    %c0_133 = arith.constant 0 : index
    %255 = vector.load %arg11[%c0_132, %c0_133] : memref<8x128xf32, #tpu.memory_space<vmem>>, vector<8x128xf32>
    %c0_134 = arith.constant 0 : index
    %c0_135 = arith.constant 0 : index
    %c0_136 = arith.constant 0 : index
    %256 = vector.load %arg2[%c0_134, %c0_135, %c0_136] : memref<2x128x512xf32, #tpu.memory_space<vmem>>, vector<1x128x512xf32>
    %257 = vector.shape_cast %256 : vector<1x128x512xf32> to vector<128x512xf32>
    %cst_137 = arith.constant dense<0.000000e+00> : vector<8x512xf32>
    %258 = tpu.matmul %255, %257, %cst_137 {dimension_numbers = #tpu.dot_dimension_numbers<[1], [0], [0], [1], [0, 0, 1, 1], [], []>} : vector<8x128xf32>, vector<128x512xf32>, vector<8x512xf32> -> vector<8x512xf32>
    %259 = arith.addf %254, %258 : vector<8x512xf32>
    %260 = vector.extract_strided_slice %259 {offsets = [0, 0], sizes = [8, 128], strides = [1, 1]} : vector<8x512xf32> to vector<8x128xf32>
    %261 = arith.negf %260 : vector<8x128xf32>
    %262 = math.exp %261 : vector<8x128xf32>
    %cst_138 = arith.constant 1.000000e+00 : f32
    %263 = vector.broadcast %cst_138 : f32 to vector<8x128xf32>
    %264 = arith.addf %263, %262 : vector<8x128xf32>
    %265 = arith.divf %263, %264 : vector<8x128xf32>
    %266 = vector.extract_strided_slice %259 {offsets = [0, 128], sizes = [8, 128], strides = [1, 1]} : vector<8x512xf32> to vector<8x128xf32>
    %267 = arith.negf %266 : vector<8x128xf32>
    %268 = math.exp %267 : vector<8x128xf32>
    %cst_139 = arith.constant 1.000000e+00 : f32
    %269 = vector.broadcast %cst_139 : f32 to vector<8x128xf32>
    %270 = arith.addf %269, %268 : vector<8x128xf32>
    %271 = arith.divf %269, %270 : vector<8x128xf32>
    %272 = vector.extract_strided_slice %259 {offsets = [0, 256], sizes = [8, 128], strides = [1, 1]} : vector<8x512xf32> to vector<8x128xf32>
    %273 = math.tanh %272 : vector<8x128xf32>
    %274 = vector.extract_strided_slice %259 {offsets = [0, 384], sizes = [8, 128], strides = [1, 1]} : vector<8x512xf32> to vector<8x128xf32>
    %275 = arith.negf %274 : vector<8x128xf32>
    %276 = math.exp %275 : vector<8x128xf32>
    %cst_140 = arith.constant 1.000000e+00 : f32
    %277 = vector.broadcast %cst_140 : f32 to vector<8x128xf32>
    %278 = arith.addf %277, %276 : vector<8x128xf32>
    %279 = arith.divf %277, %278 : vector<8x128xf32>
    %c0_141 = arith.constant 0 : index
    %c0_142 = arith.constant 0 : index
    %280 = vector.load %arg12[%c0_141, %c0_142] : memref<8x128xf32, #tpu.memory_space<vmem>>, vector<8x128xf32>
    %281 = arith.mulf %271, %280 : vector<8x128xf32>
    %282 = arith.mulf %265, %273 : vector<8x128xf32>
    %283 = arith.addf %281, %282 : vector<8x128xf32>
    %284 = math.tanh %283 : vector<8x128xf32>
    %285 = arith.mulf %279, %284 : vector<8x128xf32>
    %c0_143 = arith.constant 0 : index
    %c0_144 = arith.constant 0 : index
    %286 = vector.load %arg12[%c0_143, %c0_144] : memref<8x128xf32, #tpu.memory_space<vmem>>, vector<8x128xf32>
    tpu.vector_store %arg12[%c0_143, %c0_144], %283 {strides = array<i32>} : memref<8x128xf32, #tpu.memory_space<vmem>>, vector<8x128xf32>,
    %c0_145 = arith.constant 0 : index
    %c0_146 = arith.constant 0 : index
    %287 = vector.load %arg11[%c0_145, %c0_146] : memref<8x128xf32, #tpu.memory_space<vmem>>, vector<8x128xf32>
    tpu.vector_store %arg11[%c0_145, %c0_146], %285 {strides = array<i32>} : memref<8x128xf32, #tpu.memory_space<vmem>>, vector<8x128xf32>,
    %288 = arith.index_cast %252 : i32 to index
    %c0_147 = arith.constant 0 : index
    %289 = vector.load %arg9[%288, %c0_147] : memref<64x128xf32, #tpu.memory_space<vmem>>, vector<8x128xf32>
    tpu.vector_store %arg9[%288, %c0_147], %285 {strides = array<i32>} : memref<64x128xf32, #tpu.memory_space<vmem>>, vector<8x128xf32>,
    %c7_i32 = arith.constant 7 : i32
    %c8_i32_148 = arith.constant 8 : i32
    %290 = arith.muli %c7_i32, %c8_i32_148 : i32
    %291 = tpu.assume_multiple %290, 8 : i32
    %292 = arith.index_cast %291 : i32 to index
    %c0_149 = arith.constant 0 : index
    %293 = vector.load %arg10[%292, %c0_149] : memref<64x512xf32, #tpu.memory_space<vmem>>, vector<8x512xf32>
    %c0_150 = arith.constant 0 : index
    %c0_151 = arith.constant 0 : index
    %294 = vector.load %arg11[%c0_150, %c0_151] : memref<8x128xf32, #tpu.memory_space<vmem>>, vector<8x128xf32>
    %c0_152 = arith.constant 0 : index
    %c0_153 = arith.constant 0 : index
    %c0_154 = arith.constant 0 : index
    %295 = vector.load %arg2[%c0_152, %c0_153, %c0_154] : memref<2x128x512xf32, #tpu.memory_space<vmem>>, vector<1x128x512xf32>
    %296 = vector.shape_cast %295 : vector<1x128x512xf32> to vector<128x512xf32>
    %cst_155 = arith.constant dense<0.000000e+00> : vector<8x512xf32>
    %297 = tpu.matmul %294, %296, %cst_155 {dimension_numbers = #tpu.dot_dimension_numbers<[1], [0], [0], [1], [0, 0, 1, 1], [], []>} : vector<8x128xf32>, vector<128x512xf32>, vector<8x512xf32> -> vector<8x512xf32>
    %298 = arith.addf %293, %297 : vector<8x512xf32>
    %299 = vector.extract_strided_slice %298 {offsets = [0, 0], sizes = [8, 128], strides = [1, 1]} : vector<8x512xf32> to vector<8x128xf32>
    %300 = arith.negf %299 : vector<8x128xf32>
    %301 = math.exp %300 : vector<8x128xf32>
    %cst_156 = arith.constant 1.000000e+00 : f32
    %302 = vector.broadcast %cst_156 : f32 to vector<8x128xf32>
    %303 = arith.addf %302, %301 : vector<8x128xf32>
    %304 = arith.divf %302, %303 : vector<8x128xf32>
    %305 = vector.extract_strided_slice %298 {offsets = [0, 128], sizes = [8, 128], strides = [1, 1]} : vector<8x512xf32> to vector<8x128xf32>
    %306 = arith.negf %305 : vector<8x128xf32>
    %307 = math.exp %306 : vector<8x128xf32>
    %cst_157 = arith.constant 1.000000e+00 : f32
    %308 = vector.broadcast %cst_157 : f32 to vector<8x128xf32>
    %309 = arith.addf %308, %307 : vector<8x128xf32>
    %310 = arith.divf %308, %309 : vector<8x128xf32>
    %311 = vector.extract_strided_slice %298 {offsets = [0, 256], sizes = [8, 128], strides = [1, 1]} : vector<8x512xf32> to vector<8x128xf32>
    %312 = math.tanh %311 : vector<8x128xf32>
    %313 = vector.extract_strided_slice %298 {offsets = [0, 384], sizes = [8, 128], strides = [1, 1]} : vector<8x512xf32> to vector<8x128xf32>
    %314 = arith.negf %313 : vector<8x128xf32>
    %315 = math.exp %314 : vector<8x128xf32>
    %cst_158 = arith.constant 1.000000e+00 : f32
    %316 = vector.broadcast %cst_158 : f32 to vector<8x128xf32>
    %317 = arith.addf %316, %315 : vector<8x128xf32>
    %318 = arith.divf %316, %317 : vector<8x128xf32>
    %c0_159 = arith.constant 0 : index
    %c0_160 = arith.constant 0 : index
    %319 = vector.load %arg12[%c0_159, %c0_160] : memref<8x128xf32, #tpu.memory_space<vmem>>, vector<8x128xf32>
    %320 = arith.mulf %310, %319 : vector<8x128xf32>
    %321 = arith.mulf %304, %312 : vector<8x128xf32>
    %322 = arith.addf %320, %321 : vector<8x128xf32>
    %323 = math.tanh %322 : vector<8x128xf32>
    %324 = arith.mulf %318, %323 : vector<8x128xf32>
    %c0_161 = arith.constant 0 : index
    %c0_162 = arith.constant 0 : index
    %325 = vector.load %arg12[%c0_161, %c0_162] : memref<8x128xf32, #tpu.memory_space<vmem>>, vector<8x128xf32>
    tpu.vector_store %arg12[%c0_161, %c0_162], %322 {strides = array<i32>} : memref<8x128xf32, #tpu.memory_space<vmem>>, vector<8x128xf32>,
    %c0_163 = arith.constant 0 : index
    %c0_164 = arith.constant 0 : index
    %326 = vector.load %arg11[%c0_163, %c0_164] : memref<8x128xf32, #tpu.memory_space<vmem>>, vector<8x128xf32>
    tpu.vector_store %arg11[%c0_163, %c0_164], %324 {strides = array<i32>} : memref<8x128xf32, #tpu.memory_space<vmem>>, vector<8x128xf32>,
    %327 = arith.index_cast %291 : i32 to index
    %c0_165 = arith.constant 0 : index
    %328 = vector.load %arg9[%327, %c0_165] : memref<64x128xf32, #tpu.memory_space<vmem>>, vector<8x128xf32>
    tpu.vector_store %arg9[%327, %c0_165], %324 {strides = array<i32>} : memref<64x128xf32, #tpu.memory_space<vmem>>, vector<8x128xf32>,
    %c8_i32_166 = arith.constant 8 : i32
    %c0_167 = arith.constant 0 : index
    %c0_168 = arith.constant 0 : index
    %329 = vector.load %arg9[%c0_167, %c0_168] : memref<64x128xf32, #tpu.memory_space<vmem>>, vector<64x128xf32>
    %c1 = arith.constant 1 : index
    %c0_169 = arith.constant 0 : index
    %c0_170 = arith.constant 0 : index
    %330 = vector.load %arg1[%c1, %c0_169, %c0_170] : memref<2x128x512xf32, #tpu.memory_space<vmem>>, vector<1x128x512xf32>
    %331 = vector.shape_cast %330 : vector<1x128x512xf32> to vector<128x512xf32>
    %cst_171 = arith.constant dense<0.000000e+00> : vector<64x512xf32>
    %332 = tpu.matmul %329, %331, %cst_171 {dimension_numbers = #tpu.dot_dimension_numbers<[1], [0], [0], [1], [0, 0, 1, 1], [], []>} : vector<64x128xf32>, vector<128x512xf32>, vector<64x512xf32> -> vector<64x512xf32>
    %c1_172 = arith.constant 1 : index
    %c0_173 = arith.constant 0 : index
    %c0_174 = arith.constant 0 : index
    %333 = vector.load %arg3[%c1_172, %c0_173, %c0_174] : memref<2x1x512xf32, #tpu.memory_space<vmem>>, vector<1x1x512xf32>
    %334 = vector.shape_cast %333 : vector<1x1x512xf32> to vector<1x512xf32>
    %335 = vector.broadcast %334 : vector<1x512xf32> to vector<64x512xf32>
    %336 = arith.addf %332, %335 : vector<64x512xf32>
    %c0_175 = arith.constant 0 : index
    %c0_176 = arith.constant 0 : index
    %337 = vector.load %arg10[%c0_175, %c0_176] : memref<64x512xf32, #tpu.memory_space<vmem>>, vector<64x512xf32>
    tpu.vector_store %arg10[%c0_175, %c0_176], %336 {strides = array<i32>} : memref<64x512xf32, #tpu.memory_space<vmem>>, vector<64x512xf32>,
    %c1_177 = arith.constant 1 : index
    %c0_178 = arith.constant 0 : index
    %c0_179 = arith.constant 0 : index
    %338 = vector.load %arg4[%c1_177, %c0_178, %c0_179] : memref<2x8x128xf32, #tpu.memory_space<vmem>>, vector<1x8x128xf32>
    %339 = vector.shape_cast %338 : vector<1x8x128xf32> to vector<8x128xf32>
    %c0_180 = arith.constant 0 : index
    %c0_181 = arith.constant 0 : index
    %340 = vector.load %arg11[%c0_180, %c0_181] : memref<8x128xf32, #tpu.memory_space<vmem>>, vector<8x128xf32>
    tpu.vector_store %arg11[%c0_180, %c0_181], %339 {strides = array<i32>} : memref<8x128xf32, #tpu.memory_space<vmem>>, vector<8x128xf32>,
    %c1_182 = arith.constant 1 : index
    %c0_183 = arith.constant 0 : index
    %c0_184 = arith.constant 0 : index
    %341 = vector.load %arg5[%c1_182, %c0_183, %c0_184] : memref<2x8x128xf32, #tpu.memory_space<vmem>>, vector<1x8x128xf32>
    %342 = vector.shape_cast %341 : vector<1x8x128xf32> to vector<8x128xf32>
    %c0_185 = arith.constant 0 : index
    %c0_186 = arith.constant 0 : index
    %343 = vector.load %arg12[%c0_185, %c0_186] : memref<8x128xf32, #tpu.memory_space<vmem>>, vector<8x128xf32>
    tpu.vector_store %arg12[%c0_185, %c0_186], %342 {strides = array<i32>} : memref<8x128xf32, #tpu.memory_space<vmem>>, vector<8x128xf32>,
    %c0_i32_187 = arith.constant 0 : i32
    %c8_i32_188 = arith.constant 8 : i32
    %344 = arith.muli %c0_i32_187, %c8_i32_188 : i32
    %345 = tpu.assume_multiple %344, 8 : i32
    %346 = arith.index_cast %345 : i32 to index
    %c0_189 = arith.constant 0 : index
    %347 = vector.load %arg10[%346, %c0_189] : memref<64x512xf32, #tpu.memory_space<vmem>>, vector<8x512xf32>
    %c0_190 = arith.constant 0 : index
    %c0_191 = arith.constant 0 : index
    %348 = vector.load %arg11[%c0_190, %c0_191] : memref<8x128xf32, #tpu.memory_space<vmem>>, vector<8x128xf32>
    %c1_192 = arith.constant 1 : index
    %c0_193 = arith.constant 0 : index
    %c0_194 = arith.constant 0 : index
    %349 = vector.load %arg2[%c1_192, %c0_193, %c0_194] : memref<2x128x512xf32, #tpu.memory_space<vmem>>, vector<1x128x512xf32>
    %350 = vector.shape_cast %349 : vector<1x128x512xf32> to vector<128x512xf32>
    %cst_195 = arith.constant dense<0.000000e+00> : vector<8x512xf32>
    %351 = tpu.matmul %348, %350, %cst_195 {dimension_numbers = #tpu.dot_dimension_numbers<[1], [0], [0], [1], [0, 0, 1, 1], [], []>} : vector<8x128xf32>, vector<128x512xf32>, vector<8x512xf32> -> vector<8x512xf32>
    %352 = arith.addf %347, %351 : vector<8x512xf32>
    %353 = vector.extract_strided_slice %352 {offsets = [0, 0], sizes = [8, 128], strides = [1, 1]} : vector<8x512xf32> to vector<8x128xf32>
    %354 = arith.negf %353 : vector<8x128xf32>
    %355 = math.exp %354 : vector<8x128xf32>
    %cst_196 = arith.constant 1.000000e+00 : f32
    %356 = vector.broadcast %cst_196 : f32 to vector<8x128xf32>
    %357 = arith.addf %356, %355 : vector<8x128xf32>
    %358 = arith.divf %356, %357 : vector<8x128xf32>
    %359 = vector.extract_strided_slice %352 {offsets = [0, 128], sizes = [8, 128], strides = [1, 1]} : vector<8x512xf32> to vector<8x128xf32>
    %360 = arith.negf %359 : vector<8x128xf32>
    %361 = math.exp %360 : vector<8x128xf32>
    %cst_197 = arith.constant 1.000000e+00 : f32
    %362 = vector.broadcast %cst_197 : f32 to vector<8x128xf32>
    %363 = arith.addf %362, %361 : vector<8x128xf32>
    %364 = arith.divf %362, %363 : vector<8x128xf32>
    %365 = vector.extract_strided_slice %352 {offsets = [0, 256], sizes = [8, 128], strides = [1, 1]} : vector<8x512xf32> to vector<8x128xf32>
    %366 = math.tanh %365 : vector<8x128xf32>
    %367 = vector.extract_strided_slice %352 {offsets = [0, 384], sizes = [8, 128], strides = [1, 1]} : vector<8x512xf32> to vector<8x128xf32>
    %368 = arith.negf %367 : vector<8x128xf32>
    %369 = math.exp %368 : vector<8x128xf32>
    %cst_198 = arith.constant 1.000000e+00 : f32
    %370 = vector.broadcast %cst_198 : f32 to vector<8x128xf32>
    %371 = arith.addf %370, %369 : vector<8x128xf32>
    %372 = arith.divf %370, %371 : vector<8x128xf32>
    %c0_199 = arith.constant 0 : index
    %c0_200 = arith.constant 0 : index
    %373 = vector.load %arg12[%c0_199, %c0_200] : memref<8x128xf32, #tpu.memory_space<vmem>>, vector<8x128xf32>
    %374 = arith.mulf %364, %373 : vector<8x128xf32>
    %375 = arith.mulf %358, %366 : vector<8x128xf32>
    %376 = arith.addf %374, %375 : vector<8x128xf32>
    %377 = math.tanh %376 : vector<8x128xf32>
    %378 = arith.mulf %372, %377 : vector<8x128xf32>
    %c0_201 = arith.constant 0 : index
    %c0_202 = arith.constant 0 : index
    %379 = vector.load %arg12[%c0_201, %c0_202] : memref<8x128xf32, #tpu.memory_space<vmem>>, vector<8x128xf32>
    tpu.vector_store %arg12[%c0_201, %c0_202], %376 {strides = array<i32>} : memref<8x128xf32, #tpu.memory_space<vmem>>, vector<8x128xf32>,
    %c0_203 = arith.constant 0 : index
    %c0_204 = arith.constant 0 : index
    %380 = vector.load %arg11[%c0_203, %c0_204] : memref<8x128xf32, #tpu.memory_space<vmem>>, vector<8x128xf32>
    tpu.vector_store %arg11[%c0_203, %c0_204], %378 {strides = array<i32>} : memref<8x128xf32, #tpu.memory_space<vmem>>, vector<8x128xf32>,
    %c1_i32_205 = arith.constant 1 : i32
    %c8_i32_206 = arith.constant 8 : i32
    %381 = arith.muli %c1_i32_205, %c8_i32_206 : i32
    %382 = tpu.assume_multiple %381, 8 : i32
    %383 = arith.index_cast %382 : i32 to index
    %c0_207 = arith.constant 0 : index
    %384 = vector.load %arg10[%383, %c0_207] : memref<64x512xf32, #tpu.memory_space<vmem>>, vector<8x512xf32>
    %c0_208 = arith.constant 0 : index
    %c0_209 = arith.constant 0 : index
    %385 = vector.load %arg11[%c0_208, %c0_209] : memref<8x128xf32, #tpu.memory_space<vmem>>, vector<8x128xf32>
    %c1_210 = arith.constant 1 : index
    %c0_211 = arith.constant 0 : index
    %c0_212 = arith.constant 0 : index
    %386 = vector.load %arg2[%c1_210, %c0_211, %c0_212] : memref<2x128x512xf32, #tpu.memory_space<vmem>>, vector<1x128x512xf32>
    %387 = vector.shape_cast %386 : vector<1x128x512xf32> to vector<128x512xf32>
    %cst_213 = arith.constant dense<0.000000e+00> : vector<8x512xf32>
    %388 = tpu.matmul %385, %387, %cst_213 {dimension_numbers = #tpu.dot_dimension_numbers<[1], [0], [0], [1], [0, 0, 1, 1], [], []>} : vector<8x128xf32>, vector<128x512xf32>, vector<8x512xf32> -> vector<8x512xf32>
    %389 = arith.addf %384, %388 : vector<8x512xf32>
    %390 = vector.extract_strided_slice %389 {offsets = [0, 0], sizes = [8, 128], strides = [1, 1]} : vector<8x512xf32> to vector<8x128xf32>
    %391 = arith.negf %390 : vector<8x128xf32>
    %392 = math.exp %391 : vector<8x128xf32>
    %cst_214 = arith.constant 1.000000e+00 : f32
    %393 = vector.broadcast %cst_214 : f32 to vector<8x128xf32>
    %394 = arith.addf %393, %392 : vector<8x128xf32>
    %395 = arith.divf %393, %394 : vector<8x128xf32>
    %396 = vector.extract_strided_slice %389 {offsets = [0, 128], sizes = [8, 128], strides = [1, 1]} : vector<8x512xf32> to vector<8x128xf32>
    %397 = arith.negf %396 : vector<8x128xf32>
    %398 = math.exp %397 : vector<8x128xf32>
    %cst_215 = arith.constant 1.000000e+00 : f32
    %399 = vector.broadcast %cst_215 : f32 to vector<8x128xf32>
    %400 = arith.addf %399, %398 : vector<8x128xf32>
    %401 = arith.divf %399, %400 : vector<8x128xf32>
    %402 = vector.extract_strided_slice %389 {offsets = [0, 256], sizes = [8, 128], strides = [1, 1]} : vector<8x512xf32> to vector<8x128xf32>
    %403 = math.tanh %402 : vector<8x128xf32>
    %404 = vector.extract_strided_slice %389 {offsets = [0, 384], sizes = [8, 128], strides = [1, 1]} : vector<8x512xf32> to vector<8x128xf32>
    %405 = arith.negf %404 : vector<8x128xf32>
    %406 = math.exp %405 : vector<8x128xf32>
    %cst_216 = arith.constant 1.000000e+00 : f32
    %407 = vector.broadcast %cst_216 : f32 to vector<8x128xf32>
    %408 = arith.addf %407, %406 : vector<8x128xf32>
    %409 = arith.divf %407, %408 : vector<8x128xf32>
    %c0_217 = arith.constant 0 : index
    %c0_218 = arith.constant 0 : index
    %410 = vector.load %arg12[%c0_217, %c0_218] : memref<8x128xf32, #tpu.memory_space<vmem>>, vector<8x128xf32>
    %411 = arith.mulf %401, %410 : vector<8x128xf32>
    %412 = arith.mulf %395, %403 : vector<8x128xf32>
    %413 = arith.addf %411, %412 : vector<8x128xf32>
    %414 = math.tanh %413 : vector<8x128xf32>
    %415 = arith.mulf %409, %414 : vector<8x128xf32>
    %c0_219 = arith.constant 0 : index
    %c0_220 = arith.constant 0 : index
    %416 = vector.load %arg12[%c0_219, %c0_220] : memref<8x128xf32, #tpu.memory_space<vmem>>, vector<8x128xf32>
    tpu.vector_store %arg12[%c0_219, %c0_220], %413 {strides = array<i32>} : memref<8x128xf32, #tpu.memory_space<vmem>>, vector<8x128xf32>,
    %c0_221 = arith.constant 0 : index
    %c0_222 = arith.constant 0 : index
    %417 = vector.load %arg11[%c0_221, %c0_222] : memref<8x128xf32, #tpu.memory_space<vmem>>, vector<8x128xf32>
    tpu.vector_store %arg11[%c0_221, %c0_222], %415 {strides = array<i32>} : memref<8x128xf32, #tpu.memory_space<vmem>>, vector<8x128xf32>,
    %c2_i32_223 = arith.constant 2 : i32
    %c8_i32_224 = arith.constant 8 : i32
    %418 = arith.muli %c2_i32_223, %c8_i32_224 : i32
    %419 = tpu.assume_multiple %418, 8 : i32
    %420 = arith.index_cast %419 : i32 to index
    %c0_225 = arith.constant 0 : index
    %421 = vector.load %arg10[%420, %c0_225] : memref<64x512xf32, #tpu.memory_space<vmem>>, vector<8x512xf32>
    %c0_226 = arith.constant 0 : index
    %c0_227 = arith.constant 0 : index
    %422 = vector.load %arg11[%c0_226, %c0_227] : memref<8x128xf32, #tpu.memory_space<vmem>>, vector<8x128xf32>
    %c1_228 = arith.constant 1 : index
    %c0_229 = arith.constant 0 : index
    %c0_230 = arith.constant 0 : index
    %423 = vector.load %arg2[%c1_228, %c0_229, %c0_230] : memref<2x128x512xf32, #tpu.memory_space<vmem>>, vector<1x128x512xf32>
    %424 = vector.shape_cast %423 : vector<1x128x512xf32> to vector<128x512xf32>
    %cst_231 = arith.constant dense<0.000000e+00> : vector<8x512xf32>
    %425 = tpu.matmul %422, %424, %cst_231 {dimension_numbers = #tpu.dot_dimension_numbers<[1], [0], [0], [1], [0, 0, 1, 1], [], []>} : vector<8x128xf32>, vector<128x512xf32>, vector<8x512xf32> -> vector<8x512xf32>
    %426 = arith.addf %421, %425 : vector<8x512xf32>
    %427 = vector.extract_strided_slice %426 {offsets = [0, 0], sizes = [8, 128], strides = [1, 1]} : vector<8x512xf32> to vector<8x128xf32>
    %428 = arith.negf %427 : vector<8x128xf32>
    %429 = math.exp %428 : vector<8x128xf32>
    %cst_232 = arith.constant 1.000000e+00 : f32
    %430 = vector.broadcast %cst_232 : f32 to vector<8x128xf32>
    %431 = arith.addf %430, %429 : vector<8x128xf32>
    %432 = arith.divf %430, %431 : vector<8x128xf32>
    %433 = vector.extract_strided_slice %426 {offsets = [0, 128], sizes = [8, 128], strides = [1, 1]} : vector<8x512xf32> to vector<8x128xf32>
    %434 = arith.negf %433 : vector<8x128xf32>
    %435 = math.exp %434 : vector<8x128xf32>
    %cst_233 = arith.constant 1.000000e+00 : f32
    %436 = vector.broadcast %cst_233 : f32 to vector<8x128xf32>
    %437 = arith.addf %436, %435 : vector<8x128xf32>
    %438 = arith.divf %436, %437 : vector<8x128xf32>
    %439 = vector.extract_strided_slice %426 {offsets = [0, 256], sizes = [8, 128], strides = [1, 1]} : vector<8x512xf32> to vector<8x128xf32>
    %440 = math.tanh %439 : vector<8x128xf32>
    %441 = vector.extract_strided_slice %426 {offsets = [0, 384], sizes = [8, 128], strides = [1, 1]} : vector<8x512xf32> to vector<8x128xf32>
    %442 = arith.negf %441 : vector<8x128xf32>
    %443 = math.exp %442 : vector<8x128xf32>
    %cst_234 = arith.constant 1.000000e+00 : f32
    %444 = vector.broadcast %cst_234 : f32 to vector<8x128xf32>
    %445 = arith.addf %444, %443 : vector<8x128xf32>
    %446 = arith.divf %444, %445 : vector<8x128xf32>
    %c0_235 = arith.constant 0 : index
    %c0_236 = arith.constant 0 : index
    %447 = vector.load %arg12[%c0_235, %c0_236] : memref<8x128xf32, #tpu.memory_space<vmem>>, vector<8x128xf32>
    %448 = arith.mulf %438, %447 : vector<8x128xf32>
    %449 = arith.mulf %432, %440 : vector<8x128xf32>
    %450 = arith.addf %448, %449 : vector<8x128xf32>
    %451 = math.tanh %450 : vector<8x128xf32>
    %452 = arith.mulf %446, %451 : vector<8x128xf32>
    %c0_237 = arith.constant 0 : index
    %c0_238 = arith.constant 0 : index
    %453 = vector.load %arg12[%c0_237, %c0_238] : memref<8x128xf32, #tpu.memory_space<vmem>>, vector<8x128xf32>
    tpu.vector_store %arg12[%c0_237, %c0_238], %450 {strides = array<i32>} : memref<8x128xf32, #tpu.memory_space<vmem>>, vector<8x128xf32>,
    %c0_239 = arith.constant 0 : index
    %c0_240 = arith.constant 0 : index
    %454 = vector.load %arg11[%c0_239, %c0_240] : memref<8x128xf32, #tpu.memory_space<vmem>>, vector<8x128xf32>
    tpu.vector_store %arg11[%c0_239, %c0_240], %452 {strides = array<i32>} : memref<8x128xf32, #tpu.memory_space<vmem>>, vector<8x128xf32>,
    %c3_i32_241 = arith.constant 3 : i32
    %c8_i32_242 = arith.constant 8 : i32
    %455 = arith.muli %c3_i32_241, %c8_i32_242 : i32
    %456 = tpu.assume_multiple %455, 8 : i32
    %457 = arith.index_cast %456 : i32 to index
    %c0_243 = arith.constant 0 : index
    %458 = vector.load %arg10[%457, %c0_243] : memref<64x512xf32, #tpu.memory_space<vmem>>, vector<8x512xf32>
    %c0_244 = arith.constant 0 : index
    %c0_245 = arith.constant 0 : index
    %459 = vector.load %arg11[%c0_244, %c0_245] : memref<8x128xf32, #tpu.memory_space<vmem>>, vector<8x128xf32>
    %c1_246 = arith.constant 1 : index
    %c0_247 = arith.constant 0 : index
    %c0_248 = arith.constant 0 : index
    %460 = vector.load %arg2[%c1_246, %c0_247, %c0_248] : memref<2x128x512xf32, #tpu.memory_space<vmem>>, vector<1x128x512xf32>
    %461 = vector.shape_cast %460 : vector<1x128x512xf32> to vector<128x512xf32>
    %cst_249 = arith.constant dense<0.000000e+00> : vector<8x512xf32>
    %462 = tpu.matmul %459, %461, %cst_249 {dimension_numbers = #tpu.dot_dimension_numbers<[1], [0], [0], [1], [0, 0, 1, 1], [], []>} : vector<8x128xf32>, vector<128x512xf32>, vector<8x512xf32> -> vector<8x512xf32>
    %463 = arith.addf %458, %462 : vector<8x512xf32>
    %464 = vector.extract_strided_slice %463 {offsets = [0, 0], sizes = [8, 128], strides = [1, 1]} : vector<8x512xf32> to vector<8x128xf32>
    %465 = arith.negf %464 : vector<8x128xf32>
    %466 = math.exp %465 : vector<8x128xf32>
    %cst_250 = arith.constant 1.000000e+00 : f32
    %467 = vector.broadcast %cst_250 : f32 to vector<8x128xf32>
    %468 = arith.addf %467, %466 : vector<8x128xf32>
    %469 = arith.divf %467, %468 : vector<8x128xf32>
    %470 = vector.extract_strided_slice %463 {offsets = [0, 128], sizes = [8, 128], strides = [1, 1]} : vector<8x512xf32> to vector<8x128xf32>
    %471 = arith.negf %470 : vector<8x128xf32>
    %472 = math.exp %471 : vector<8x128xf32>
    %cst_251 = arith.constant 1.000000e+00 : f32
    %473 = vector.broadcast %cst_251 : f32 to vector<8x128xf32>
    %474 = arith.addf %473, %472 : vector<8x128xf32>
    %475 = arith.divf %473, %474 : vector<8x128xf32>
    %476 = vector.extract_strided_slice %463 {offsets = [0, 256], sizes = [8, 128], strides = [1, 1]} : vector<8x512xf32> to vector<8x128xf32>
    %477 = math.tanh %476 : vector<8x128xf32>
    %478 = vector.extract_strided_slice %463 {offsets = [0, 384], sizes = [8, 128], strides = [1, 1]} : vector<8x512xf32> to vector<8x128xf32>
    %479 = arith.negf %478 : vector<8x128xf32>
    %480 = math.exp %479 : vector<8x128xf32>
    %cst_252 = arith.constant 1.000000e+00 : f32
    %481 = vector.broadcast %cst_252 : f32 to vector<8x128xf32>
    %482 = arith.addf %481, %480 : vector<8x128xf32>
    %483 = arith.divf %481, %482 : vector<8x128xf32>
    %c0_253 = arith.constant 0 : index
    %c0_254 = arith.constant 0 : index
    %484 = vector.load %arg12[%c0_253, %c0_254] : memref<8x128xf32, #tpu.memory_space<vmem>>, vector<8x128xf32>
    %485 = arith.mulf %475, %484 : vector<8x128xf32>
    %486 = arith.mulf %469, %477 : vector<8x128xf32>
    %487 = arith.addf %485, %486 : vector<8x128xf32>
    %488 = math.tanh %487 : vector<8x128xf32>
    %489 = arith.mulf %483, %488 : vector<8x128xf32>
    %c0_255 = arith.constant 0 : index
    %c0_256 = arith.constant 0 : index
    %490 = vector.load %arg12[%c0_255, %c0_256] : memref<8x128xf32, #tpu.memory_space<vmem>>, vector<8x128xf32>
    tpu.vector_store %arg12[%c0_255, %c0_256], %487 {strides = array<i32>} : memref<8x128xf32, #tpu.memory_space<vmem>>, vector<8x128xf32>,
    %c0_257 = arith.constant 0 : index
    %c0_258 = arith.constant 0 : index
    %491 = vector.load %arg11[%c0_257, %c0_258] : memref<8x128xf32, #tpu.memory_space<vmem>>, vector<8x128xf32>
    tpu.vector_store %arg11[%c0_257, %c0_258], %489 {strides = array<i32>} : memref<8x128xf32, #tpu.memory_space<vmem>>, vector<8x128xf32>,
    %c4_i32_259 = arith.constant 4 : i32
    %c8_i32_260 = arith.constant 8 : i32
    %492 = arith.muli %c4_i32_259, %c8_i32_260 : i32
    %493 = tpu.assume_multiple %492, 8 : i32
    %494 = arith.index_cast %493 : i32 to index
    %c0_261 = arith.constant 0 : index
    %495 = vector.load %arg10[%494, %c0_261] : memref<64x512xf32, #tpu.memory_space<vmem>>, vector<8x512xf32>
    %c0_262 = arith.constant 0 : index
    %c0_263 = arith.constant 0 : index
    %496 = vector.load %arg11[%c0_262, %c0_263] : memref<8x128xf32, #tpu.memory_space<vmem>>, vector<8x128xf32>
    %c1_264 = arith.constant 1 : index
    %c0_265 = arith.constant 0 : index
    %c0_266 = arith.constant 0 : index
    %497 = vector.load %arg2[%c1_264, %c0_265, %c0_266] : memref<2x128x512xf32, #tpu.memory_space<vmem>>, vector<1x128x512xf32>
    %498 = vector.shape_cast %497 : vector<1x128x512xf32> to vector<128x512xf32>
    %cst_267 = arith.constant dense<0.000000e+00> : vector<8x512xf32>
    %499 = tpu.matmul %496, %498, %cst_267 {dimension_numbers = #tpu.dot_dimension_numbers<[1], [0], [0], [1], [0, 0, 1, 1], [], []>} : vector<8x128xf32>, vector<128x512xf32>, vector<8x512xf32> -> vector<8x512xf32>
    %500 = arith.addf %495, %499 : vector<8x512xf32>
    %501 = vector.extract_strided_slice %500 {offsets = [0, 0], sizes = [8, 128], strides = [1, 1]} : vector<8x512xf32> to vector<8x128xf32>
    %502 = arith.negf %501 : vector<8x128xf32>
    %503 = math.exp %502 : vector<8x128xf32>
    %cst_268 = arith.constant 1.000000e+00 : f32
    %504 = vector.broadcast %cst_268 : f32 to vector<8x128xf32>
    %505 = arith.addf %504, %503 : vector<8x128xf32>
    %506 = arith.divf %504, %505 : vector<8x128xf32>
    %507 = vector.extract_strided_slice %500 {offsets = [0, 128], sizes = [8, 128], strides = [1, 1]} : vector<8x512xf32> to vector<8x128xf32>
    %508 = arith.negf %507 : vector<8x128xf32>
    %509 = math.exp %508 : vector<8x128xf32>
    %cst_269 = arith.constant 1.000000e+00 : f32
    %510 = vector.broadcast %cst_269 : f32 to vector<8x128xf32>
    %511 = arith.addf %510, %509 : vector<8x128xf32>
    %512 = arith.divf %510, %511 : vector<8x128xf32>
    %513 = vector.extract_strided_slice %500 {offsets = [0, 256], sizes = [8, 128], strides = [1, 1]} : vector<8x512xf32> to vector<8x128xf32>
    %514 = math.tanh %513 : vector<8x128xf32>
    %515 = vector.extract_strided_slice %500 {offsets = [0, 384], sizes = [8, 128], strides = [1, 1]} : vector<8x512xf32> to vector<8x128xf32>
    %516 = arith.negf %515 : vector<8x128xf32>
    %517 = math.exp %516 : vector<8x128xf32>
    %cst_270 = arith.constant 1.000000e+00 : f32
    %518 = vector.broadcast %cst_270 : f32 to vector<8x128xf32>
    %519 = arith.addf %518, %517 : vector<8x128xf32>
    %520 = arith.divf %518, %519 : vector<8x128xf32>
    %c0_271 = arith.constant 0 : index
    %c0_272 = arith.constant 0 : index
    %521 = vector.load %arg12[%c0_271, %c0_272] : memref<8x128xf32, #tpu.memory_space<vmem>>, vector<8x128xf32>
    %522 = arith.mulf %512, %521 : vector<8x128xf32>
    %523 = arith.mulf %506, %514 : vector<8x128xf32>
    %524 = arith.addf %522, %523 : vector<8x128xf32>
    %525 = math.tanh %524 : vector<8x128xf32>
    %526 = arith.mulf %520, %525 : vector<8x128xf32>
    %c0_273 = arith.constant 0 : index
    %c0_274 = arith.constant 0 : index
    %527 = vector.load %arg12[%c0_273, %c0_274] : memref<8x128xf32, #tpu.memory_space<vmem>>, vector<8x128xf32>
    tpu.vector_store %arg12[%c0_273, %c0_274], %524 {strides = array<i32>} : memref<8x128xf32, #tpu.memory_space<vmem>>, vector<8x128xf32>,
    %c0_275 = arith.constant 0 : index
    %c0_276 = arith.constant 0 : index
    %528 = vector.load %arg11[%c0_275, %c0_276] : memref<8x128xf32, #tpu.memory_space<vmem>>, vector<8x128xf32>
    tpu.vector_store %arg11[%c0_275, %c0_276], %526 {strides = array<i32>} : memref<8x128xf32, #tpu.memory_space<vmem>>, vector<8x128xf32>,
    %c5_i32_277 = arith.constant 5 : i32
    %c8_i32_278 = arith.constant 8 : i32
    %529 = arith.muli %c5_i32_277, %c8_i32_278 : i32
    %530 = tpu.assume_multiple %529, 8 : i32
    %531 = arith.index_cast %530 : i32 to index
    %c0_279 = arith.constant 0 : index
    %532 = vector.load %arg10[%531, %c0_279] : memref<64x512xf32, #tpu.memory_space<vmem>>, vector<8x512xf32>
    %c0_280 = arith.constant 0 : index
    %c0_281 = arith.constant 0 : index
    %533 = vector.load %arg11[%c0_280, %c0_281] : memref<8x128xf32, #tpu.memory_space<vmem>>, vector<8x128xf32>
    %c1_282 = arith.constant 1 : index
    %c0_283 = arith.constant 0 : index
    %c0_284 = arith.constant 0 : index
    %534 = vector.load %arg2[%c1_282, %c0_283, %c0_284] : memref<2x128x512xf32, #tpu.memory_space<vmem>>, vector<1x128x512xf32>
    %535 = vector.shape_cast %534 : vector<1x128x512xf32> to vector<128x512xf32>
    %cst_285 = arith.constant dense<0.000000e+00> : vector<8x512xf32>
    %536 = tpu.matmul %533, %535, %cst_285 {dimension_numbers = #tpu.dot_dimension_numbers<[1], [0], [0], [1], [0, 0, 1, 1], [], []>} : vector<8x128xf32>, vector<128x512xf32>, vector<8x512xf32> -> vector<8x512xf32>
    %537 = arith.addf %532, %536 : vector<8x512xf32>
    %538 = vector.extract_strided_slice %537 {offsets = [0, 0], sizes = [8, 128], strides = [1, 1]} : vector<8x512xf32> to vector<8x128xf32>
    %539 = arith.negf %538 : vector<8x128xf32>
    %540 = math.exp %539 : vector<8x128xf32>
    %cst_286 = arith.constant 1.000000e+00 : f32
    %541 = vector.broadcast %cst_286 : f32 to vector<8x128xf32>
    %542 = arith.addf %541, %540 : vector<8x128xf32>
    %543 = arith.divf %541, %542 : vector<8x128xf32>
    %544 = vector.extract_strided_slice %537 {offsets = [0, 128], sizes = [8, 128], strides = [1, 1]} : vector<8x512xf32> to vector<8x128xf32>
    %545 = arith.negf %544 : vector<8x128xf32>
    %546 = math.exp %545 : vector<8x128xf32>
    %cst_287 = arith.constant 1.000000e+00 : f32
    %547 = vector.broadcast %cst_287 : f32 to vector<8x128xf32>
    %548 = arith.addf %547, %546 : vector<8x128xf32>
    %549 = arith.divf %547, %548 : vector<8x128xf32>
    %550 = vector.extract_strided_slice %537 {offsets = [0, 256], sizes = [8, 128], strides = [1, 1]} : vector<8x512xf32> to vector<8x128xf32>
    %551 = math.tanh %550 : vector<8x128xf32>
    %552 = vector.extract_strided_slice %537 {offsets = [0, 384], sizes = [8, 128], strides = [1, 1]} : vector<8x512xf32> to vector<8x128xf32>
    %553 = arith.negf %552 : vector<8x128xf32>
    %554 = math.exp %553 : vector<8x128xf32>
    %cst_288 = arith.constant 1.000000e+00 : f32
    %555 = vector.broadcast %cst_288 : f32 to vector<8x128xf32>
    %556 = arith.addf %555, %554 : vector<8x128xf32>
    %557 = arith.divf %555, %556 : vector<8x128xf32>
    %c0_289 = arith.constant 0 : index
    %c0_290 = arith.constant 0 : index
    %558 = vector.load %arg12[%c0_289, %c0_290] : memref<8x128xf32, #tpu.memory_space<vmem>>, vector<8x128xf32>
    %559 = arith.mulf %549, %558 : vector<8x128xf32>
    %560 = arith.mulf %543, %551 : vector<8x128xf32>
    %561 = arith.addf %559, %560 : vector<8x128xf32>
    %562 = math.tanh %561 : vector<8x128xf32>
    %563 = arith.mulf %557, %562 : vector<8x128xf32>
    %c0_291 = arith.constant 0 : index
    %c0_292 = arith.constant 0 : index
    %564 = vector.load %arg12[%c0_291, %c0_292] : memref<8x128xf32, #tpu.memory_space<vmem>>, vector<8x128xf32>
    tpu.vector_store %arg12[%c0_291, %c0_292], %561 {strides = array<i32>} : memref<8x128xf32, #tpu.memory_space<vmem>>, vector<8x128xf32>,
    %c0_293 = arith.constant 0 : index
    %c0_294 = arith.constant 0 : index
    %565 = vector.load %arg11[%c0_293, %c0_294] : memref<8x128xf32, #tpu.memory_space<vmem>>, vector<8x128xf32>
    tpu.vector_store %arg11[%c0_293, %c0_294], %563 {strides = array<i32>} : memref<8x128xf32, #tpu.memory_space<vmem>>, vector<8x128xf32>,
    %c6_i32_295 = arith.constant 6 : i32
    %c8_i32_296 = arith.constant 8 : i32
    %566 = arith.muli %c6_i32_295, %c8_i32_296 : i32
    %567 = tpu.assume_multiple %566, 8 : i32
    %568 = arith.index_cast %567 : i32 to index
    %c0_297 = arith.constant 0 : index
    %569 = vector.load %arg10[%568, %c0_297] : memref<64x512xf32, #tpu.memory_space<vmem>>, vector<8x512xf32>
    %c0_298 = arith.constant 0 : index
    %c0_299 = arith.constant 0 : index
    %570 = vector.load %arg11[%c0_298, %c0_299] : memref<8x128xf32, #tpu.memory_space<vmem>>, vector<8x128xf32>
    %c1_300 = arith.constant 1 : index
    %c0_301 = arith.constant 0 : index
    %c0_302 = arith.constant 0 : index
    %571 = vector.load %arg2[%c1_300, %c0_301, %c0_302] : memref<2x128x512xf32, #tpu.memory_space<vmem>>, vector<1x128x512xf32>
    %572 = vector.shape_cast %571 : vector<1x128x512xf32> to vector<128x512xf32>
    %cst_303 = arith.constant dense<0.000000e+00> : vector<8x512xf32>
    %573 = tpu.matmul %570, %572, %cst_303 {dimension_numbers = #tpu.dot_dimension_numbers<[1], [0], [0], [1], [0, 0, 1, 1], [], []>} : vector<8x128xf32>, vector<128x512xf32>, vector<8x512xf32> -> vector<8x512xf32>
    %574 = arith.addf %569, %573 : vector<8x512xf32>
    %575 = vector.extract_strided_slice %574 {offsets = [0, 0], sizes = [8, 128], strides = [1, 1]} : vector<8x512xf32> to vector<8x128xf32>
    %576 = arith.negf %575 : vector<8x128xf32>
    %577 = math.exp %576 : vector<8x128xf32>
    %cst_304 = arith.constant 1.000000e+00 : f32
    %578 = vector.broadcast %cst_304 : f32 to vector<8x128xf32>
    %579 = arith.addf %578, %577 : vector<8x128xf32>
    %580 = arith.divf %578, %579 : vector<8x128xf32>
    %581 = vector.extract_strided_slice %574 {offsets = [0, 128], sizes = [8, 128], strides = [1, 1]} : vector<8x512xf32> to vector<8x128xf32>
    %582 = arith.negf %581 : vector<8x128xf32>
    %583 = math.exp %582 : vector<8x128xf32>
    %cst_305 = arith.constant 1.000000e+00 : f32
    %584 = vector.broadcast %cst_305 : f32 to vector<8x128xf32>
    %585 = arith.addf %584, %583 : vector<8x128xf32>
    %586 = arith.divf %584, %585 : vector<8x128xf32>
    %587 = vector.extract_strided_slice %574 {offsets = [0, 256], sizes = [8, 128], strides = [1, 1]} : vector<8x512xf32> to vector<8x128xf32>
    %588 = math.tanh %587 : vector<8x128xf32>
    %589 = vector.extract_strided_slice %574 {offsets = [0, 384], sizes = [8, 128], strides = [1, 1]} : vector<8x512xf32> to vector<8x128xf32>
    %590 = arith.negf %589 : vector<8x128xf32>
    %591 = math.exp %590 : vector<8x128xf32>
    %cst_306 = arith.constant 1.000000e+00 : f32
    %592 = vector.broadcast %cst_306 : f32 to vector<8x128xf32>
    %593 = arith.addf %592, %591 : vector<8x128xf32>
    %594 = arith.divf %592, %593 : vector<8x128xf32>
    %c0_307 = arith.constant 0 : index
    %c0_308 = arith.constant 0 : index
    %595 = vector.load %arg12[%c0_307, %c0_308] : memref<8x128xf32, #tpu.memory_space<vmem>>, vector<8x128xf32>
    %596 = arith.mulf %586, %595 : vector<8x128xf32>
    %597 = arith.mulf %580, %588 : vector<8x128xf32>
    %598 = arith.addf %596, %597 : vector<8x128xf32>
    %599 = math.tanh %598 : vector<8x128xf32>
    %600 = arith.mulf %594, %599 : vector<8x128xf32>
    %c0_309 = arith.constant 0 : index
    %c0_310 = arith.constant 0 : index
    %601 = vector.load %arg12[%c0_309, %c0_310] : memref<8x128xf32, #tpu.memory_space<vmem>>, vector<8x128xf32>
    tpu.vector_store %arg12[%c0_309, %c0_310], %598 {strides = array<i32>} : memref<8x128xf32, #tpu.memory_space<vmem>>, vector<8x128xf32>,
    %c0_311 = arith.constant 0 : index
    %c0_312 = arith.constant 0 : index
    %602 = vector.load %arg11[%c0_311, %c0_312] : memref<8x128xf32, #tpu.memory_space<vmem>>, vector<8x128xf32>
    tpu.vector_store %arg11[%c0_311, %c0_312], %600 {strides = array<i32>} : memref<8x128xf32, #tpu.memory_space<vmem>>, vector<8x128xf32>,
    %c7_i32_313 = arith.constant 7 : i32
    %c8_i32_314 = arith.constant 8 : i32
    %603 = arith.muli %c7_i32_313, %c8_i32_314 : i32
    %604 = tpu.assume_multiple %603, 8 : i32
    %605 = arith.index_cast %604 : i32 to index
    %c0_315 = arith.constant 0 : index
    %606 = vector.load %arg10[%605, %c0_315] : memref<64x512xf32, #tpu.memory_space<vmem>>, vector<8x512xf32>
    %c0_316 = arith.constant 0 : index
    %c0_317 = arith.constant 0 : index
    %607 = vector.load %arg11[%c0_316, %c0_317] : memref<8x128xf32, #tpu.memory_space<vmem>>, vector<8x128xf32>
    %c1_318 = arith.constant 1 : index
    %c0_319 = arith.constant 0 : index
    %c0_320 = arith.constant 0 : index
    %608 = vector.load %arg2[%c1_318, %c0_319, %c0_320] : memref<2x128x512xf32, #tpu.memory_space<vmem>>, vector<1x128x512xf32>
    %609 = vector.shape_cast %608 : vector<1x128x512xf32> to vector<128x512xf32>
    %cst_321 = arith.constant dense<0.000000e+00> : vector<8x512xf32>
    %610 = tpu.matmul %607, %609, %cst_321 {dimension_numbers = #tpu.dot_dimension_numbers<[1], [0], [0], [1], [0, 0, 1, 1], [], []>} : vector<8x128xf32>, vector<128x512xf32>, vector<8x512xf32> -> vector<8x512xf32>
    %611 = arith.addf %606, %610 : vector<8x512xf32>
    %612 = vector.extract_strided_slice %611 {offsets = [0, 0], sizes = [8, 128], strides = [1, 1]} : vector<8x512xf32> to vector<8x128xf32>
    %613 = arith.negf %612 : vector<8x128xf32>
    %614 = math.exp %613 : vector<8x128xf32>
    %cst_322 = arith.constant 1.000000e+00 : f32
    %615 = vector.broadcast %cst_322 : f32 to vector<8x128xf32>
    %616 = arith.addf %615, %614 : vector<8x128xf32>
    %617 = arith.divf %615, %616 : vector<8x128xf32>
    %618 = vector.extract_strided_slice %611 {offsets = [0, 128], sizes = [8, 128], strides = [1, 1]} : vector<8x512xf32> to vector<8x128xf32>
    %619 = arith.negf %618 : vector<8x128xf32>
    %620 = math.exp %619 : vector<8x128xf32>
    %cst_323 = arith.constant 1.000000e+00 : f32
    %621 = vector.broadcast %cst_323 : f32 to vector<8x128xf32>
    %622 = arith.addf %621, %620 : vector<8x128xf32>
    %623 = arith.divf %621, %622 : vector<8x128xf32>
    %624 = vector.extract_strided_slice %611 {offsets = [0, 256], sizes = [8, 128], strides = [1, 1]} : vector<8x512xf32> to vector<8x128xf32>
    %625 = math.tanh %624 : vector<8x128xf32>
    %626 = vector.extract_strided_slice %611 {offsets = [0, 384], sizes = [8, 128], strides = [1, 1]} : vector<8x512xf32> to vector<8x128xf32>
    %627 = arith.negf %626 : vector<8x128xf32>
    %628 = math.exp %627 : vector<8x128xf32>
    %cst_324 = arith.constant 1.000000e+00 : f32
    %629 = vector.broadcast %cst_324 : f32 to vector<8x128xf32>
    %630 = arith.addf %629, %628 : vector<8x128xf32>
    %631 = arith.divf %629, %630 : vector<8x128xf32>
    %c0_325 = arith.constant 0 : index
    %c0_326 = arith.constant 0 : index
    %632 = vector.load %arg12[%c0_325, %c0_326] : memref<8x128xf32, #tpu.memory_space<vmem>>, vector<8x128xf32>
    %633 = arith.mulf %623, %632 : vector<8x128xf32>
    %634 = arith.mulf %617, %625 : vector<8x128xf32>
    %635 = arith.addf %633, %634 : vector<8x128xf32>
    %636 = math.tanh %635 : vector<8x128xf32>
    %637 = arith.mulf %631, %636 : vector<8x128xf32>
    %c0_327 = arith.constant 0 : index
    %c0_328 = arith.constant 0 : index
    %638 = vector.load %arg12[%c0_327, %c0_328] : memref<8x128xf32, #tpu.memory_space<vmem>>, vector<8x128xf32>
    tpu.vector_store %arg12[%c0_327, %c0_328], %635 {strides = array<i32>} : memref<8x128xf32, #tpu.memory_space<vmem>>, vector<8x128xf32>,
    %c0_329 = arith.constant 0 : index
    %c0_330 = arith.constant 0 : index
    %639 = vector.load %arg11[%c0_329, %c0_330] : memref<8x128xf32, #tpu.memory_space<vmem>>, vector<8x128xf32>
    tpu.vector_store %arg11[%c0_329, %c0_330], %637 {strides = array<i32>} : memref<8x128xf32, #tpu.memory_space<vmem>>, vector<8x128xf32>,
    %c8_i32_331 = arith.constant 8 : i32
    %c0_332 = arith.constant 0 : index
    %c0_333 = arith.constant 0 : index
    %640 = vector.load %arg11[%c0_332, %c0_333] : memref<8x128xf32, #tpu.memory_space<vmem>>, vector<8x128xf32>
    %c0_334 = arith.constant 0 : index
    %c0_335 = arith.constant 0 : index
    %641 = vector.load %arg6[%c0_334, %c0_335] : memref<128x128xf32, #tpu.memory_space<vmem>>, vector<128x128xf32>
    %cst_336 = arith.constant dense<0.000000e+00> : vector<8x128xf32>
    %642 = tpu.matmul %640, %641, %cst_336 {dimension_numbers = #tpu.dot_dimension_numbers<[1], [0], [0], [1], [0, 0, 1, 1], [], []>} : vector<8x128xf32>, vector<128x128xf32>, vector<8x128xf32> -> vector<8x128xf32>
    %c0_337 = arith.constant 0 : index
    %c0_338 = arith.constant 0 : index
    %643 = vector.load %arg7[%c0_337, %c0_338] : memref<1x128xf32, #tpu.memory_space<vmem>>, vector<1x128xf32>
    %644 = vector.broadcast %643 : vector<1x128xf32> to vector<8x128xf32>
    %645 = arith.addf %642, %644 : vector<8x128xf32>
    %c0_339 = arith.constant 0 : index
    %c0_340 = arith.constant 0 : index
    %646 = vector.load %arg8[%c0_339, %c0_340] : memref<8x128xf32, #tpu.memory_space<vmem>>, vector<8x128xf32>
    tpu.vector_store %arg8[%c0_339, %c0_340], %645 {strides = array<i32>} : memref<8x128xf32, #tpu.memory_space<vmem>>, vector<8x128xf32>,
    return
  }
}

</mosaic_0001>

<bundles_post_ra>
// kernel: lstm_model_forward.1
= control target key start
LH: loop header
LB: loop body
LE: loop exit
PB: predicated region body
PF: predicated region fallthrough
CT: control target
= control target key end

     0   :  { %v7022_v3 = vmov 0.0   ;;  %vm7024_vm0 = vmmov 0   ;;  %s9411_s1 = inlined_call_operand.vmem [shape: f32[2,128,512], index: 1, kind: input, shape index: {}]   ;;  %s9412_s2 = inlined_call_operand.vmem [shape: f32[2,128,512], index: 2, kind: input, shape index: {}]   ;;  %s9413_s0 = inlined_call_operand.vmem [shape: f32[64,128], index: 0, kind: input, shape index: {}]   ;;  %s9414_s4 = inlined_call_operand.vmem [shape: f32[2,8,128], index: 4, kind: input, shape index: {}]   ;;  %s9415_s3 = inlined_call_operand.vmem [shape: f32[2,1,512], index: 3, kind: input, shape index: {}]   ;;  %s9416_s5 = inlined_call_operand.vmem [shape: f32[2,8,128], index: 5, kind: input, shape index: {}]   ;;  %s9417_s6 = inlined_call_operand.vmem [shape: f32[128,128], index: 6, kind: input, shape index: {}]   ;;  %s9418_s7 = inlined_call_operand.vmem [shape: f32[1,128], index: 7, kind: input, shape index: {}]   ;;  %s9419_s8 = inlined_call_operand.vmem [shape: f32[8,128], index: 8, kind: output, shape index: {}]  }
   0x1   :  { %v54_v0 = vld [vmem:[%s9411_s1 + $0x8] sm:$0xff]  ;;  %v56_v2 = vld [vmem:[%s9411_s1 + $0x18] sm:$0xff]  ;;  %203 = vmatprep.mubr.f32.mxu0 %v7022_v3  ;;  %316 = vmatprep.mubr.f32.mxu1 %v7022_v3  ;;  %v53_v6 = vld [vmem:[%s9411_s1] sm:$0xff] }
   0x2   :  { %v58_v1 = vld [vmem:[%s9411_s1 + $0x28] sm:$0xff]  ;;  %v60_v5 = vld [vmem:[%s9411_s1 + $0x38] sm:$0xff]  ;;  %v57_v7 = vld [vmem:[%s9411_s1 + $0x20] sm:$0xff] }
   0x3   :  { %v5459_v4 = vpack.c.bf16 %v58_v1, %v54_v0  ;;  %v5491_v8 = vpack.c.bf16 %v60_v5, %v56_v2  ;;  %v5461_v9 = vpack.c.bf16 %v57_v7, %v53_v6  ;;  %v55_v10 = vld [vmem:[%s9411_s1 + $0x10] sm:$0xff]  ;;  %v62_v12 = vld [vmem:[%s9411_s1 + $0x48] sm:$0xff]  ;;  %v64_v15 = vld [vmem:[%s9411_s1 + $0x58] sm:$0xff] }
   0x4   :  { %v59_v11 = vld [vmem:[%s9411_s1 + $0x30] sm:$0xff]  ;;  %v66_v14 = vld [vmem:[%s9411_s1 + $0x68] sm:$0xff]  ;;  %v68_v16 = vld [vmem:[%s9411_s1 + $0x78] sm:$0xff] }
   0x5   :  { %5460 = vmatprep.subr.bf16.mxu0 %v5459_v4  ;;  %v5493_v13 = vpack.c.bf16 %v59_v11, %v55_v10  ;;  %5492 = vmatprep.subr.bf16.mxu1 %v5491_v8  ;;  %v5463_v17 = vpack.c.bf16 %v66_v14, %v62_v12  ;;  %v5495_v18 = vpack.c.bf16 %v68_v16, %v64_v15  ;;  %v61_v19 = vld [vmem:[%s9411_s1 + $0x40] sm:$0xff]  ;;  %v63_v21 = vld [vmem:[%s9411_s1 + $0x50] sm:$0xff]  ;;  %v70_v24 = vld [vmem:[%s9411_s1 + $0x88] sm:$0xff] }
   0x6   :  { %5462 = vmatpush1.bf16.msra.mxu0 %v5461_v9  ;;  %v65_v20 = vld [vmem:[%s9411_s1 + $0x60] sm:$0xff]  ;;  %v67_v23 = vld [vmem:[%s9411_s1 + $0x70] sm:$0xff]  ;;  %v74_v25 = vld [vmem:[%s9411_s1 + $0xa8] sm:$0xff] }
   0x7   :  { %5494 = vmatpush1.bf16.msra.mxu1 %v5493_v13  ;;  %v5465_v22 = vpack.c.bf16 %v65_v20, %v61_v19  ;;  %5464 = vmatprep.subr.bf16.mxu0 %v5463_v17  ;;  %v5497_v26 = vpack.c.bf16 %v67_v23, %v63_v21  ;;  %v5467_v27 = vpack.c.bf16 %v74_v25, %v70_v24  ;;  %v72_v28 = vld [vmem:[%s9411_s1 + $0x98] sm:$0xff]  ;;  %v69_v30 = vld [vmem:[%s9411_s1 + $0x80] sm:$0xff]  ;;  %v71_v33 = vld [vmem:[%s9411_s1 + $0x90] sm:$0xff] }
   0x8   :  { %5496 = vmatprep.subr.bf16.mxu1 %v5495_v18  ;;  %v76_v29 = vld [vmem:[%s9411_s1 + $0xb8] sm:$0xff]  ;;  %v73_v32 = vld [vmem:[%s9411_s1 + $0xa0] sm:$0xff]  ;;  %v75_v34 = vld [vmem:[%s9411_s1 + $0xb0] sm:$0xff] }
   0x9   :  { %v5499_v31 = vpack.c.bf16 %v76_v29, %v72_v28  ;;  %v5469_v35 = vpack.c.bf16 %v73_v32, %v69_v30  ;;  %v78_v36 = vld [vmem:[%s9411_s1 + $0xc8] sm:$0xff]  ;;  %v80_v38 = vld [vmem:[%s9411_s1 + $0xd8] sm:$0xff]  ;;  %v5501_v39 = vpack.c.bf16 %v75_v34, %v71_v33  ;;  %v77_v42 = vld [vmem:[%s9411_s1 + $0xc0] sm:$0xff] }
   0xa   :  { %5466 = vmatpush1.bf16.msra.mxu0 %v5465_v22  ;;  %v82_v37 = vld [vmem:[%s9411_s1 + $0xe8] sm:$0xff]  ;;  %v84_v41 = vld [vmem:[%s9411_s1 + $0xf8] sm:$0xff]  ;;  %v81_v43 = vld [vmem:[%s9411_s1 + $0xe0] sm:$0xff] }
   0xb   :  { %5498 = vmatpush1.bf16.msra.mxu1 %v5497_v26  ;;  %5468 = vmatprep.subr.bf16.mxu0 %v5467_v27  ;;  %v5471_v40 = vpack.c.bf16 %v82_v37, %v78_v36  ;;  %v5503_v44 = vpack.c.bf16 %v84_v41, %v80_v38  ;;  %v79_v45 = vld [vmem:[%s9411_s1 + $0xd0] sm:$0xff]  ;;  %v86_v47 = vld [vmem:[%s9411_s1 + $0x108] sm:$0xff]  ;;  %v88_v49 = vld [vmem:[%s9411_s1 + $0x118] sm:$0xff]  ;;  %v5473_v51 = vpack.c.bf16 %v81_v43, %v77_v42 }
   0xc   :  { %5500 = vmatprep.subr.bf16.mxu1 %v5499_v31  ;;  %v83_v46 = vld [vmem:[%s9411_s1 + $0xf0] sm:$0xff]  ;;  %v90_v48 = vld [vmem:[%s9411_s1 + $0x128] sm:$0xff]  ;;  %v92_v50 = vld [vmem:[%s9411_s1 + $0x138] sm:$0xff] }
   0xd   :  { %v5505_v52 = vpack.c.bf16 %v83_v46, %v79_v45  ;;  %v5475_v53 = vpack.c.bf16 %v90_v48, %v86_v47  ;;  %v85_v54 = vld [vmem:[%s9411_s1 + $0x100] sm:$0xff]  ;;  %v87_v56 = vld [vmem:[%s9411_s1 + $0x110] sm:$0xff]  ;;  %v5507_v57 = vpack.c.bf16 %v92_v50, %v88_v49  ;;  %v94_v59 = vld [vmem:[%s9411_s1 + $0x148] sm:$0xff] }
   0xe   :  { %5470 = vmatpush1.bf16.msra.mxu0 %v5469_v35  ;;  %v89_v55 = vld [vmem:[%s9411_s1 + $0x120] sm:$0xff]  ;;  %v91_v58 = vld [vmem:[%s9411_s1 + $0x130] sm:$0xff]  ;;  %v98_v60 = vld [vmem:[%s9411_s1 + $0x168] sm:$0xff] }
   0xf   :  { %5502 = vmatpush1.bf16.msra.mxu1 %v5501_v39  ;;  %5472 = vmatprep.subr.bf16.mxu0 %v5471_v40  ;;  %v96_v61 = vld [vmem:[%s9411_s1 + $0x158] sm:$0xff]  ;;  %v5477_v63 = vpack.c.bf16 %v89_v55, %v85_v54  ;;  %v5509_v0 = vpack.c.bf16 %v91_v58, %v87_v56  ;;  %v5479_v1 = vpack.c.bf16 %v98_v60, %v94_v59  ;;  %v93_v2 = vld [vmem:[%s9411_s1 + $0x140] sm:$0xff]  ;;  %v95_v5 = vld [vmem:[%s9411_s1 + $0x150] sm:$0xff] }
  0x10   :  { %5504 = vmatprep.subr.bf16.mxu1 %v5503_v44  ;;  %v100_v62 = vld [vmem:[%s9411_s1 + $0x178] sm:$0xff]  ;;  %v97_v4 = vld [vmem:[%s9411_s1 + $0x160] sm:$0xff]  ;;  %v99_v7 = vld [vmem:[%s9411_s1 + $0x170] sm:$0xff] }
  0x11   :  { %v5511_v6 = vpack.c.bf16 %v100_v62, %v96_v61  ;;  %v102_v8 = vld [vmem:[%s9411_s1 + $0x188] sm:$0xff]  ;;  %v104_v10 = vld [vmem:[%s9411_s1 + $0x198] sm:$0xff]  ;;  %v5481_v12 = vpack.c.bf16 %v97_v4, %v93_v2  ;;  %v5513_v13 = vpack.c.bf16 %v99_v7, %v95_v5  ;;  %v101_v15 = vld [vmem:[%s9411_s1 + $0x180] sm:$0xff] }
  0x12   :  { %5474 = vmatpush1.bf16.msra.mxu0 %v5473_v51  ;;  %v106_v9 = vld [vmem:[%s9411_s1 + $0x1a8] sm:$0xff]  ;;  %v108_v11 = vld [vmem:[%s9411_s1 + $0x1b8] sm:$0xff]  ;;  %v105_v16 = vld [vmem:[%s9411_s1 + $0x1a0] sm:$0xff] }
  0x13   :  { %5506 = vmatpush1.bf16.msra.mxu1 %v5505_v52  ;;  %5476 = vmatprep.subr.bf16.mxu0 %v5475_v53  ;;  %v5483_v14 = vpack.c.bf16 %v106_v9, %v102_v8  ;;  %v103_v17 = vld [vmem:[%s9411_s1 + $0x190] sm:$0xff]  ;;  %v5515_v18 = vpack.c.bf16 %v108_v11, %v104_v10  ;;  %v110_v20 = vld [vmem:[%s9411_s1 + $0x1c8] sm:$0xff]  ;;  %v112_v22 = vld [vmem:[%s9411_s1 + $0x1d8] sm:$0xff]  ;;  %v5485_v24 = vpack.c.bf16 %v105_v16, %v101_v15 }
  0x14   :  { %5508 = vmatprep.subr.bf16.mxu1 %v5507_v57  ;;  %v107_v19 = vld [vmem:[%s9411_s1 + $0x1b0] sm:$0xff]  ;;  %v114_v21 = vld [vmem:[%s9411_s1 + $0x1e8] sm:$0xff]  ;;  %v116_v23 = vld [vmem:[%s9411_s1 + $0x1f8] sm:$0xff] }
  0x15   :  { %v5517_v25 = vpack.c.bf16 %v107_v19, %v103_v17  ;;  %v5487_v26 = vpack.c.bf16 %v114_v21, %v110_v20  ;;  %v109_v27 = vld [vmem:[%s9411_s1 + $0x1c0] sm:$0xff]  ;;  %v111_v29 = vld [vmem:[%s9411_s1 + $0x1d0] sm:$0xff]  ;;  %v5519_v30 = vpack.c.bf16 %v116_v23, %v112_v22  ;;  %v410_v32 = vld [vmem:[%s9412_s2 + $0x8] sm:$0xff] }
  0x16   :  { %5478 = vmatpush1.bf16.msra.mxu0 %v5477_v63  ;;  %v113_v28 = vld [vmem:[%s9411_s1 + $0x1e0] sm:$0xff]  ;;  %v115_v31 = vld [vmem:[%s9411_s1 + $0x1f0] sm:$0xff]  ;;  %v414_v33 = vld [vmem:[%s9412_s2 + $0x28] sm:$0xff] }
  0x17   :  { %5510 = vmatpush1.bf16.msra.mxu1 %v5509_v0  ;;  %5480 = vmatprep.subr.bf16.mxu0 %v5479_v1  ;;  %v412_v34 = vld [vmem:[%s9412_s2 + $0x18] sm:$0xff]  ;;  %v5489_v36 = vpack.c.bf16 %v113_v28, %v109_v27  ;;  %v5521_v37 = vpack.c.bf16 %v115_v31, %v111_v29  ;;  %v7276_v38 = vpack.c.bf16 %v414_v33, %v410_v32  ;;  %v409_v39 = vld [vmem:[%s9412_s2] sm:$0xff]  ;;  %v411_v42 = vld [vmem:[%s9412_s2 + $0x10] sm:$0xff] }
  0x18   :  { %5512 = vmatprep.subr.bf16.mxu1 %v5511_v6  ;;  %v416_v35 = vld [vmem:[%s9412_s2 + $0x38] sm:$0xff]  ;;  %v413_v40 = vld [vmem:[%s9412_s2 + $0x20] sm:$0xff]  ;;  %v415_v43 = vld [vmem:[%s9412_s2 + $0x30] sm:$0xff] }
  0x19   :  { %v7284_v41 = vpack.c.bf16 %v416_v35, %v412_v34  ;;  %v418_v44 = vld [vmem:[%s9412_s2 + $0x48] sm:$0xff]  ;;  %v29_v46 = vld [vmem:[%s9413_s0] sm:$0xff]  ;;  %v7301_v47 = vpack.c.bf16 %v413_v40, %v409_v39  ;;  %v420_v48 = vld [vmem:[%s9412_s2 + $0x58] sm:$0xff]  ;;  %v7310_v50 = vpack.c.bf16 %v415_v43, %v411_v42 }
  0x1a   :  { %5482 = vmatpush1.bf16.msra.mxu0 %v5481_v12  ;;  %v422_v45 = vld [vmem:[%s9412_s2 + $0x68] sm:$0xff]  ;;  %v424_v49 = vld [vmem:[%s9412_s2 + $0x78] sm:$0xff]  ;;  %v417_v51 = vld [vmem:[%s9412_s2 + $0x40] sm:$0xff] }
  0x1b   :  { %5514 = vmatpush1.bf16.msra.mxu1 %v5513_v13  ;;  %5484 = vmatprep.subr.bf16.mxu0 %v5483_v14  ;;  %v421_v52 = vld [vmem:[%s9412_s2 + $0x60] sm:$0xff]  ;;  %v7319_v53 = vpack.c.bf16 %v422_v45, %v418_v44  ;;  %v419_v54 = vld [vmem:[%s9412_s2 + $0x50] sm:$0xff]  ;;  %v7327_v56 = vpack.c.bf16 %v424_v49, %v420_v48  ;;  %v426_v57 = vld [vmem:[%s9412_s2 + $0x88] sm:$0xff] }
  0x1c   :  { %5516 = vmatprep.subr.bf16.mxu1 %v5515_v18  ;;  %v423_v55 = vld [vmem:[%s9412_s2 + $0x70] sm:$0xff]  ;;  %v430_v58 = vld [vmem:[%s9412_s2 + $0xa8] sm:$0xff]  ;;  %v7339_v60 = vpack.c.bf16 %v421_v52, %v417_v51  ;;  %v428_v61 = vld [vmem:[%s9412_s2 + $0x98] sm:$0xff] }
  0x1d   :  { %v30_v59 = vld [vmem:[%s9413_s0 + $0x8] sm:$0xff]  ;;  %v432_v62 = vld [vmem:[%s9412_s2 + $0xb8] sm:$0xff]  ;;  %v7349_v63 = vpack.c.bf16 %v423_v55, %v419_v54  ;;  %v425_v0 = vld [vmem:[%s9412_s2 + $0x80] sm:$0xff]  ;;  %v7359_v2 = vpack.c.bf16 %v430_v58, %v426_v57 }
  0x1e   :  { %5486 = vmatpush1.bf16.msra.mxu0 %v5485_v24  ;;  %v429_v1 = vld [vmem:[%s9412_s2 + $0xa0] sm:$0xff]  ;;  %v427_v4 = vld [vmem:[%s9412_s2 + $0x90] sm:$0xff]  ;;  %v7368_v6 = vpack.c.bf16 %v432_v62, %v428_v61  ;;  %v434_v7 = vld [vmem:[%s9412_s2 + $0xc8] sm:$0xff] }
  0x1f   :  { %5518 = vmatpush1.bf16.msra.mxu1 %v5517_v25  ;;  %5488 = vmatprep.subr.bf16.mxu0 %v5487_v26  ;;  %v431_v5 = vld [vmem:[%s9412_s2 + $0xb0] sm:$0xff]  ;;  %v438_v8 = vld [vmem:[%s9412_s2 + $0xe8] sm:$0xff]  ;;  %v7380_v10 = vpack.c.bf16 %v429_v1, %v425_v0  ;;  %v436_v11 = vld [vmem:[%s9412_s2 + $0xd8] sm:$0xff] }
  0x20   :  { %5520 = vmatprep.subr.bf16.mxu1 %v5519_v30  ;;  %v31_v9 = vld [vmem:[%s9413_s0 + $0x10] sm:$0xff]  ;;  %v440_v12 = vld [vmem:[%s9412_s2 + $0xf8] sm:$0xff]  ;;  %v7390_v13 = vpack.c.bf16 %v431_v5, %v427_v4  ;;  %v433_v14 = vld [vmem:[%s9412_s2 + $0xc0] sm:$0xff]  ;;  %v7400_v16 = vpack.c.bf16 %v438_v8, %v434_v7 }
  0x21   :  { %v437_v15 = vld [vmem:[%s9412_s2 + $0xe0] sm:$0xff]  ;;  %v435_v17 = vld [vmem:[%s9412_s2 + $0xd0] sm:$0xff]  ;;  %v7409_v19 = vpack.c.bf16 %v440_v12, %v436_v11  ;;  %v442_v20 = vld [vmem:[%s9412_s2 + $0x108] sm:$0xff] }
  0x22   :  { %5490 = vmatpush1.bf16.msra.mxu0 %v5489_v36  ;;  %v439_v18 = vld [vmem:[%s9412_s2 + $0xf0] sm:$0xff]  ;;  %v446_v21 = vld [vmem:[%s9412_s2 + $0x128] sm:$0xff]  ;;  %v32_v22 = vld [vmem:[%s9413_s0 + $0x18] sm:$0xff]  ;;  %v7421_v23 = vpack.c.bf16 %v437_v15, %v433_v14 }
  0x23   :  { %5522 = vmatpush1.bf16.msra.mxu1 %v5521_v37  ;;  %5524 = vmatprep.subr.bf16.mxu0 %v7276_v38  ;;  %v444_v24 = vld [vmem:[%s9412_s2 + $0x118] sm:$0xff]  ;;  %v7431_v26 = vpack.c.bf16 %v439_v18, %v435_v17  ;;  %v441_v27 = vld [vmem:[%s9412_s2 + $0x100] sm:$0xff]  ;;  %v7441_v29 = vpack.c.bf16 %v446_v21, %v442_v20  ;;  %v443_v30 = vld [vmem:[%s9412_s2 + $0x110] sm:$0xff] }
  0x24   :  { %5556 = vmatprep.subr.bf16.mxu1 %v7284_v41  ;;  %v448_v25 = vld [vmem:[%s9412_s2 + $0x138] sm:$0xff]  ;;  %v445_v28 = vld [vmem:[%s9412_s2 + $0x120] sm:$0xff]  ;;  %v447_v31 = vld [vmem:[%s9412_s2 + $0x130] sm:$0xff] }
  0x25   :  { %204 = vmatmul.mubr.f32.vlgmr.msra.gmra.mrb[0].mxu0 %v29_v46  ;;  %v7450_v32 = vpack.c.bf16 %v448_v25, %v444_v24  ;;  %v450_v33 = vld [vmem:[%s9412_s2 + $0x148] sm:$0xff]  ;;  %v33_v35 = vld [vmem:[%s9413_s0 + $0x20] sm:$0xff]  ;;  %v7462_v36 = vpack.c.bf16 %v445_v28, %v441_v27  ;;  %v452_v37 = vld [vmem:[%s9412_s2 + $0x158] sm:$0xff]  ;;  %v7472_v40 = vpack.c.bf16 %v447_v31, %v443_v30  ;;  %v119_v30 = vlaneseq }
  0x26   :  { %317 = vmatmul.mubr.f32.vlgmr.msra.gmra.mrb[0].mxu1 %v29_v46  ;;  %5526 = vmatpush1.bf16.msra.mxu0 %v7301_v47  ;;  %v454_v34 = vld [vmem:[%s9412_s2 + $0x168] sm:$0xff]  ;;  %v456_v39 = vld [vmem:[%s9412_s2 + $0x178] sm:$0xff]  ;;  %v449_v42 = vld [vmem:[%s9412_s2 + $0x140] sm:$0xff] }
  0x27   :  { %5558 = vmatpush1.bf16.msra.mxu1 %v7310_v50  ;;  %209 = vmatprep.mubr.f32.mxu0 %v7022_v3  ;;  %v453_v43 = vld [vmem:[%s9412_s2 + $0x160] sm:$0xff]  ;;  %v7482_v44 = vpack.c.bf16 %v454_v34, %v450_v33  ;;  %v451_v45 = vld [vmem:[%s9412_s2 + $0x150] sm:$0xff]  ;;  %v7491_v48 = vpack.c.bf16 %v456_v39, %v452_v37  ;;  %v458_v49 = vld [vmem:[%s9412_s2 + $0x188] sm:$0xff]  ;;  %v7631_v31 = vshrl.u32 %v119_v30, 7 }
  0x28   :  { %322 = vmatprep.mubr.f32.mxu1 %v7022_v3  ;;  %5528 = vmatprep.subr.bf16.mxu0 %v7319_v53  ;;  %v455_v46 = vld [vmem:[%s9412_s2 + $0x170] sm:$0xff]  ;;  %v462_v51 = vld [vmem:[%s9412_s2 + $0x1a8] sm:$0xff]  ;;  %v7503_v54 = vpack.c.bf16 %v453_v43, %v449_v42  ;;  %v460_v55 = vld [vmem:[%s9412_s2 + $0x198] sm:$0xff] }
  0x29   :  { %210 = vmatmul.mubr.f32.gmra.mrb[2].mxu0 %v30_v59  ;;  %5560 = vmatprep.subr.bf16.mxu1 %v7327_v56  ;;  %v34_v52 = vld [vmem:[%s9413_s0 + $0x28] sm:$0xff]  ;;  %v464_v57 = vld [vmem:[%s9412_s2 + $0x1b8] sm:$0xff]  ;;  %v7513_v58 = vpack.c.bf16 %v455_v46, %v451_v45  ;;  %v461_v61 = vld [vmem:[%s9412_s2 + $0x1a0] sm:$0xff]  ;;  %v7523_v62 = vpack.c.bf16 %v462_v51, %v458_v49  ;;  %v121_v33 = vsub.s32 0, %v7631_v31  ;;  %v133_v39 = vsub.s32 3, %v7631_v31 }
  0x2a   :  { %323 = vmatmul.mubr.f32.gmra.mrb[2].mxu1 %v30_v59  ;;  %5530 = vmatpush1.bf16.msra.mxu0 %v7339_v60  ;;  %v457_v59 = vld [vmem:[%s9412_s2 + $0x180] sm:$0xff]  ;;  %v459_v0 = vld [vmem:[%s9412_s2 + $0x190] sm:$0xff]  ;;  %v7532_v4 = vpack.c.bf16 %v464_v57, %v460_v55  ;;  %v466_v5 = vld [vmem:[%s9412_s2 + $0x1c8] sm:$0xff]  ;;  %v129_v57 = vsub.s32 2, %v7631_v31 }
  0x2b   :  { %5562 = vmatpush1.bf16.msra.mxu1 %v7349_v63  ;;  %215 = vmatprep.mubr.f32.mxu0 %v7022_v3  ;;  %v463_v1 = vld [vmem:[%s9412_s2 + $0x1b0] sm:$0xff]  ;;  %v470_v7 = vld [vmem:[%s9412_s2 + $0x1e8] sm:$0xff]  ;;  %v468_v11 = vld [vmem:[%s9412_s2 + $0x1d8] sm:$0xff] }
  0x2c   :  { %328 = vmatprep.mubr.f32.mxu1 %v7022_v3  ;;  %5532 = vmatprep.subr.bf16.mxu0 %v7359_v2  ;;  %v35_v8 = vld [vmem:[%s9413_s0 + $0x30] sm:$0xff]  ;;  %v472_v12 = vld [vmem:[%s9412_s2 + $0x1f8] sm:$0xff]  ;;  %v7554_v14 = vpack.c.bf16 %v463_v1, %v459_v0  ;;  %v465_v15 = vld [vmem:[%s9412_s2 + $0x1c0] sm:$0xff]  ;;  %v7564_v18 = vpack.c.bf16 %v470_v7, %v466_v5 }
  0x2d   :  { %216 = vmatmul.mubr.f32.gmra.mrb[4].mxu0 %v31_v9  ;;  %5564 = vmatprep.subr.bf16.mxu1 %v7368_v6  ;;  %v469_v17 = vld [vmem:[%s9412_s2 + $0x1e0] sm:$0xff]  ;;  %v467_v20 = vld [vmem:[%s9412_s2 + $0x1d0] sm:$0xff]  ;;  %v36_v24 = vld [vmem:[%s9413_s0 + $0x38] sm:$0xff] }
  0x2e   :  { %329 = vmatmul.mubr.f32.gmra.mrb[4].mxu1 %v31_v9  ;;  %5534 = vmatpush1.bf16.msra.mxu0 %v7380_v10  ;;  %v7544_v9 = vpack.c.bf16 %v461_v61, %v457_v59  ;;  %v471_v21 = vld [vmem:[%s9412_s2 + $0x1f0] sm:$0xff]  ;;  %v7579_v25 = vpack.c.bf16 %v469_v17, %v465_v15  ;;  %v397_v28 = vld [vmem:[%s9414_s4] sm:$0xff] }
  0x2f   :  { %5566 = vmatpush1.bf16.msra.mxu1 %v7390_v13  ;;  %221 = vmatprep.mubr.f32.mxu0 %v7022_v3  ;;  %v7583_v27 = vpack.c.bf16 %v471_v21, %v467_v20  ;;  %v117_v34 = vld [vmem:[%s9415_s3] sm:$0xf] }
  0x30   :  { %334 = vmatprep.mubr.f32.mxu1 %v7022_v3  ;;  %5536 = vmatprep.subr.bf16.mxu0 %v7400_v16  ;;  %v7640_v37 = vrot.slane %v117_v34, %v121_v33  ;;  %v7651_v55 = vrot.slane %v117_v34, %v133_v39  ;;  %v7657_v61 = vrot.slane %v117_v34, %v129_v57  ;;  %v399_v17 = vld [vmem:[%s9416_s5] sm:$0xff] }
  0x31   :  { %222 = vmatmul.mubr.f32.gmra.mrb[6].mxu0 %v32_v22  ;;  %5568 = vmatprep.subr.bf16.mxu1 %v7409_v19 }
  0x32   :  { %335 = vmatmul.mubr.f32.gmra.mrb[6].mxu1 %v32_v22  ;;  %5538 = vmatpush1.bf16.msra.mxu0 %v7421_v23  ;;  %v7573_v22 = vpack.c.bf16 %v472_v12, %v468_v11 }
  0x33   :  { %5570 = vmatpush1.bf16.msra.mxu1 %v7431_v26  ;;  %227 = vmatprep.mubr.f32.mxu0 %v7022_v3 }
  0x34   :  { %340 = vmatprep.mubr.f32.mxu1 %v7022_v3  ;;  %5540 = vmatprep.subr.bf16.mxu0 %v7441_v29 }
  0x35   :  { %228 = vmatmul.mubr.f32.gmra.mrb[8].mxu0 %v33_v35  ;;  %5572 = vmatprep.subr.bf16.mxu1 %v7450_v32 }
  0x36   :  { %341 = vmatmul.mubr.f32.gmra.mrb[8].mxu1 %v33_v35  ;;  %5542 = vmatpush1.bf16.msra.mxu0 %v7462_v36  ;;  %v125_v35 = vsub.s32 1, %v7631_v31 }
  0x37   :  { %5574 = vmatpush1.bf16.msra.mxu1 %v7472_v40  ;;  %233 = vmatprep.mubr.f32.mxu0 %v7022_v3 }
  0x38   :  { %346 = vmatprep.mubr.f32.mxu1 %v7022_v3  ;;  %5544 = vmatprep.subr.bf16.mxu0 %v7482_v44 }
  0x39   :  { %234 = vmatmul.mubr.f32.gmra.mrb[10].mxu0 %v34_v52  ;;  %5576 = vmatprep.subr.bf16.mxu1 %v7491_v48 }
  0x3a   :  { %347 = vmatmul.mubr.f32.gmra.mrb[10].mxu1 %v34_v52  ;;  %5546 = vmatpush1.bf16.msra.mxu0 %v7503_v54 }
  0x3b   :  { %5578 = vmatpush1.bf16.msra.mxu1 %v7513_v58  ;;  %239 = vmatprep.mubr.f32.mxu0 %v7022_v3 }
  0x3c   :  { %352 = vmatprep.mubr.f32.mxu1 %v7022_v3  ;;  %5548 = vmatprep.subr.bf16.mxu0 %v7523_v62 }
  0x3d   :  { %240 = vmatmul.mubr.f32.gmra.mrb[12].mxu0 %v35_v8  ;;  %5580 = vmatprep.subr.bf16.mxu1 %v7532_v4 }
  0x3e   :  { %353 = vmatmul.mubr.f32.gmra.mrb[12].mxu1 %v35_v8  ;;  %5550 = vmatpush1.bf16.msra.mxu0 %v7544_v9 }
  0x3f   :  { %5582 = vmatpush1.bf16.msra.mxu1 %v7554_v14  ;;  %245 = vmatprep.mubr.f32.mxu0 %v7022_v3 }
  0x40   :  { %358 = vmatprep.mubr.f32.mxu1 %v7022_v3  ;;  %5552 = vmatprep.subr.bf16.mxu0 %v7564_v18 }
  0x41   :  { %246 = vmatmul.mubr.f32.gmra.mrb[14].mxu0 %v36_v24  ;;  %5584 = vmatprep.subr.bf16.mxu1 %v7573_v22 }
  0x42   :  { %359 = vmatmul.mubr.f32.gmra.mrb[14].mxu1 %v36_v24  ;;  %5554 = vmatpush1.bf16.msra.mxu0 %v7579_v25 }
  0x43   :  { %5586 = vmatpush1.bf16.msra.mxu1 %v7583_v27  ;;  %537 = vmatprep.mubr.f32.mxu0 %v7022_v3 }
  0x44   :  { %608 = vmatprep.mubr.f32.mxu1 %v7022_v3  ;;  %5588 = vmatprep.subr.bf16.mxu0 %v7276_v38 }
  0x45   :  { %538 = vmatmul.mubr.f32.vlgmr.msra.gmra.mrb[0].mxu0 %v397_v28  ;;  %5620 = vmatprep.subr.bf16.mxu1 %v7284_v41 }
  0x46   :  { %609 = vmatmul.mubr.f32.vlgmr.msra.gmra.mrb[0].mxu1 %v397_v28  ;;  %5590 = vmatpush1.bf16.msra.mxu0 %v7301_v47 }
  0x47   :  { %5622 = vmatpush1.bf16.msra.mxu1 %v7310_v50  ;;  %5592 = vmatprep.subr.bf16.mxu0 %v7319_v53 }
  0x48   :  { %5624 = vmatprep.subr.bf16.mxu1 %v7327_v56  ;;  %783 = vmatprep.mubr.f32.mxu0 %v7022_v3 }
  0x49   :  { %854 = vmatprep.mubr.f32.mxu1 %v7022_v3 }
  0x4a   :  { %5594 = vmatpush1.bf16.msra.mxu0 %v7339_v60 }
  0x4b   :  { %5626 = vmatpush1.bf16.msra.mxu1 %v7349_v63  ;;  %5596 = vmatprep.subr.bf16.mxu0 %v7359_v2 }
  0x4c   :  { %5628 = vmatprep.subr.bf16.mxu1 %v7368_v6 }
  0x4e   :  { %5598 = vmatpush1.bf16.msra.mxu0 %v7380_v10 }
  0x4f   :  { %5630 = vmatpush1.bf16.msra.mxu1 %v7390_v13  ;;  %5600 = vmatprep.subr.bf16.mxu0 %v7400_v16 }
  0x50   :  { %5632 = vmatprep.subr.bf16.mxu1 %v7409_v19 }
  0x52   :  { %5602 = vmatpush1.bf16.msra.mxu0 %v7421_v23 }
  0x53   :  { %5634 = vmatpush1.bf16.msra.mxu1 %v7431_v26  ;;  %5604 = vmatprep.subr.bf16.mxu0 %v7441_v29 }
  0x54   :  { %5636 = vmatprep.subr.bf16.mxu1 %v7450_v32 }
  0x56   :  { %5606 = vmatpush1.bf16.msra.mxu0 %v7462_v36 }
  0x57   :  { %5638 = vmatpush1.bf16.msra.mxu1 %v7472_v40  ;;  %5608 = vmatprep.subr.bf16.mxu0 %v7482_v44 }
  0x58   :  { %5640 = vmatprep.subr.bf16.mxu1 %v7491_v48 }
  0x5a   :  { %5610 = vmatpush1.bf16.msra.mxu0 %v7503_v54 }
  0x5b   :  { %5642 = vmatpush1.bf16.msra.mxu1 %v7513_v58  ;;  %5612 = vmatprep.subr.bf16.mxu0 %v7523_v62 }
  0x5c   :  { %5644 = vmatprep.subr.bf16.mxu1 %v7532_v4 }
  0x5e   :  { %5614 = vmatpush1.bf16.msra.mxu0 %v7544_v9 }
  0x5f   :  { %5646 = vmatpush1.bf16.msra.mxu1 %v7554_v14  ;;  %5616 = vmatprep.subr.bf16.mxu0 %v7564_v18 }
  0x60   :  { %5648 = vmatprep.subr.bf16.mxu1 %v7573_v22 }
  0x62   :  { %5618 = vmatpush1.bf16.msra.mxu0 %v7579_v25 }
  0x63   :  { %5650 = vmatpush1.bf16.msra.mxu1 %v7583_v27  ;;  %5652 = vmatprep.subr.bf16.mxu0 %v7276_v38  ;;  %v7644_v38 = vrot.slane %v117_v34, %v125_v35 }
  0x64   :  { %5684 = vmatprep.subr.bf16.mxu1 %v7284_v41 }
 0x118   :  { %v539_v41 = vpop.f32.mrb[0].mxu0 }
 0x119   :  { %v6635_v42 = vadd.f32 %v539_v41, %v7640_v37  ;;  %v610_v43 = vpop.f32.mrb[0].mxu1  ;;  %v541_v45 = vpop.f32.mrb[1].mxu0 }
 0x11a   :  { %v6636_v46 = vadd.f32 %v541_v45, %v7644_v38  ;;  %v612_v49 = vpop.f32.mrb[1].mxu1  ;;  %v6651_v1 = vadd.f32 %v610_v43, %v7657_v61 }
 0x11b   :  { %v4779_v51 = vmul.f32 -1.442695, %v6635_v42  ;;  %v6652_v59 = vadd.f32 %v612_v49, %v7651_v55 }
 0x11c   :  { %v4780_v52 = vmul.f32 -1.442695, %v6636_v46 }
 0x11d   :  { %6766 = vpow2.f32 %v4779_v51  ;;  %v4781_v0 = vmul.f32 -1.442695, %v6652_v59 }
 0x11e   :  { %6768 = vpow2.f32 %v4780_v52 }
 0x11f   :  { %6770 = vpow2.f32 %v4781_v0 }
 0x120   :  { %6772 = vtanh.f32 %v6651_v1 }
 0x127   :  { %v6767_v5 = vpop.eup %6766 }
 0x128   :  { %v6769_v7 = vpop.eup %6768  ;;  %v622_v8 = vadd.f32 1.0, %v6767_v5 }
 0x129   :  { %v628_v11 = vadd.f32 1.0, %v6769_v7  ;;  %v6771_v12 = vpop.eup %6770 }
 0x12a   :  { %6774 = vrcp.f32 %v622_v8  ;;  %v6773_v15 = vpop.eup %6772  ;;  %v635_v28 = vadd.f32 1.0, %v6771_v12 }
 0x12b   :  { %6776 = vrcp.f32 %v628_v11 }
 0x12c   :  { %6778 = vrcp.f32 %v635_v28  ;;  %v1152_v28 = vld [vmem:[%s9412_s2 + $0x18] sm:$0xff] }
 0x134   :  { %v6775_v20 = vpop.eup %6774 }
 0x135   :  { %v6777_v21 = vpop.eup %6776  ;;  %v640_v24 = vmul.f32 %v6775_v20, %v6773_v15 }
 0x136   :  { %v639_v30 = vmul.f32 %v6777_v21, %v399_v17  ;;  %v6779_v41 = vpop.eup %6778  ;;  %v1150_v21 = vld [vmem:[%s9412_s2 + $0x8] sm:$0xff] }
 0x138   :  { %v7663_v34 = vadd.f32 %v640_v24, %v639_v30  ;;  %v1154_v24 = vld [vmem:[%s9412_s2 + $0x28] sm:$0xff] }
 0x139   :  { %v7725_v30 = vpack.c.bf16 %v1154_v24, %v1150_v21 }
 0x13a   :  { %6780 = vtanh.f32 %v7663_v34 }
 0x144   :  { %v6781_v42 = vpop.eup %6780 }
 0x145   :  { %v7666_v43 = vmul.f32 %v6781_v42, %v6779_v41  ;;  %v1149_v41 = vld [vmem:[%s9412_s2] sm:$0xff] }
 0x146   :  { %v1153_v42 = vld [vmem:[%s9412_s2 + $0x20] sm:$0xff] }
 0x147   :  { %784 = vmatmul.mubr.f32.vlgmr.msra.gmra.mrb[2].mxu0 %v7666_v43  ;;  %855 = vmatmul.mubr.f32.vlgmr.msra.gmra.mrb[2].mxu1 %v7666_v43 }
 0x148   :  { %5654 = vmatpush1.bf16.msra.mxu0 %v7301_v47  ;;  %5686 = vmatpush1.bf16.msra.mxu1 %v7310_v50 }
 0x149   :  { %5656 = vmatprep.subr.bf16.mxu0 %v7319_v53  ;;  %5688 = vmatprep.subr.bf16.mxu1 %v7327_v56 }
 0x14a   :  { %1030 = vmatprep.mubr.f32.mxu0 %v7022_v3  ;;  %1101 = vmatprep.mubr.f32.mxu1 %v7022_v3 }
 0x14c   :  { %5658 = vmatpush1.bf16.msra.mxu0 %v7339_v60  ;;  %5690 = vmatpush1.bf16.msra.mxu1 %v7349_v63 }
 0x14d   :  { %5660 = vmatprep.subr.bf16.mxu0 %v7359_v2  ;;  %5692 = vmatprep.subr.bf16.mxu1 %v7368_v6 }
 0x150   :  { %5662 = vmatpush1.bf16.msra.mxu0 %v7380_v10  ;;  %5694 = vmatpush1.bf16.msra.mxu1 %v7390_v13 }
 0x151   :  { %5664 = vmatprep.subr.bf16.mxu0 %v7400_v16  ;;  %5696 = vmatprep.subr.bf16.mxu1 %v7409_v19 }
 0x154   :  { %5666 = vmatpush1.bf16.msra.mxu0 %v7421_v23  ;;  %5698 = vmatpush1.bf16.msra.mxu1 %v7431_v26 }
 0x155   :  { %5668 = vmatprep.subr.bf16.mxu0 %v7441_v29  ;;  %5700 = vmatprep.subr.bf16.mxu1 %v7450_v32 }
 0x158   :  { %5670 = vmatpush1.bf16.msra.mxu0 %v7462_v36  ;;  %5702 = vmatpush1.bf16.msra.mxu1 %v7472_v40 }
 0x159   :  { %5672 = vmatprep.subr.bf16.mxu0 %v7482_v44  ;;  %5704 = vmatprep.subr.bf16.mxu1 %v7491_v48 }
 0x15c   :  { %5674 = vmatpush1.bf16.msra.mxu0 %v7503_v54  ;;  %5706 = vmatpush1.bf16.msra.mxu1 %v7513_v58 }
 0x15d   :  { %5676 = vmatprep.subr.bf16.mxu0 %v7523_v62  ;;  %5708 = vmatprep.subr.bf16.mxu1 %v7532_v4 }
 0x160   :  { %5678 = vmatpush1.bf16.msra.mxu0 %v7544_v9  ;;  %5710 = vmatpush1.bf16.msra.mxu1 %v7554_v14 }
 0x161   :  { %5680 = vmatprep.subr.bf16.mxu0 %v7564_v18  ;;  %5712 = vmatprep.subr.bf16.mxu1 %v7573_v22 }
 0x164   :  { %5682 = vmatpush1.bf16.msra.mxu0 %v7579_v25  ;;  %5714 = vmatpush1.bf16.msra.mxu1 %v7583_v27 }
 0x165   :  { %5716 = vmatprep.subr.bf16.mxu0 %v7725_v30 }
 0x21a   :  { %v785_v47 = vpop.f32.mrb[2].mxu0  ;;  %v856_v50 = vpop.f32.mrb[2].mxu1 }
 0x21b   :  { %v6637_v53 = vadd.f32 %v785_v47, %v7640_v37  ;;  %v787_v56 = vpop.f32.mrb[3].mxu0  ;;  %v858_v60 = vpop.f32.mrb[3].mxu1  ;;  %v6653_v45 = vadd.f32 %v856_v50, %v7657_v61  ;;  %v7738_v50 = vpack.c.bf16 %v1153_v42, %v1149_v41 }
 0x21c   :  { %v6638_v63 = vadd.f32 %v787_v56, %v7644_v38  ;;  %v6654_v10 = vadd.f32 %v858_v60, %v7651_v55  ;;  %v1155_v56 = vld [vmem:[%s9412_s2 + $0x30] sm:$0xff] }
 0x21d   :  { %v4782_v2 = vmul.f32 -1.442695, %v6637_v53  ;;  %v1151_v53 = vld [vmem:[%s9412_s2 + $0x10] sm:$0xff] }
 0x21e   :  { %v4783_v6 = vmul.f32 -1.442695, %v6638_v63  ;;  %v4784_v13 = vmul.f32 -1.442695, %v6654_v10  ;;  %v7747_v60 = vpack.c.bf16 %v1155_v56, %v1151_v53  ;;  %v1158_v63 = vld [vmem:[%s9412_s2 + $0x48] sm:$0xff] }
 0x21f   :  { %6782 = vpow2.f32 %v4782_v2  ;;  %v1162_v2 = vld [vmem:[%s9412_s2 + $0x68] sm:$0xff] }
 0x220   :  { %6784 = vpow2.f32 %v4783_v6  ;;  %v1160_v6 = vld [vmem:[%s9412_s2 + $0x58] sm:$0xff]  ;;  %v7761_v10 = vpack.c.bf16 %v1162_v2, %v1158_v63 }
 0x221   :  { %6786 = vpow2.f32 %v4784_v13  ;;  %v1164_v13 = vld [vmem:[%s9412_s2 + $0x78] sm:$0xff] }
 0x222   :  { %6788 = vtanh.f32 %v6653_v45  ;;  %v1157_v45 = vld [vmem:[%s9412_s2 + $0x40] sm:$0xff] }
 0x229   :  { %v6783_v46 = vpop.eup %6782 }
 0x22a   :  { %v6785_v49 = vpop.eup %6784  ;;  %v868_v51 = vadd.f32 1.0, %v6783_v46  ;;  %v1161_v46 = vld [vmem:[%s9412_s2 + $0x60] sm:$0xff] }
 0x22b   :  { %v874_v52 = vadd.f32 1.0, %v6785_v49  ;;  %v6787_v59 = vpop.eup %6786  ;;  %v7772_v49 = vpack.c.bf16 %v1164_v13, %v1160_v6  ;;  %v1425_v13 = vld [vmem:[%s9412_s2 + $0xe8] sm:$0xff] }
 0x22c   :  { %6790 = vrcp.f32 %v868_v51  ;;  %v6789_v0 = vpop.eup %6788  ;;  %v881_v8 = vadd.f32 1.0, %v6787_v59  ;;  %v7774_v51 = vpack.c.bf16 %v1161_v46, %v1157_v45  ;;  %v1163_v59 = vld [vmem:[%s9412_s2 + $0x70] sm:$0xff]  ;;  %v1423_v45 = vld [vmem:[%s9412_s2 + $0xd8] sm:$0xff] }
 0x22d   :  { %6792 = vrcp.f32 %v874_v52  ;;  %v1159_v52 = vld [vmem:[%s9412_s2 + $0x50] sm:$0xff] }
 0x22e   :  { %6794 = vrcp.f32 %v881_v8 }
 0x236   :  { %v6791_v1 = vpop.eup %6790 }
 0x237   :  { %v6793_v5 = vpop.eup %6792  ;;  %v886_v7 = vmul.f32 %v6791_v1, %v6789_v0  ;;  %v7783_v0 = vpack.c.bf16 %v1163_v59, %v1159_v52  ;;  %v1166_v1 = vld [vmem:[%s9412_s2 + $0x88] sm:$0xff]  ;;  %v1427_v52 = vld [vmem:[%s9412_s2 + $0xf8] sm:$0xff]  ;;  %v1420_v59 = vld [vmem:[%s9412_s2 + $0xc0] sm:$0xff] }
 0x238   :  { %v885_v11 = vmul.f32 %v6793_v5, %v7663_v34  ;;  %v6795_v15 = vpop.eup %6794  ;;  %v1156_v34 = vld [vmem:[%s9412_s2 + $0x38] sm:$0xff]  ;;  %v1170_v5 = vld [vmem:[%s9412_s2 + $0xa8] sm:$0xff] }
 0x239   :  { %v7736_v47 = vpack.c.bf16 %v1156_v34, %v1152_v28  ;;  %v7797_v8 = vpack.c.bf16 %v1170_v5, %v1166_v1  ;;  %v1167_v28 = vld [vmem:[%s9412_s2 + $0x90] sm:$0xff]  ;;  %v1424_v1 = vld [vmem:[%s9412_s2 + $0xe0] sm:$0xff]  ;;  %v7890_v5 = vpack.c.bf16 %v1427_v52, %v1423_v45 }
 0x23a   :  { %v7707_v12 = vadd.f32 %v886_v7, %v885_v11  ;;  %v1168_v7 = vld [vmem:[%s9412_s2 + $0x98] sm:$0xff]  ;;  %v1171_v34 = vld [vmem:[%s9412_s2 + $0xb0] sm:$0xff] }
 0x23b   :  { %5748 = vmatprep.subr.bf16.mxu1 %v7736_v47  ;;  %v1172_v11 = vld [vmem:[%s9412_s2 + $0xb8] sm:$0xff]  ;;  %v7819_v41 = vpack.c.bf16 %v1171_v34, %v1167_v28  ;;  %v1429_v28 = vld [vmem:[%s9412_s2 + $0x108] sm:$0xff] }
 0x23c   :  { %6796 = vtanh.f32 %v7707_v12  ;;  %v7808_v21 = vpack.c.bf16 %v1172_v11, %v1168_v7  ;;  %v7892_v7 = vpack.c.bf16 %v1424_v1, %v1420_v59  ;;  %v1422_v11 = vld [vmem:[%s9412_s2 + $0xd0] sm:$0xff]  ;;  %v1433_v34 = vld [vmem:[%s9412_s2 + $0x128] sm:$0xff]  ;;  %v1444_v59 = vld [vmem:[%s9412_s2 + $0x180] sm:$0xff] }
 0x23d   :  { %v1448_v1 = vld [vmem:[%s9412_s2 + $0x1a0] sm:$0xff] }
 0x246   :  { %v6797_v17 = vpop.eup %6796 }
 0x247   :  { %v7710_v20 = vmul.f32 %v6797_v17, %v6795_v15  ;;  %v1165_v15 = vld [vmem:[%s9412_s2 + $0x80] sm:$0xff] }
 0x248   :  { %v1169_v17 = vld [vmem:[%s9412_s2 + $0xa0] sm:$0xff] }
 0x249   :  { %1031 = vmatmul.mubr.f32.vlgmr.msra.gmra.mrb[4].mxu0 %v7710_v20  ;;  %1102 = vmatmul.mubr.f32.vlgmr.msra.gmra.mrb[4].mxu1 %v7710_v20  ;;  %v7810_v24 = vpack.c.bf16 %v1169_v17, %v1165_v15  ;;  %v1426_v15 = vld [vmem:[%s9412_s2 + $0xf0] sm:$0xff] }
 0x24a   :  { %1277 = vmatprep.mubr.f32.mxu0 %v7022_v3  ;;  %1348 = vmatprep.mubr.f32.mxu1 %v7022_v3  ;;  %v7901_v17 = vpack.c.bf16 %v1426_v15, %v1422_v11  ;;  %v1446_v11 = vld [vmem:[%s9412_s2 + $0x190] sm:$0xff]  ;;  %v8002_v15 = vpack.c.bf16 %v1448_v1, %v1444_v59 }
 0x24b   :  { %5718 = vmatpush1.bf16.msra.mxu0 %v7738_v50  ;;  %5750 = vmatpush1.bf16.msra.mxu1 %v7747_v60 }
 0x24c   :  { %5720 = vmatprep.subr.bf16.mxu0 %v7761_v10  ;;  %5752 = vmatprep.subr.bf16.mxu1 %v7772_v49 }
 0x24f   :  { %5722 = vmatpush1.bf16.msra.mxu0 %v7774_v51  ;;  %5754 = vmatpush1.bf16.msra.mxu1 %v7783_v0 }
 0x250   :  { %5724 = vmatprep.subr.bf16.mxu0 %v7797_v8  ;;  %5756 = vmatprep.subr.bf16.mxu1 %v7808_v21 }
 0x253   :  { %5726 = vmatpush1.bf16.msra.mxu0 %v7810_v24  ;;  %5758 = vmatpush1.bf16.msra.mxu1 %v7819_v41 }
 0x254   :  { %5728 = vmatprep.subr.bf16.mxu0 %v7400_v16  ;;  %5760 = vmatprep.subr.bf16.mxu1 %v7409_v19 }
 0x257   :  { %5730 = vmatpush1.bf16.msra.mxu0 %v7421_v23  ;;  %5762 = vmatpush1.bf16.msra.mxu1 %v7431_v26 }
 0x258   :  { %5732 = vmatprep.subr.bf16.mxu0 %v7441_v29  ;;  %5764 = vmatprep.subr.bf16.mxu1 %v7450_v32 }
 0x25b   :  { %5734 = vmatpush1.bf16.msra.mxu0 %v7462_v36  ;;  %5766 = vmatpush1.bf16.msra.mxu1 %v7472_v40 }
 0x25c   :  { %5736 = vmatprep.subr.bf16.mxu0 %v7482_v44  ;;  %5768 = vmatprep.subr.bf16.mxu1 %v7491_v48 }
 0x25f   :  { %5738 = vmatpush1.bf16.msra.mxu0 %v7503_v54  ;;  %5770 = vmatpush1.bf16.msra.mxu1 %v7513_v58 }
 0x260   :  { %5740 = vmatprep.subr.bf16.mxu0 %v7523_v62  ;;  %5772 = vmatprep.subr.bf16.mxu1 %v7532_v4 }
 0x263   :  { %5742 = vmatpush1.bf16.msra.mxu0 %v7544_v9  ;;  %5774 = vmatpush1.bf16.msra.mxu1 %v7554_v14 }
 0x264   :  { %5744 = vmatprep.subr.bf16.mxu0 %v7564_v18  ;;  %5776 = vmatprep.subr.bf16.mxu1 %v7573_v22 }
 0x267   :  { %5746 = vmatpush1.bf16.msra.mxu0 %v7579_v25  ;;  %5778 = vmatpush1.bf16.msra.mxu1 %v7583_v27 }
 0x268   :  { %5780 = vmatprep.subr.bf16.mxu0 %v7725_v30  ;;  %5812 = vmatprep.subr.bf16.mxu1 %v7736_v47 }
 0x31c   :  { %v1032_v16 = vpop.f32.mrb[4].mxu0  ;;  %v1103_v19 = vpop.f32.mrb[4].mxu1 }
 0x31d   :  { %v6639_v23 = vadd.f32 %v1032_v16, %v7640_v37  ;;  %v1034_v26 = vpop.f32.mrb[5].mxu0  ;;  %v1105_v29 = vpop.f32.mrb[5].mxu1  ;;  %v6655_v54 = vadd.f32 %v1103_v19, %v7657_v61  ;;  %v1431_v16 = vld [vmem:[%s9412_s2 + $0x118] sm:$0xff]  ;;  %v7915_v19 = vpack.c.bf16 %v1433_v34, %v1429_v28  ;;  %v1450_v28 = vld [vmem:[%s9412_s2 + $0x1b0] sm:$0xff]  ;;  %v1453_v34 = vld [vmem:[%s9412_s2 + $0x1c8] sm:$0xff] }
 0x31e   :  { %v6640_v32 = vadd.f32 %v1034_v26, %v7644_v38  ;;  %v6656_v44 = vadd.f32 %v1105_v29, %v7651_v55  ;;  %v1428_v26 = vld [vmem:[%s9412_s2 + $0x100] sm:$0xff] }
 0x31f   :  { %v4785_v36 = vmul.f32 -1.442695, %v6639_v23  ;;  %v1435_v23 = vld [vmem:[%s9412_s2 + $0x138] sm:$0xff]  ;;  %v1432_v29 = vld [vmem:[%s9412_s2 + $0x120] sm:$0xff] }
 0x320   :  { %v4786_v40 = vmul.f32 -1.442695, %v6640_v32  ;;  %v4787_v48 = vmul.f32 -1.442695, %v6656_v44  ;;  %v7926_v32 = vpack.c.bf16 %v1435_v23, %v1431_v16  ;;  %v1434_v44 = vld [vmem:[%s9412_s2 + $0x130] sm:$0xff]  ;;  %v1457_v16 = vld [vmem:[%s9412_s2 + $0x1e8] sm:$0xff]  ;;  %v8015_v23 = vpack.c.bf16 %v1450_v28, %v1446_v11 }
 0x321   :  { %6798 = vpow2.f32 %v4785_v36  ;;  %v7928_v36 = vpack.c.bf16 %v1432_v29, %v1428_v26  ;;  %v8017_v26 = vpack.c.bf16 %v1457_v16, %v1453_v34  ;;  %v1455_v29 = vld [vmem:[%s9412_s2 + $0x1d8] sm:$0xff] }
 0x322   :  { %6800 = vpow2.f32 %v4786_v40  ;;  %v1430_v40 = vld [vmem:[%s9412_s2 + $0x110] sm:$0xff] }
 0x323   :  { %6802 = vpow2.f32 %v4787_v48  ;;  %v7937_v48 = vpack.c.bf16 %v1434_v44, %v1430_v40  ;;  %v1459_v40 = vld [vmem:[%s9412_s2 + $0x1f8] sm:$0xff]  ;;  %v1452_v44 = vld [vmem:[%s9412_s2 + $0x1c0] sm:$0xff] }
 0x324   :  { %6804 = vtanh.f32 %v6655_v54  ;;  %v1437_v54 = vld [vmem:[%s9412_s2 + $0x148] sm:$0xff] }
 0x32b   :  { %v6799_v58 = vpop.eup %6798 }
 0x32c   :  { %v6801_v62 = vpop.eup %6800  ;;  %v1115_v4 = vadd.f32 1.0, %v6799_v58  ;;  %v1441_v58 = vld [vmem:[%s9412_s2 + $0x168] sm:$0xff] }
 0x32d   :  { %v1121_v9 = vadd.f32 1.0, %v6801_v62  ;;  %v6803_v14 = vpop.eup %6802  ;;  %v1439_v62 = vld [vmem:[%s9412_s2 + $0x158] sm:$0xff] }
 0x32e   :  { %6806 = vrcp.f32 %v1115_v4  ;;  %v6805_v18 = vpop.eup %6804  ;;  %v1128_v42 = vadd.f32 1.0, %v6803_v14  ;;  %v7950_v4 = vpack.c.bf16 %v1441_v58, %v1437_v54  ;;  %v1436_v14 = vld [vmem:[%s9412_s2 + $0x140] sm:$0xff]  ;;  %v8029_v54 = vpack.c.bf16 %v1459_v40, %v1455_v29 }
 0x32f   :  { %6808 = vrcp.f32 %v1121_v9  ;;  %v1443_v9 = vld [vmem:[%s9412_s2 + $0x178] sm:$0xff]  ;;  %v1456_v58 = vld [vmem:[%s9412_s2 + $0x1e0] sm:$0xff] }
 0x330   :  { %6810 = vrcp.f32 %v1128_v42  ;;  %v1442_v42 = vld [vmem:[%s9412_s2 + $0x170] sm:$0xff] }
 0x338   :  { %v6807_v22 = vpop.eup %6806 }
 0x339   :  { %v6809_v25 = vpop.eup %6808  ;;  %v1133_v27 = vmul.f32 %v6807_v22, %v6805_v18  ;;  %v1440_v18 = vld [vmem:[%s9412_s2 + $0x160] sm:$0xff]  ;;  %v7962_v22 = vpack.c.bf16 %v1443_v9, %v1439_v62  ;;  %v1454_v62 = vld [vmem:[%s9412_s2 + $0x1d0] sm:$0xff] }
 0x33a   :  { %v1132_v53 = vmul.f32 %v6809_v25, %v7707_v12  ;;  %v6811_v63 = vpop.eup %6810  ;;  %v1421_v12 = vld [vmem:[%s9412_s2 + $0xc8] sm:$0xff]  ;;  %v7964_v25 = vpack.c.bf16 %v1440_v18, %v1436_v14  ;;  %v1458_v9 = vld [vmem:[%s9412_s2 + $0x1f0] sm:$0xff]  ;;  %v8041_v14 = vpack.c.bf16 %v1456_v58, %v1452_v44 }
 0x33b   :  { %v7879_v46 = vpack.c.bf16 %v1425_v13, %v1421_v12  ;;  %v1447_v12 = vld [vmem:[%s9412_s2 + $0x198] sm:$0xff]  ;;  %v8045_v18 = vpack.c.bf16 %v1458_v9, %v1454_v62 }
 0x33c   :  { %v7851_v56 = vadd.f32 %v1133_v27, %v1132_v53  ;;  %v1438_v27 = vld [vmem:[%s9412_s2 + $0x150] sm:$0xff]  ;;  %v1445_v53 = vld [vmem:[%s9412_s2 + $0x188] sm:$0xff]  ;;  %v1451_v13 = vld [vmem:[%s9412_s2 + $0x1b8] sm:$0xff] }
 0x33d   :  { %v7990_v52 = vpack.c.bf16 %v1451_v13, %v1447_v12 }
 0x33e   :  { %6812 = vtanh.f32 %v7851_v56 }
 0x348   :  { %v6813_v2 = vpop.eup %6812 }
 0x349   :  { %v7854_v6 = vmul.f32 %v6813_v2, %v6811_v63  ;;  %v7976_v63 = vpack.c.bf16 %v1442_v42, %v1438_v27  ;;  %v1449_v2 = vld [vmem:[%s9412_s2 + $0x1a8] sm:$0xff] }
 0x34a   :  { %v7988_v45 = vpack.c.bf16 %v1449_v2, %v1445_v53 }
 0x34b   :  { %1278 = vmatmul.mubr.f32.vlgmr.msra.gmra.mrb[6].mxu0 %v7854_v6  ;;  %1349 = vmatmul.mubr.f32.vlgmr.msra.gmra.mrb[6].mxu1 %v7854_v6 }
 0x34c   :  { %5782 = vmatpush1.bf16.msra.mxu0 %v7738_v50  ;;  %5814 = vmatpush1.bf16.msra.mxu1 %v7747_v60 }
 0x34d   :  { %5784 = vmatprep.subr.bf16.mxu0 %v7761_v10  ;;  %5816 = vmatprep.subr.bf16.mxu1 %v7772_v49 }
 0x34e   :  { %1524 = vmatprep.mubr.f32.mxu0 %v7022_v3  ;;  %1595 = vmatprep.mubr.f32.mxu1 %v7022_v3 }
 0x350   :  { %5786 = vmatpush1.bf16.msra.mxu0 %v7774_v51  ;;  %5818 = vmatpush1.bf16.msra.mxu1 %v7783_v0 }
 0x351   :  { %5788 = vmatprep.subr.bf16.mxu0 %v7797_v8  ;;  %5820 = vmatprep.subr.bf16.mxu1 %v7808_v21 }
 0x354   :  { %5790 = vmatpush1.bf16.msra.mxu0 %v7810_v24  ;;  %5822 = vmatpush1.bf16.msra.mxu1 %v7819_v41 }
 0x355   :  { %5792 = vmatprep.subr.bf16.mxu0 %v7879_v46  ;;  %5824 = vmatprep.subr.bf16.mxu1 %v7890_v5 }
 0x358   :  { %5794 = vmatpush1.bf16.msra.mxu0 %v7892_v7  ;;  %5826 = vmatpush1.bf16.msra.mxu1 %v7901_v17 }
 0x359   :  { %5796 = vmatprep.subr.bf16.mxu0 %v7915_v19  ;;  %5828 = vmatprep.subr.bf16.mxu1 %v7926_v32 }
 0x35c   :  { %5798 = vmatpush1.bf16.msra.mxu0 %v7928_v36  ;;  %5830 = vmatpush1.bf16.msra.mxu1 %v7937_v48 }
 0x35d   :  { %5800 = vmatprep.subr.bf16.mxu0 %v7950_v4  ;;  %5832 = vmatprep.subr.bf16.mxu1 %v7962_v22 }
 0x360   :  { %5802 = vmatpush1.bf16.msra.mxu0 %v7964_v25  ;;  %5834 = vmatpush1.bf16.msra.mxu1 %v7976_v63 }
 0x361   :  { %5804 = vmatprep.subr.bf16.mxu0 %v7988_v45  ;;  %5836 = vmatprep.subr.bf16.mxu1 %v7990_v52 }
 0x364   :  { %5806 = vmatpush1.bf16.msra.mxu0 %v8002_v15  ;;  %5838 = vmatpush1.bf16.msra.mxu1 %v8015_v23 }
 0x365   :  { %5808 = vmatprep.subr.bf16.mxu0 %v8017_v26  ;;  %5840 = vmatprep.subr.bf16.mxu1 %v8029_v54 }
 0x368   :  { %5810 = vmatpush1.bf16.msra.mxu0 %v8041_v14  ;;  %5842 = vmatpush1.bf16.msra.mxu1 %v8045_v18 }
 0x369   :  { %5844 = vmatprep.subr.bf16.mxu0 %v7725_v30  ;;  %5876 = vmatprep.subr.bf16.mxu1 %v7736_v47 }
 0x41e   :  { %v1279_v27 = vpop.f32.mrb[6].mxu0  ;;  %v1350_v42 = vpop.f32.mrb[6].mxu1 }
 0x41f   :  { %v6641_v53 = vadd.f32 %v1279_v27, %v7640_v37  ;;  %v1281_v2 = vpop.f32.mrb[7].mxu0  ;;  %v1352_v12 = vpop.f32.mrb[7].mxu1  ;;  %v6657_v34 = vadd.f32 %v1350_v42, %v7657_v61 }
 0x420   :  { %v6642_v13 = vadd.f32 %v1281_v2, %v7644_v38  ;;  %v6658_v11 = vadd.f32 %v1352_v12, %v7651_v55 }
 0x421   :  { %v4788_v59 = vmul.f32 -1.442695, %v6641_v53 }
 0x422   :  { %v4789_v1 = vmul.f32 -1.442695, %v6642_v13  ;;  %v4790_v28 = vmul.f32 -1.442695, %v6658_v11 }
 0x423   :  { %6814 = vpow2.f32 %v4788_v59 }
 0x424   :  { %6816 = vpow2.f32 %v4789_v1 }
 0x425   :  { %6818 = vpow2.f32 %v4790_v28 }
 0x426   :  { %6820 = vtanh.f32 %v6657_v34 }
 0x42d   :  { %v6815_v16 = vpop.eup %6814 }
 0x42e   :  { %v6817_v29 = vpop.eup %6816  ;;  %v1362_v40 = vadd.f32 1.0, %v6815_v16 }
 0x42f   :  { %v1368_v44 = vadd.f32 1.0, %v6817_v29  ;;  %v6819_v58 = vpop.eup %6818 }
 0x430   :  { %6822 = vrcp.f32 %v1362_v40  ;;  %v6821_v62 = vpop.eup %6820  ;;  %v1375_v2 = vadd.f32 1.0, %v6819_v58 }
 0x431   :  { %6824 = vrcp.f32 %v1368_v44 }
 0x432   :  { %6826 = vrcp.f32 %v1375_v2 }
 0x43a   :  { %v6823_v9 = vpop.eup %6822 }
 0x43b   :  { %v6825_v27 = vpop.eup %6824  ;;  %v1380_v53 = vmul.f32 %v6823_v9, %v6821_v62 }
 0x43c   :  { %v1379_v13 = vmul.f32 %v6825_v27, %v7851_v56  ;;  %v6827_v42 = vpop.eup %6826 }
 0x43e   :  { %v8057_v12 = vadd.f32 %v1380_v53, %v1379_v13 }
 0x440   :  { %6828 = vtanh.f32 %v8057_v12 }
 0x44a   :  { %v6829_v59 = vpop.eup %6828 }
 0x44b   :  { %v8060_v1 = vmul.f32 %v6829_v59, %v6827_v42 }
 0x44d   :  { %1525 = vmatmul.mubr.f32.vlgmr.msra.gmra.mrb[8].mxu0 %v8060_v1  ;;  %1596 = vmatmul.mubr.f32.vlgmr.msra.gmra.mrb[8].mxu1 %v8060_v1 }
 0x44e   :  { %5846 = vmatpush1.bf16.msra.mxu0 %v7738_v50  ;;  %5878 = vmatpush1.bf16.msra.mxu1 %v7747_v60 }
 0x44f   :  { %5848 = vmatprep.subr.bf16.mxu0 %v7761_v10  ;;  %5880 = vmatprep.subr.bf16.mxu1 %v7772_v49 }
 0x450   :  { %1771 = vmatprep.mubr.f32.mxu0 %v7022_v3  ;;  %1842 = vmatprep.mubr.f32.mxu1 %v7022_v3 }
 0x452   :  { %5850 = vmatpush1.bf16.msra.mxu0 %v7774_v51  ;;  %5882 = vmatpush1.bf16.msra.mxu1 %v7783_v0 }
 0x453   :  { %5852 = vmatprep.subr.bf16.mxu0 %v7797_v8  ;;  %5884 = vmatprep.subr.bf16.mxu1 %v7808_v21 }
 0x456   :  { %5854 = vmatpush1.bf16.msra.mxu0 %v7810_v24  ;;  %5886 = vmatpush1.bf16.msra.mxu1 %v7819_v41 }
 0x457   :  { %5856 = vmatprep.subr.bf16.mxu0 %v7879_v46  ;;  %5888 = vmatprep.subr.bf16.mxu1 %v7890_v5 }
 0x45a   :  { %5858 = vmatpush1.bf16.msra.mxu0 %v7892_v7  ;;  %5890 = vmatpush1.bf16.msra.mxu1 %v7901_v17 }
 0x45b   :  { %5860 = vmatprep.subr.bf16.mxu0 %v7915_v19  ;;  %5892 = vmatprep.subr.bf16.mxu1 %v7926_v32 }
 0x45e   :  { %5862 = vmatpush1.bf16.msra.mxu0 %v7928_v36  ;;  %5894 = vmatpush1.bf16.msra.mxu1 %v7937_v48 }
 0x45f   :  { %5864 = vmatprep.subr.bf16.mxu0 %v7950_v4  ;;  %5896 = vmatprep.subr.bf16.mxu1 %v7962_v22 }
 0x462   :  { %5866 = vmatpush1.bf16.msra.mxu0 %v7964_v25  ;;  %5898 = vmatpush1.bf16.msra.mxu1 %v7976_v63 }
 0x463   :  { %5868 = vmatprep.subr.bf16.mxu0 %v7988_v45  ;;  %5900 = vmatprep.subr.bf16.mxu1 %v7990_v52 }
 0x466   :  { %5870 = vmatpush1.bf16.msra.mxu0 %v8002_v15  ;;  %5902 = vmatpush1.bf16.msra.mxu1 %v8015_v23 }
 0x467   :  { %5872 = vmatprep.subr.bf16.mxu0 %v8017_v26  ;;  %5904 = vmatprep.subr.bf16.mxu1 %v8029_v54 }
 0x46a   :  { %5874 = vmatpush1.bf16.msra.mxu0 %v8041_v14  ;;  %5906 = vmatpush1.bf16.msra.mxu1 %v8045_v18 }
 0x46b   :  { %5908 = vmatprep.subr.bf16.mxu0 %v7725_v30  ;;  %5940 = vmatprep.subr.bf16.mxu1 %v7736_v47 }
 0x520   :  { %v1526_v56 = vpop.f32.mrb[8].mxu0  ;;  %v1597_v11 = vpop.f32.mrb[8].mxu1 }
 0x521   :  { %v6643_v28 = vadd.f32 %v1526_v56, %v7640_v37  ;;  %v1528_v34 = vpop.f32.mrb[9].mxu0  ;;  %v1599_v16 = vpop.f32.mrb[9].mxu1  ;;  %v6659_v9 = vadd.f32 %v1597_v11, %v7657_v61 }
 0x522   :  { %v6644_v29 = vadd.f32 %v1528_v34, %v7644_v38  ;;  %v6660_v58 = vadd.f32 %v1599_v16, %v7651_v55 }
 0x523   :  { %v4791_v40 = vmul.f32 -1.442695, %v6643_v28 }
 0x524   :  { %v4792_v44 = vmul.f32 -1.442695, %v6644_v29  ;;  %v4793_v62 = vmul.f32 -1.442695, %v6660_v58 }
 0x525   :  { %6830 = vpow2.f32 %v4791_v40 }
 0x526   :  { %6832 = vpow2.f32 %v4792_v44 }
 0x527   :  { %6834 = vpow2.f32 %v4793_v62 }
 0x528   :  { %6836 = vtanh.f32 %v6659_v9 }
 0x52f   :  { %v6831_v30 = vpop.eup %6830 }
 0x530   :  { %v6833_v27 = vpop.eup %6832  ;;  %v1609_v47 = vadd.f32 1.0, %v6831_v30 }
 0x531   :  { %v1615_v53 = vadd.f32 1.0, %v6833_v27  ;;  %v6835_v2 = vpop.eup %6834 }
 0x532   :  { %6838 = vrcp.f32 %v1609_v47  ;;  %v6837_v13 = vpop.eup %6836  ;;  %v1622_v28 = vadd.f32 1.0, %v6835_v2 }
 0x533   :  { %6840 = vrcp.f32 %v1615_v53 }
 0x534   :  { %6842 = vrcp.f32 %v1622_v28 }
 0x53c   :  { %v6839_v42 = vpop.eup %6838 }
 0x53d   :  { %v6841_v59 = vpop.eup %6840  ;;  %v1627_v56 = vmul.f32 %v6839_v42, %v6837_v13 }
 0x53e   :  { %v1626_v34 = vmul.f32 %v6841_v59, %v8057_v12  ;;  %v6843_v11 = vpop.eup %6842 }
 0x540   :  { %v8103_v16 = vadd.f32 %v1627_v56, %v1626_v34 }
 0x542   :  { %6844 = vtanh.f32 %v8103_v16 }
 0x54c   :  { %v6845_v29 = vpop.eup %6844 }
 0x54d   :  { %v8106_v40 = vmul.f32 %v6845_v29, %v6843_v11  ;;  %v2142_v11 = vld [vmem:[%s9412_s2 + $0x28] sm:$0xff]  ;;  %v2140_v29 = vld [vmem:[%s9412_s2 + $0x18] sm:$0xff] }
 0x54f   :  { %1772 = vmatmul.mubr.f32.vlgmr.msra.gmra.mrb[10].mxu0 %v8106_v40  ;;  %1843 = vmatmul.mubr.f32.vlgmr.msra.gmra.mrb[10].mxu1 %v8106_v40 }
 0x550   :  { %5910 = vmatpush1.bf16.msra.mxu0 %v7738_v50  ;;  %5942 = vmatpush1.bf16.msra.mxu1 %v7747_v60 }
 0x551   :  { %5912 = vmatprep.subr.bf16.mxu0 %v7761_v10  ;;  %5944 = vmatprep.subr.bf16.mxu1 %v7772_v49 }
 0x552   :  { %2018 = vmatprep.mubr.f32.mxu0 %v7022_v3  ;;  %2089 = vmatprep.mubr.f32.mxu1 %v7022_v3 }
 0x554   :  { %5914 = vmatpush1.bf16.msra.mxu0 %v7774_v51  ;;  %5946 = vmatpush1.bf16.msra.mxu1 %v7783_v0 }
 0x555   :  { %5916 = vmatprep.subr.bf16.mxu0 %v7797_v8  ;;  %5948 = vmatprep.subr.bf16.mxu1 %v7808_v21 }
 0x558   :  { %5918 = vmatpush1.bf16.msra.mxu0 %v7810_v24  ;;  %5950 = vmatpush1.bf16.msra.mxu1 %v7819_v41 }
 0x559   :  { %5920 = vmatprep.subr.bf16.mxu0 %v7879_v46  ;;  %5952 = vmatprep.subr.bf16.mxu1 %v7890_v5 }
 0x55c   :  { %5922 = vmatpush1.bf16.msra.mxu0 %v7892_v7  ;;  %5954 = vmatpush1.bf16.msra.mxu1 %v7901_v17 }
 0x55d   :  { %5924 = vmatprep.subr.bf16.mxu0 %v7915_v19  ;;  %5956 = vmatprep.subr.bf16.mxu1 %v7926_v32 }
 0x560   :  { %5926 = vmatpush1.bf16.msra.mxu0 %v7928_v36  ;;  %5958 = vmatpush1.bf16.msra.mxu1 %v7937_v48 }
 0x561   :  { %5928 = vmatprep.subr.bf16.mxu0 %v7950_v4  ;;  %5960 = vmatprep.subr.bf16.mxu1 %v7962_v22 }
 0x564   :  { %5930 = vmatpush1.bf16.msra.mxu0 %v7964_v25  ;;  %5962 = vmatpush1.bf16.msra.mxu1 %v7976_v63 }
 0x565   :  { %5932 = vmatprep.subr.bf16.mxu0 %v7988_v45  ;;  %5964 = vmatprep.subr.bf16.mxu1 %v7990_v52 }
 0x568   :  { %5934 = vmatpush1.bf16.msra.mxu0 %v8002_v15  ;;  %5966 = vmatpush1.bf16.msra.mxu1 %v8015_v23 }
 0x569   :  { %5936 = vmatprep.subr.bf16.mxu0 %v8017_v26  ;;  %5968 = vmatprep.subr.bf16.mxu1 %v8029_v54 }
 0x56c   :  { %5938 = vmatpush1.bf16.msra.mxu0 %v8041_v14  ;;  %5970 = vmatpush1.bf16.msra.mxu1 %v8045_v18 }
 0x622   :  { %v1773_v50 = vpop.f32.mrb[10].mxu0  ;;  %v1844_v60 = vpop.f32.mrb[10].mxu1 }
 0x623   :  { %v6645_v10 = vadd.f32 %v1773_v50, %v7640_v37  ;;  %v1775_v49 = vpop.f32.mrb[11].mxu0  ;;  %v1846_v51 = vpop.f32.mrb[11].mxu1  ;;  %v6661_v12 = vadd.f32 %v1844_v60, %v7657_v61  ;;  %v2144_v60 = vld [vmem:[%s9412_s2 + $0x38] sm:$0xff] }
 0x624   :  { %v6646_v0 = vadd.f32 %v1775_v49, %v7644_v38  ;;  %v6662_v24 = vadd.f32 %v1846_v51, %v7651_v55  ;;  %v2141_v49 = vld [vmem:[%s9412_s2 + $0x20] sm:$0xff]  ;;  %v6003_v51 = vpack.c.bf16 %v2144_v60, %v2140_v29 }
 0x625   :  { %v4794_v8 = vmul.f32 -1.442695, %v6645_v10  ;;  %v2137_v10 = vld [vmem:[%s9412_s2] sm:$0xff] }
 0x626   :  { %v4795_v21 = vmul.f32 -1.442695, %v6646_v0  ;;  %v4796_v41 = vmul.f32 -1.442695, %v6662_v24  ;;  %v5973_v0 = vpack.c.bf16 %v2141_v49, %v2137_v10  ;;  %6004 = vmatprep.subr.bf16.mxu1 %v6003_v51  ;;  %v2153_v29 = vld [vmem:[%s9412_s2 + $0x80] sm:$0xff]  ;;  %v2155_v49 = vld [vmem:[%s9412_s2 + $0x90] sm:$0xff] }
 0x627   :  { %6846 = vpow2.f32 %v4794_v8  ;;  %v2139_v8 = vld [vmem:[%s9412_s2 + $0x10] sm:$0xff] }
 0x628   :  { %6848 = vpow2.f32 %v4795_v21  ;;  %v2143_v21 = vld [vmem:[%s9412_s2 + $0x30] sm:$0xff] }
 0x629   :  { %6850 = vpow2.f32 %v4796_v41  ;;  %v6005_v24 = vpack.c.bf16 %v2143_v21, %v2139_v8  ;;  %v2146_v41 = vld [vmem:[%s9412_s2 + $0x48] sm:$0xff]  ;;  %v2159_v51 = vld [vmem:[%s9412_s2 + $0xb0] sm:$0xff] }
 0x62a   :  { %6852 = vtanh.f32 %v6661_v12  ;;  %v2150_v12 = vld [vmem:[%s9412_s2 + $0x68] sm:$0xff] }
 0x631   :  { %v6847_v44 = vpop.eup %6846 }
 0x632   :  { %v6849_v58 = vpop.eup %6848  ;;  %v1856_v62 = vadd.f32 1.0, %v6847_v44  ;;  %v2148_v44 = vld [vmem:[%s9412_s2 + $0x58] sm:$0xff] }
 0x633   :  { %v1862_v9 = vadd.f32 1.0, %v6849_v58  ;;  %v6851_v30 = vpop.eup %6850  ;;  %v5975_v58 = vpack.c.bf16 %v2150_v12, %v2146_v41 }
 0x634   :  { %6854 = vrcp.f32 %v1856_v62  ;;  %v6853_v27 = vpop.eup %6852  ;;  %v1869_v13 = vadd.f32 1.0, %v6851_v30  ;;  %v2152_v62 = vld [vmem:[%s9412_s2 + $0x78] sm:$0xff]  ;;  %v2149_v30 = vld [vmem:[%s9412_s2 + $0x60] sm:$0xff] }
 0x635   :  { %6856 = vrcp.f32 %v1862_v9  ;;  %v2145_v9 = vld [vmem:[%s9412_s2 + $0x40] sm:$0xff] }
 0x636   :  { %6858 = vrcp.f32 %v1869_v13 }
 0x63e   :  { %v6855_v47 = vpop.eup %6854 }
 0x63f   :  { %v6857_v53 = vpop.eup %6856  ;;  %v1874_v2 = vmul.f32 %v6855_v47, %v6853_v27  ;;  %v6007_v27 = vpack.c.bf16 %v2152_v62, %v2148_v44  ;;  %v5977_v47 = vpack.c.bf16 %v2149_v30, %v2145_v9  ;;  %v4803_v30 = vld [vmem:[%s9411_s1 + $0x200] sm:$0xff] }
 0x640   :  { %v1873_v42 = vmul.f32 %v6857_v53, %v8103_v16  ;;  %v6859_v56 = vpop.eup %6858  ;;  %v2138_v16 = vld [vmem:[%s9412_s2 + $0x8] sm:$0xff]  ;;  %v2147_v53 = vld [vmem:[%s9412_s2 + $0x50] sm:$0xff] }
 0x641   :  { %v5971_v50 = vpack.c.bf16 %v2142_v11, %v2138_v16  ;;  %v2160_v11 = vld [vmem:[%s9412_s2 + $0xb8] sm:$0xff] }
 0x642   :  { %v8147_v59 = vadd.f32 %v1874_v2, %v1873_v42  ;;  %v2151_v2 = vld [vmem:[%s9412_s2 + $0x70] sm:$0xff]  ;;  %v2154_v42 = vld [vmem:[%s9412_s2 + $0x88] sm:$0xff] }
 0x643   :  { %5972 = vmatprep.subr.bf16.mxu0 %v5971_v50  ;;  %v6009_v13 = vpack.c.bf16 %v2151_v2, %v2147_v53  ;;  %v2157_v50 = vld [vmem:[%s9412_s2 + $0xa0] sm:$0xff]  ;;  %v4812_v53 = vld [vmem:[%s9411_s1 + $0x248] sm:$0xff] }
 0x644   :  { %6860 = vtanh.f32 %v8147_v59  ;;  %v5981_v10 = vpack.c.bf16 %v2157_v50, %v2153_v29  ;;  %v4816_v2 = vld [vmem:[%s9411_s1 + $0x268] sm:$0xff]  ;;  %v4811_v29 = vld [vmem:[%s9411_s1 + $0x240] sm:$0xff] }
 0x645   :  { %v4815_v50 = vld [vmem:[%s9411_s1 + $0x260] sm:$0xff] }
 0x64e   :  { %v6861_v28 = vpop.eup %6860 }
 0x64f   :  { %v8150_v34 = vmul.f32 %v6861_v28, %v6859_v56  ;;  %v2158_v56 = vld [vmem:[%s9412_s2 + $0xa8] sm:$0xff]  ;;  %v2156_v28 = vld [vmem:[%s9412_s2 + $0x98] sm:$0xff] }
 0x650   :  { %v5979_v16 = vpack.c.bf16 %v2158_v56, %v2154_v42  ;;  %v6011_v60 = vpack.c.bf16 %v2160_v11, %v2156_v28  ;;  %v4818_v42 = vld [vmem:[%s9411_s1 + $0x278] sm:$0xff] }
 0x651   :  { %2019 = vmatmul.mubr.f32.vlgmr.msra.gmra.mrb[12].mxu0 %v8150_v34  ;;  %2090 = vmatmul.mubr.f32.vlgmr.msra.gmra.mrb[12].mxu1 %v8150_v34 }
 0x652   :  { %2265 = vmatprep.mubr.f32.mxu0 %v7022_v3  ;;  %2336 = vmatprep.mubr.f32.mxu1 %v7022_v3 }
 0x653   :  { %5974 = vmatpush1.bf16.msra.mxu0 %v5973_v0  ;;  %6006 = vmatpush1.bf16.msra.mxu1 %v6005_v24  ;;  %v6013_v0 = vpack.c.bf16 %v2159_v51, %v2155_v49  ;;  %v4813_v51 = vld [vmem:[%s9411_s1 + $0x250] sm:$0xff] }
 0x654   :  { %5976 = vmatprep.subr.bf16.mxu0 %v5975_v58  ;;  %6008 = vmatprep.subr.bf16.mxu1 %v6007_v27  ;;  %v4807_v27 = vld [vmem:[%s9411_s1 + $0x220] sm:$0xff] }
 0x657   :  { %5978 = vmatpush1.bf16.msra.mxu0 %v5977_v47  ;;  %6010 = vmatpush1.bf16.msra.mxu1 %v6009_v13  ;;  %v4805_v47 = vld [vmem:[%s9411_s1 + $0x210] sm:$0xff]  ;;  %v4814_v13 = vld [vmem:[%s9411_s1 + $0x258] sm:$0xff] }
 0x658   :  { %5980 = vmatprep.subr.bf16.mxu0 %v5979_v16  ;;  %6012 = vmatprep.subr.bf16.mxu1 %v6011_v60  ;;  %v6037_v16 = vpack.c.bf16 %v4807_v27, %v4803_v30  ;;  %v6071_v49 = vpack.c.bf16 %v4818_v42, %v4814_v13  ;;  %v4837_v13 = vld [vmem:[%s9411_s1 + $0x310] sm:$0xff] }
 0x659   :  { %v4841_v42 = vld [vmem:[%s9411_s1 + $0x330] sm:$0xff] }
 0x65b   :  { %5982 = vmatpush1.bf16.msra.mxu0 %v5981_v10  ;;  %6014 = vmatpush1.bf16.msra.mxu1 %v6013_v0  ;;  %v6039_v10 = vpack.c.bf16 %v4816_v2, %v4812_v53  ;;  %v4817_v0 = vld [vmem:[%s9411_s1 + $0x270] sm:$0xff] }
 0x65c   :  { %5984 = vmatprep.subr.bf16.mxu0 %v7879_v46  ;;  %6016 = vmatprep.subr.bf16.mxu1 %v7890_v5  ;;  %v4804_v46 = vld [vmem:[%s9411_s1 + $0x208] sm:$0xff] }
 0x65d   :  { %v4808_v5 = vld [vmem:[%s9411_s1 + $0x228] sm:$0xff] }
 0x65f   :  { %5986 = vmatpush1.bf16.msra.mxu0 %v7892_v7  ;;  %6018 = vmatpush1.bf16.msra.mxu1 %v7901_v17  ;;  %v4806_v7 = vld [vmem:[%s9411_s1 + $0x218] sm:$0xff] }
 0x660   :  { %5988 = vmatprep.subr.bf16.mxu0 %v7915_v19  ;;  %6020 = vmatprep.subr.bf16.mxu1 %v7926_v32  ;;  %v4810_v17 = vld [vmem:[%s9411_s1 + $0x238] sm:$0xff]  ;;  %v6035_v19 = vpack.c.bf16 %v4808_v5, %v4804_v46  ;;  %v4820_v46 = vld [vmem:[%s9411_s1 + $0x288] sm:$0xff] }
 0x661   :  { %v6067_v32 = vpack.c.bf16 %v4810_v17, %v4806_v7  ;;  %v4824_v5 = vld [vmem:[%s9411_s1 + $0x2a8] sm:$0xff]  ;;  %v4822_v7 = vld [vmem:[%s9411_s1 + $0x298] sm:$0xff] }
 0x662   :  { %v4826_v17 = vld [vmem:[%s9411_s1 + $0x2b8] sm:$0xff] }
 0x663   :  { %5990 = vmatpush1.bf16.msra.mxu0 %v7928_v36  ;;  %6022 = vmatpush1.bf16.msra.mxu1 %v7937_v48 }
 0x664   :  { %5992 = vmatprep.subr.bf16.mxu0 %v7950_v4  ;;  %6024 = vmatprep.subr.bf16.mxu1 %v7962_v22 }
 0x667   :  { %5994 = vmatpush1.bf16.msra.mxu0 %v7964_v25  ;;  %6026 = vmatpush1.bf16.msra.mxu1 %v7976_v63 }
 0x668   :  { %5996 = vmatprep.subr.bf16.mxu0 %v7988_v45  ;;  %6028 = vmatprep.subr.bf16.mxu1 %v7990_v52 }
 0x66b   :  { %5998 = vmatpush1.bf16.msra.mxu0 %v8002_v15  ;;  %6030 = vmatpush1.bf16.msra.mxu1 %v8015_v23 }
 0x66c   :  { %6000 = vmatprep.subr.bf16.mxu0 %v8017_v26  ;;  %6032 = vmatprep.subr.bf16.mxu1 %v8029_v54 }
 0x66f   :  { %6002 = vmatpush1.bf16.msra.mxu0 %v8041_v14  ;;  %6034 = vmatpush1.bf16.msra.mxu1 %v8045_v18 }
 0x670   :  { %6036 = vmatprep.subr.bf16.mxu0 %v6035_v19  ;;  %6068 = vmatprep.subr.bf16.mxu1 %v6067_v32  ;;  %v6041_v19 = vpack.c.bf16 %v4815_v50, %v4811_v29  ;;  %v6073_v32 = vpack.c.bf16 %v4817_v0, %v4813_v51  ;;  %v6085_v50 = vpack.c.bf16 %v4841_v42, %v4837_v13  ;;  %v4883_v13 = vld [vmem:[%s9412_s2 + $0x268] sm:$0xff]  ;;  %v4881_v42 = vld [vmem:[%s9412_s2 + $0x258] sm:$0xff] }
 0x724   :  { %v2020_v36 = vpop.f32.mrb[12].mxu0  ;;  %v2091_v48 = vpop.f32.mrb[12].mxu1 }
 0x725   :  { %v6647_v4 = vadd.f32 %v2020_v36, %v7640_v37  ;;  %v2022_v22 = vpop.f32.mrb[13].mxu0  ;;  %v2093_v25 = vpop.f32.mrb[13].mxu1  ;;  %v6663_v26 = vadd.f32 %v2091_v48, %v7657_v61  ;;  %v4819_v36 = vld [vmem:[%s9411_s1 + $0x280] sm:$0xff] }
 0x726   :  { %v6648_v63 = vadd.f32 %v2022_v22, %v7644_v38  ;;  %v6664_v15 = vadd.f32 %v2093_v25, %v7651_v55  ;;  %v4823_v48 = vld [vmem:[%s9411_s1 + $0x2a0] sm:$0xff]  ;;  %v6075_v22 = vpack.c.bf16 %v4826_v17, %v4822_v7  ;;  %v4821_v25 = vld [vmem:[%s9411_s1 + $0x290] sm:$0xff]  ;;  %v4852_v7 = vld [vmem:[%s9411_s1 + $0x388] sm:$0xff] }
 0x727   :  { %v4797_v45 = vmul.f32 -1.442695, %v6647_v4  ;;  %v6043_v4 = vpack.c.bf16 %v4824_v5, %v4820_v46  ;;  %v4845_v46 = vld [vmem:[%s9411_s1 + $0x350] sm:$0xff]  ;;  %v4856_v17 = vld [vmem:[%s9411_s1 + $0x3a8] sm:$0xff] }
 0x728   :  { %v4798_v52 = vmul.f32 -1.442695, %v6648_v63  ;;  %v4799_v23 = vmul.f32 -1.442695, %v6664_v15  ;;  %v4825_v63 = vld [vmem:[%s9411_s1 + $0x2b0] sm:$0xff]  ;;  %v4830_v15 = vld [vmem:[%s9411_s1 + $0x2d8] sm:$0xff] }
 0x729   :  { %6862 = vpow2.f32 %v4797_v45  ;;  %v4828_v45 = vld [vmem:[%s9411_s1 + $0x2c8] sm:$0xff]  ;;  %v4849_v5 = vld [vmem:[%s9411_s1 + $0x370] sm:$0xff] }
 0x72a   :  { %6864 = vpow2.f32 %v4798_v52  ;;  %v4832_v52 = vld [vmem:[%s9411_s1 + $0x2e8] sm:$0xff] }
 0x72b   :  { %6866 = vpow2.f32 %v4799_v23  ;;  %v4834_v23 = vld [vmem:[%s9411_s1 + $0x2f8] sm:$0xff] }
 0x72c   :  { %6868 = vtanh.f32 %v6663_v26  ;;  %v6045_v26 = vpack.c.bf16 %v4823_v48, %v4819_v36  ;;  %v6089_v48 = vpack.c.bf16 %v4849_v5, %v4845_v46  ;;  %v4891_v46 = vld [vmem:[%s9412_s2 + $0x2a8] sm:$0xff]  ;;  %v4889_v5 = vld [vmem:[%s9412_s2 + $0x298] sm:$0xff] }
 0x733   :  { %v6863_v54 = vpop.eup %6862 }
 0x734   :  { %v6865_v14 = vpop.eup %6864  ;;  %v2103_v18 = vadd.f32 1.0, %v6863_v54  ;;  %v6077_v54 = vpack.c.bf16 %v4825_v63, %v4821_v25  ;;  %v6059_v25 = vpack.c.bf16 %v4856_v17, %v4852_v7  ;;  %v4893_v17 = vld [vmem:[%s9412_s2 + $0x2b8] sm:$0xff] }
 0x735   :  { %v2109_v8 = vadd.f32 1.0, %v6865_v14  ;;  %v6867_v21 = vpop.eup %6866  ;;  %v4827_v14 = vld [vmem:[%s9411_s1 + $0x2c0] sm:$0xff] }
 0x736   :  { %6870 = vrcp.f32 %v2103_v18  ;;  %v6869_v24 = vpop.eup %6868  ;;  %v2116_v58 = vadd.f32 1.0, %v6867_v21  ;;  %v4831_v18 = vld [vmem:[%s9411_s1 + $0x2e0] sm:$0xff]  ;;  %v6079_v21 = vpack.c.bf16 %v4834_v23, %v4830_v15  ;;  %v4860_v15 = vld [vmem:[%s9411_s1 + $0x3c8] sm:$0xff] }
 0x737   :  { %6872 = vrcp.f32 %v2109_v8  ;;  %v6047_v8 = vpack.c.bf16 %v4832_v52, %v4828_v45  ;;  %v6049_v30 = vpack.c.bf16 %v4831_v18, %v4827_v14  ;;  %v4853_v45 = vld [vmem:[%s9411_s1 + $0x390] sm:$0xff]  ;;  %v4864_v23 = vld [vmem:[%s9411_s1 + $0x3e8] sm:$0xff] }
 0x738   :  { %6874 = vrcp.f32 %v2116_v58  ;;  %v4838_v58 = vld [vmem:[%s9411_s1 + $0x318] sm:$0xff]  ;;  %v4857_v52 = vld [vmem:[%s9411_s1 + $0x3b0] sm:$0xff] }
 0x739   :  { %v6093_v18 = vpack.c.bf16 %v4857_v52, %v4853_v45  ;;  %v4899_v45 = vld [vmem:[%s9412_s2 + $0x2e8] sm:$0xff]  ;;  %v4897_v52 = vld [vmem:[%s9412_s2 + $0x2d8] sm:$0xff] }
 0x740   :  { %v6871_v41 = vpop.eup %6870 }
 0x741   :  { %v6873_v12 = vpop.eup %6872  ;;  %v2121_v44 = vmul.f32 %v6871_v41, %v6869_v24  ;;  %v4829_v24 = vld [vmem:[%s9411_s1 + $0x2d0] sm:$0xff] }
 0x742   :  { %v2120_v62 = vmul.f32 %v6873_v12, %v8147_v59  ;;  %v4809_v59 = vld [vmem:[%s9411_s1 + $0x230] sm:$0xff]  ;;  %v6875_v56 = vpop.eup %6874  ;;  %v4836_v12 = vld [vmem:[%s9411_s1 + $0x308] sm:$0xff] }
 0x743   :  { %v6069_v11 = vpack.c.bf16 %v4809_v59, %v4805_v47  ;;  %v4833_v41 = vld [vmem:[%s9411_s1 + $0x2f0] sm:$0xff]  ;;  %v4835_v47 = vld [vmem:[%s9411_s1 + $0x300] sm:$0xff] }
 0x744   :  { %v8265_v9 = vadd.f32 %v2121_v44, %v2120_v62  ;;  %v4840_v44 = vld [vmem:[%s9411_s1 + $0x328] sm:$0xff]  ;;  %v4842_v62 = vld [vmem:[%s9411_s1 + $0x338] sm:$0xff]  ;;  %v6081_v27 = vpack.c.bf16 %v4833_v41, %v4829_v24  ;;  %v4839_v59 = vld [vmem:[%s9411_s1 + $0x320] sm:$0xff] }
 0x745   :  { %v6051_v53 = vpack.c.bf16 %v4840_v44, %v4836_v12  ;;  %v6083_v2 = vpack.c.bf16 %v4842_v62, %v4838_v58  ;;  %v6053_v29 = vpack.c.bf16 %v4839_v59, %v4835_v47  ;;  %v4863_v41 = vld [vmem:[%s9411_s1 + $0x3e0] sm:$0xff]  ;;  %v4861_v12 = vld [vmem:[%s9411_s1 + $0x3d0] sm:$0xff] }
 0x746   :  { %6876 = vtanh.f32 %v8265_v9  ;;  %v4865_v44 = vld [vmem:[%s9411_s1 + $0x3f0] sm:$0xff] }
 0x747   :  { %v6097_v62 = vpack.c.bf16 %v4865_v44, %v4861_v12  ;;  %v4872_v47 = vld [vmem:[%s9412_s2 + $0x210] sm:$0xff]  ;;  %v4907_v12 = vld [vmem:[%s9412_s2 + $0x328] sm:$0xff]  ;;  %v4905_v44 = vld [vmem:[%s9412_s2 + $0x318] sm:$0xff] }
 0x748   :  { %v4876_v59 = vld [vmem:[%s9412_s2 + $0x230] sm:$0xff] }
 0x750   :  { %v6877_v28 = vpop.eup %6876 }
 0x751   :  { %v8298_v60 = vmul.f32 %v6877_v28, %v6875_v56  ;;  %v4844_v56 = vld [vmem:[%s9411_s1 + $0x348] sm:$0xff] }
 0x752   :  { %v4848_v28 = vld [vmem:[%s9411_s1 + $0x368] sm:$0xff] }
 0x753   :  { %2266 = vmatmul.mubr.f32.vlgmr.msra.gmra.mrb[14].mxu0 %v8298_v60  ;;  %2337 = vmatmul.mubr.f32.vlgmr.msra.gmra.mrb[14].mxu1 %v8298_v60  ;;  %v6055_v51 = vpack.c.bf16 %v4848_v28, %v4844_v56  ;;  %v4885_v28 = vld [vmem:[%s9412_s2 + $0x278] sm:$0xff] }
 0x754   :  { %6038 = vmatpush1.bf16.msra.mxu0 %v6037_v16  ;;  %6070 = vmatpush1.bf16.msra.mxu1 %v6069_v11  ;;  %v4846_v16 = vld [vmem:[%s9411_s1 + $0x358] sm:$0xff] }
 0x755   :  { %6040 = vmatprep.subr.bf16.mxu0 %v6039_v10  ;;  %6072 = vmatprep.subr.bf16.mxu1 %v6071_v49  ;;  %v4850_v11 = vld [vmem:[%s9411_s1 + $0x378] sm:$0xff]  ;;  %v4843_v10 = vld [vmem:[%s9411_s1 + $0x340] sm:$0xff] }
 0x756   :  { %2536 = vmatprep.mubr.f32.mxu0 %v7022_v3  ;;  %2649 = vmatprep.mubr.f32.mxu1 %v7022_v3  ;;  %v4847_v49 = vld [vmem:[%s9411_s1 + $0x360] sm:$0xff]  ;;  %v6087_v0 = vpack.c.bf16 %v4850_v11, %v4846_v16 }
 0x757   :  { %v6057_v36 = vpack.c.bf16 %v4847_v49, %v4843_v10  ;;  %v4878_v16 = vld [vmem:[%s9412_s2 + $0x240] sm:$0xff]  ;;  %v4880_v10 = vld [vmem:[%s9412_s2 + $0x250] sm:$0xff] }
 0x758   :  { %6042 = vmatpush1.bf16.msra.mxu0 %v6041_v19  ;;  %6074 = vmatpush1.bf16.msra.mxu1 %v6073_v32  ;;  %v4854_v19 = vld [vmem:[%s9411_s1 + $0x398] sm:$0xff]  ;;  %v4882_v11 = vld [vmem:[%s9412_s2 + $0x260] sm:$0xff]  ;;  %v4884_v49 = vld [vmem:[%s9412_s2 + $0x270] sm:$0xff] }
 0x759   :  { %6044 = vmatprep.subr.bf16.mxu0 %v6043_v4  ;;  %6076 = vmatprep.subr.bf16.mxu1 %v6075_v22  ;;  %v4858_v32 = vld [vmem:[%s9411_s1 + $0x3b8] sm:$0xff]  ;;  %v4851_v4 = vld [vmem:[%s9411_s1 + $0x380] sm:$0xff] }
 0x75a   :  { %v4855_v22 = vld [vmem:[%s9411_s1 + $0x3a0] sm:$0xff]  ;;  %v6091_v63 = vpack.c.bf16 %v4858_v32, %v4854_v19 }
 0x75b   :  { %v6061_v14 = vpack.c.bf16 %v4855_v22, %v4851_v4  ;;  %v4886_v19 = vld [vmem:[%s9412_s2 + $0x280] sm:$0xff]  ;;  %v4888_v4 = vld [vmem:[%s9412_s2 + $0x290] sm:$0xff] }
 0x75c   :  { %6046 = vmatpush1.bf16.msra.mxu0 %v6045_v26  ;;  %6078 = vmatpush1.bf16.msra.mxu1 %v6077_v54  ;;  %v4862_v26 = vld [vmem:[%s9411_s1 + $0x3d8] sm:$0xff]  ;;  %v4890_v32 = vld [vmem:[%s9412_s2 + $0x2a0] sm:$0xff]  ;;  %v4892_v22 = vld [vmem:[%s9412_s2 + $0x2b0] sm:$0xff] }
 0x75d   :  { %6048 = vmatprep.subr.bf16.mxu0 %v6047_v8  ;;  %6080 = vmatprep.subr.bf16.mxu1 %v6079_v21  ;;  %v4866_v54 = vld [vmem:[%s9411_s1 + $0x3f8] sm:$0xff]  ;;  %v4859_v8 = vld [vmem:[%s9411_s1 + $0x3c0] sm:$0xff]  ;;  %v6063_v21 = vpack.c.bf16 %v4864_v23, %v4860_v15 }
 0x75e   :  { %v6095_v24 = vpack.c.bf16 %v4866_v54, %v4862_v26  ;;  %v6065_v58 = vpack.c.bf16 %v4863_v41, %v4859_v8  ;;  %v4901_v23 = vld [vmem:[%s9412_s2 + $0x2f8] sm:$0xff]  ;;  %v4894_v26 = vld [vmem:[%s9412_s2 + $0x2c0] sm:$0xff]  ;;  %v4896_v8 = vld [vmem:[%s9412_s2 + $0x2d0] sm:$0xff] }
 0x75f   :  { %v4898_v54 = vld [vmem:[%s9412_s2 + $0x2e0] sm:$0xff] }
 0x760   :  { %6050 = vmatpush1.bf16.msra.mxu0 %v6049_v30  ;;  %6082 = vmatpush1.bf16.msra.mxu1 %v6081_v27 }
 0x761   :  { %6052 = vmatprep.subr.bf16.mxu0 %v6051_v53  ;;  %6084 = vmatprep.subr.bf16.mxu1 %v6083_v2  ;;  %v8513_v53 = vpack.c.bf16 %v4876_v59, %v4872_v47  ;;  %v4879_v2 = vld [vmem:[%s9412_s2 + $0x248] sm:$0xff] }
 0x762   :  { %v8527_v56 = vpack.c.bf16 %v4883_v13, %v4879_v2  ;;  %v4911_v47 = vld [vmem:[%s9412_s2 + $0x348] sm:$0xff] }
 0x763   :  { %v4915_v59 = vld [vmem:[%s9412_s2 + $0x368] sm:$0xff] }
 0x764   :  { %6054 = vmatpush1.bf16.msra.mxu0 %v6053_v29  ;;  %6086 = vmatpush1.bf16.msra.mxu1 %v6085_v50  ;;  %v8538_v29 = vpack.c.bf16 %v4885_v28, %v4881_v42  ;;  %v8540_v50 = vpack.c.bf16 %v4882_v11, %v4878_v16  ;;  %v8666_v13 = vpack.c.bf16 %v4915_v59, %v4911_v47  ;;  %v4913_v42 = vld [vmem:[%s9412_s2 + $0x358] sm:$0xff]  ;;  %v4910_v16 = vld [vmem:[%s9412_s2 + $0x340] sm:$0xff]  ;;  %v4928_v47 = vld [vmem:[%s9412_s2 + $0x3d0] sm:$0xff] }
 0x765   :  { %6056 = vmatprep.subr.bf16.mxu0 %v6055_v51  ;;  %6088 = vmatprep.subr.bf16.mxu1 %v6087_v0  ;;  %v8549_v51 = vpack.c.bf16 %v4884_v49, %v4880_v10  ;;  %v4887_v0 = vld [vmem:[%s9412_s2 + $0x288] sm:$0xff]  ;;  %v4917_v28 = vld [vmem:[%s9412_s2 + $0x378] sm:$0xff]  ;;  %v4914_v10 = vld [vmem:[%s9412_s2 + $0x360] sm:$0xff] }
 0x766   :  { %v8563_v7 = vpack.c.bf16 %v4891_v46, %v4887_v0  ;;  %v8677_v11 = vpack.c.bf16 %v4917_v28, %v4913_v42  ;;  %v4912_v49 = vld [vmem:[%s9412_s2 + $0x350] sm:$0xff]  ;;  %v8689_v46 = vpack.c.bf16 %v4914_v10, %v4910_v16 }
 0x767   :  { %v4916_v0 = vld [vmem:[%s9412_s2 + $0x370] sm:$0xff] }
 0x768   :  { %6058 = vmatpush1.bf16.msra.mxu0 %v6057_v36  ;;  %6090 = vmatpush1.bf16.msra.mxu1 %v6089_v48  ;;  %v8574_v36 = vpack.c.bf16 %v4893_v17, %v4889_v5  ;;  %v8576_v48 = vpack.c.bf16 %v4890_v32, %v4886_v19  ;;  %v4919_v5 = vld [vmem:[%s9412_s2 + $0x388] sm:$0xff]  ;;  %v4921_v19 = vld [vmem:[%s9412_s2 + $0x398] sm:$0xff]  ;;  %v8702_v32 = vpack.c.bf16 %v4916_v0, %v4912_v49  ;;  %v4932_v59 = vld [vmem:[%s9412_s2 + $0x3f0] sm:$0xff] }
 0x769   :  { %6060 = vmatprep.subr.bf16.mxu0 %v6059_v25  ;;  %6092 = vmatprep.subr.bf16.mxu1 %v6091_v63  ;;  %v8585_v25 = vpack.c.bf16 %v4892_v22, %v4888_v4  ;;  %v4895_v63 = vld [vmem:[%s9412_s2 + $0x2c8] sm:$0xff]  ;;  %v4925_v22 = vld [vmem:[%s9412_s2 + $0x3b8] sm:$0xff]  ;;  %v8765_v42 = vpack.c.bf16 %v4932_v59, %v4928_v47 }
 0x76a   :  { %v8599_v15 = vpack.c.bf16 %v4899_v45, %v4895_v63  ;;  %v4923_v17 = vld [vmem:[%s9412_s2 + $0x3a8] sm:$0xff]  ;;  %v4918_v63 = vld [vmem:[%s9412_s2 + $0x380] sm:$0xff] }
 0x76b   :  { %v8704_v4 = vpack.c.bf16 %v4923_v17, %v4919_v5  ;;  %v4922_v45 = vld [vmem:[%s9412_s2 + $0x3a0] sm:$0xff] }
 0x76c   :  { %6062 = vmatpush1.bf16.msra.mxu0 %v6061_v14  ;;  %6094 = vmatpush1.bf16.msra.mxu1 %v6093_v18  ;;  %v8610_v14 = vpack.c.bf16 %v4901_v23, %v4897_v52  ;;  %v8612_v18 = vpack.c.bf16 %v4898_v54, %v4894_v26  ;;  %v8716_v52 = vpack.c.bf16 %v4925_v22, %v4921_v19  ;;  %v4920_v23 = vld [vmem:[%s9412_s2 + $0x390] sm:$0xff] }
 0x76d   :  { %6064 = vmatprep.subr.bf16.mxu0 %v6063_v21  ;;  %6096 = vmatprep.subr.bf16.mxu1 %v6095_v24  ;;  %v4900_v21 = vld [vmem:[%s9412_s2 + $0x2f0] sm:$0xff]  ;;  %v4903_v24 = vld [vmem:[%s9412_s2 + $0x308] sm:$0xff]  ;;  %v8725_v54 = vpack.c.bf16 %v4922_v45, %v4918_v63 }
 0x76e   :  { %v8624_v41 = vpack.c.bf16 %v4900_v21, %v4896_v8  ;;  %v4924_v26 = vld [vmem:[%s9412_s2 + $0x3b0] sm:$0xff]  ;;  %v4927_v21 = vld [vmem:[%s9412_s2 + $0x3c8] sm:$0xff] }
 0x76f   :  { %v8729_v8 = vpack.c.bf16 %v4924_v26, %v4920_v23 }
 0x770   :  { %6066 = vmatpush1.bf16.msra.mxu0 %v6065_v58  ;;  %6098 = vmatpush1.bf16.msra.mxu1 %v6097_v62  ;;  %v4909_v58 = vld [vmem:[%s9412_s2 + $0x338] sm:$0xff]  ;;  %v8637_v62 = vpack.c.bf16 %v4907_v12, %v4903_v24  ;;  %v4931_v24 = vld [vmem:[%s9412_s2 + $0x3e8] sm:$0xff] }
 0x771   :  { %v4929_v12 = vld [vmem:[%s9412_s2 + $0x3d8] sm:$0xff] }
 0x773   :  { %2537 = vmatmul.mubr.f32.vlgmr.msra.gmra.mrb[16].mxu0 %v7666_v43  ;;  %2650 = vmatmul.mubr.f32.vlgmr.msra.gmra.mrb[16].mxu1 %v7666_v43  ;;  %v4871_v43 = vld [vmem:[%s9412_s2 + $0x208] sm:$0xff] }
 0x774   :  { %2542 = vmatprep.mubr.f32.mxu0 %v7022_v3  ;;  %2655 = vmatprep.mubr.f32.mxu1 %v7022_v3 }
 0x777   :  { %2543 = vmatmul.mubr.f32.gmra.mrb[18].mxu0 %v7710_v20  ;;  %2656 = vmatmul.mubr.f32.gmra.mrb[18].mxu1 %v7710_v20  ;;  %v4875_v20 = vld [vmem:[%s9412_s2 + $0x228] sm:$0xff] }
 0x778   :  { %2548 = vmatprep.mubr.f32.mxu0 %v7022_v3  ;;  %2661 = vmatprep.mubr.f32.mxu1 %v7022_v3 }
 0x77b   :  { %2549 = vmatmul.mubr.f32.gmra.mrb[20].mxu0 %v7854_v6  ;;  %2662 = vmatmul.mubr.f32.gmra.mrb[20].mxu1 %v7854_v6  ;;  %v4873_v6 = vld [vmem:[%s9412_s2 + $0x218] sm:$0xff] }
 0x77c   :  { %2554 = vmatprep.mubr.f32.mxu0 %v7022_v3  ;;  %2667 = vmatprep.mubr.f32.mxu1 %v7022_v3 }
 0x77f   :  { %2555 = vmatmul.mubr.f32.gmra.mrb[22].mxu0 %v8060_v1  ;;  %2668 = vmatmul.mubr.f32.gmra.mrb[22].mxu1 %v8060_v1  ;;  %v8491_v1 = vpack.c.bf16 %v4875_v20, %v4871_v43  ;;  %v8639_v43 = vpack.c.bf16 %v4909_v58, %v4905_v44  ;;  %v4902_v20 = vld [vmem:[%s9412_s2 + $0x300] sm:$0xff]  ;;  %v8743_v44 = vpack.c.bf16 %v4931_v24, %v4927_v21  ;;  %v4933_v58 = vld [vmem:[%s9412_s2 + $0x3f8] sm:$0xff] }
 0x780   :  { %2560 = vmatprep.mubr.f32.mxu0 %v7022_v3  ;;  %2673 = vmatprep.mubr.f32.mxu1 %v7022_v3 }
 0x781   :  { %6100 = vmatprep.subr.bf16.mxu0 %v8491_v1 }
 0x783   :  { %2561 = vmatmul.mubr.f32.gmra.mrb[24].mxu0 %v8106_v40  ;;  %2674 = vmatmul.mubr.f32.gmra.mrb[24].mxu1 %v8106_v40  ;;  %v4877_v40 = vld [vmem:[%s9412_s2 + $0x238] sm:$0xff] }
 0x784   :  { %2566 = vmatprep.mubr.f32.mxu0 %v7022_v3  ;;  %2679 = vmatprep.mubr.f32.mxu1 %v7022_v3  ;;  %v8502_v30 = vpack.c.bf16 %v4877_v40, %v4873_v6  ;;  %v4906_v6 = vld [vmem:[%s9412_s2 + $0x320] sm:$0xff]  ;;  %v4904_v40 = vld [vmem:[%s9412_s2 + $0x310] sm:$0xff] }
 0x786   :  { %6132 = vmatprep.subr.bf16.mxu1 %v8502_v30 }
 0x787   :  { %2567 = vmatmul.mubr.f32.gmra.mrb[26].mxu0 %v8150_v34  ;;  %2680 = vmatmul.mubr.f32.gmra.mrb[26].mxu1 %v8150_v34  ;;  %v4870_v34 = vld [vmem:[%s9412_s2 + $0x200] sm:$0xff] }
 0x788   :  { %2572 = vmatprep.mubr.f32.mxu0 %v7022_v3  ;;  %2685 = vmatprep.mubr.f32.mxu1 %v7022_v3 }
 0x789   :  { %6134 = vmatpush1.bf16.msra.mxu1 %v8513_v53 }
 0x78a   :  { %6136 = vmatprep.subr.bf16.mxu1 %v8538_v29 }
 0x78b   :  { %2573 = vmatmul.mubr.f32.gmra.mrb[28].mxu0 %v8298_v60  ;;  %2686 = vmatmul.mubr.f32.gmra.mrb[28].mxu1 %v8298_v60  ;;  %v4874_v60 = vld [vmem:[%s9412_s2 + $0x220] sm:$0xff] }
 0x78c   :  { %2578 = vmatprep.mubr.f32.mxu0 %v7022_v3  ;;  %2691 = vmatprep.mubr.f32.mxu1 %v7022_v3  ;;  %v8504_v27 = vpack.c.bf16 %v4874_v60, %v4870_v34  ;;  %v8651_v34 = vpack.c.bf16 %v4906_v6, %v4902_v20  ;;  %v4908_v60 = vld [vmem:[%s9412_s2 + $0x330] sm:$0xff]  ;;  %v4926_v20 = vld [vmem:[%s9412_s2 + $0x3c0] sm:$0xff] }
 0x78d   :  { %6138 = vmatpush1.bf16.msra.mxu1 %v8549_v51  ;;  %v8664_v2 = vpack.c.bf16 %v4908_v60, %v4904_v40  ;;  %v4930_v6 = vld [vmem:[%s9412_s2 + $0x3e0] sm:$0xff]  ;;  %v8754_v40 = vpack.c.bf16 %v4933_v58, %v4929_v12 }
 0x78e   :  { %6102 = vmatpush1.bf16.msra.mxu0 %v8504_v27  ;;  %6140 = vmatprep.subr.bf16.mxu1 %v8574_v36  ;;  %v8756_v60 = vpack.c.bf16 %v4930_v6, %v4926_v20 }
 0x78f   :  { %6104 = vmatprep.subr.bf16.mxu0 %v8527_v56 }
 0x791   :  { %6142 = vmatpush1.bf16.msra.mxu1 %v8585_v25 }
 0x792   :  { %6106 = vmatpush1.bf16.msra.mxu0 %v8540_v50  ;;  %6144 = vmatprep.subr.bf16.mxu1 %v8610_v14 }
 0x793   :  { %6108 = vmatprep.subr.bf16.mxu0 %v8563_v7 }
 0x795   :  { %6146 = vmatpush1.bf16.msra.mxu1 %v8624_v41 }
 0x796   :  { %6110 = vmatpush1.bf16.msra.mxu0 %v8576_v48  ;;  %6148 = vmatprep.subr.bf16.mxu1 %v8639_v43 }
 0x797   :  { %6112 = vmatprep.subr.bf16.mxu0 %v8599_v15 }
 0x799   :  { %6150 = vmatpush1.bf16.msra.mxu1 %v8664_v2 }
 0x79a   :  { %6114 = vmatpush1.bf16.msra.mxu0 %v8612_v18  ;;  %6152 = vmatprep.subr.bf16.mxu1 %v8677_v11 }
 0x79b   :  { %6116 = vmatprep.subr.bf16.mxu0 %v8637_v62 }
 0x79d   :  { %6154 = vmatpush1.bf16.msra.mxu1 %v8702_v32 }
 0x79e   :  { %6118 = vmatpush1.bf16.msra.mxu0 %v8651_v34  ;;  %6156 = vmatprep.subr.bf16.mxu1 %v8716_v52 }
 0x79f   :  { %6120 = vmatprep.subr.bf16.mxu0 %v8666_v13 }
 0x7a1   :  { %6158 = vmatpush1.bf16.msra.mxu1 %v8729_v8 }
 0x7a2   :  { %6122 = vmatpush1.bf16.msra.mxu0 %v8689_v46  ;;  %6160 = vmatprep.subr.bf16.mxu1 %v8754_v40 }
 0x7a3   :  { %6124 = vmatprep.subr.bf16.mxu0 %v8704_v4 }
 0x7a5   :  { %6162 = vmatpush1.bf16.msra.mxu1 %v8765_v42 }
 0x7a6   :  { %6126 = vmatpush1.bf16.msra.mxu0 %v8725_v54  ;;  %6196 = vmatprep.subr.bf16.mxu1 %v8502_v30 }
 0x7a7   :  { %6128 = vmatprep.subr.bf16.mxu0 %v8743_v44 }
 0x7aa   :  { %6130 = vmatpush1.bf16.msra.mxu0 %v8756_v60 }
 0x7ab   :  { %6164 = vmatprep.subr.bf16.mxu0 %v8491_v1 }
 0x826   :  { %v2267_v28 = vpop.f32.mrb[14].mxu0  ;;  %v2338_v16 = vpop.f32.mrb[14].mxu1 }
 0x827   :  { %v6649_v10 = vadd.f32 %v2267_v28, %v7640_v37  ;;  %v2269_v49 = vpop.f32.mrb[15].mxu0  ;;  %v2340_v0 = vpop.f32.mrb[15].mxu1  ;;  %v6665_v45 = vadd.f32 %v2338_v16, %v7657_v61  ;;  %v4868_v16 = vld [vmem:[%s9414_s4 + $0x8] sm:$0xff] }
 0x828   :  { %v6650_v5 = vadd.f32 %v2269_v49, %v7644_v38  ;;  %v6666_v22 = vadd.f32 %v2340_v0, %v7651_v55 }
 0x829   :  { %v4800_v17 = vmul.f32 -1.442695, %v6649_v10 }
 0x82a   :  { %v4801_v19 = vmul.f32 -1.442695, %v6650_v5  ;;  %v4802_v63 = vmul.f32 -1.442695, %v6666_v22 }
 0x82b   :  { %6878 = vpow2.f32 %v4800_v17 }
 0x82c   :  { %6880 = vpow2.f32 %v4801_v19 }
 0x82d   :  { %6882 = vpow2.f32 %v4802_v63 }
 0x82e   :  { %6884 = vtanh.f32 %v6665_v45 }
 0x835   :  { %v6879_v23 = vpop.eup %6878 }
 0x836   :  { %v6881_v26 = vpop.eup %6880  ;;  %v2350_v21 = vadd.f32 1.0, %v6879_v23 }
 0x837   :  { %v2356_v24 = vadd.f32 1.0, %v6881_v26  ;;  %v6883_v37 = vpop.eup %6882 }
 0x838   :  { %6886 = vrcp.f32 %v2350_v21  ;;  %v6885_v12 = vpop.eup %6884  ;;  %v2363_v6 = vadd.f32 1.0, %v6883_v37 }
 0x839   :  { %6888 = vrcp.f32 %v2356_v24 }
 0x83a   :  { %6890 = vrcp.f32 %v2363_v6  ;;  %v4869_v6 = vld [vmem:[%s9416_s5 + $0x8] sm:$0xff] }
 0x842   :  { %v6887_v38 = vpop.eup %6886 }
 0x843   :  { %v6889_v58 = vpop.eup %6888  ;;  %v2368_v20 = vmul.f32 %v6887_v38, %v6885_v12 }
 0x844   :  { %v2367_v47 = vmul.f32 %v6889_v58, %v8265_v9  ;;  %v6891_v61 = vpop.eup %6890  ;;  %v4867_v9 = vld [vmem:[%s9415_s3 + $0x4] sm:$0xf] }
 0x845   :  { %v8821_v10 = vrot.slane %v4867_v9, %v121_v33  ;;  %v8825_v49 = vrot.slane %v4867_v9, %v125_v35  ;;  %v8831_v26 = vrot.slane %v4867_v9, %v133_v39  ;;  %v8836_v35 = vrot.slane %v4867_v9, %v129_v57 }
 0x846   :  { %v2369_v55 = vadd.f32 %v2368_v20, %v2367_v47 }
 0x848   :  { %6892 = vtanh.f32 %v2369_v55 }
 0x852   :  { %v6893_v59 = vpop.eup %6892 }
 0x853   :  { %v2371_v28 = vmul.f32 %v6893_v59, %v6891_v61 }
 0x855   :  { %2579 = vmatmul.mubr.f32.gmra.mrb[30].mxu0 %v2371_v28  ;;  %2692 = vmatmul.mubr.f32.gmra.mrb[30].mxu1 %v2371_v28 }
 0x856   :  { %2870 = vmatprep.mubr.f32.mxu0 %v7022_v3  ;;  %2941 = vmatprep.mubr.f32.mxu1 %v7022_v3 }
 0x859   :  { %2871 = vmatmul.mubr.f32.vlgmr.msra.gmra.mrb[16].mxu0 %v4868_v16  ;;  %2942 = vmatmul.mubr.f32.vlgmr.msra.gmra.mrb[16].mxu1 %v4868_v16 }
 0x85a   :  { %6166 = vmatpush1.bf16.msra.mxu0 %v8504_v27  ;;  %6198 = vmatpush1.bf16.msra.mxu1 %v8513_v53 }
 0x85b   :  { %6168 = vmatprep.subr.bf16.mxu0 %v8527_v56  ;;  %6200 = vmatprep.subr.bf16.mxu1 %v8538_v29 }
 0x85c   :  { %3112 = vmatprep.mubr.f32.mxu0 %v7022_v3  ;;  %3183 = vmatprep.mubr.f32.mxu1 %v7022_v3 }
 0x85e   :  { %6170 = vmatpush1.bf16.msra.mxu0 %v8540_v50  ;;  %6202 = vmatpush1.bf16.msra.mxu1 %v8549_v51 }
 0x85f   :  { %6172 = vmatprep.subr.bf16.mxu0 %v8563_v7  ;;  %6204 = vmatprep.subr.bf16.mxu1 %v8574_v36 }
 0x862   :  { %6174 = vmatpush1.bf16.msra.mxu0 %v8576_v48  ;;  %6206 = vmatpush1.bf16.msra.mxu1 %v8585_v25 }
 0x863   :  { %6176 = vmatprep.subr.bf16.mxu0 %v8599_v15  ;;  %6208 = vmatprep.subr.bf16.mxu1 %v8610_v14 }
 0x866   :  { %6178 = vmatpush1.bf16.msra.mxu0 %v8612_v18  ;;  %6210 = vmatpush1.bf16.msra.mxu1 %v8624_v41 }
 0x867   :  { %6180 = vmatprep.subr.bf16.mxu0 %v8637_v62  ;;  %6212 = vmatprep.subr.bf16.mxu1 %v8639_v43 }
 0x86a   :  { %6182 = vmatpush1.bf16.msra.mxu0 %v8651_v34  ;;  %6214 = vmatpush1.bf16.msra.mxu1 %v8664_v2 }
 0x86b   :  { %6184 = vmatprep.subr.bf16.mxu0 %v8666_v13  ;;  %6216 = vmatprep.subr.bf16.mxu1 %v8677_v11 }
 0x86e   :  { %6186 = vmatpush1.bf16.msra.mxu0 %v8689_v46  ;;  %6218 = vmatpush1.bf16.msra.mxu1 %v8702_v32 }
 0x86f   :  { %6188 = vmatprep.subr.bf16.mxu0 %v8704_v4  ;;  %6220 = vmatprep.subr.bf16.mxu1 %v8716_v52 }
 0x872   :  { %6190 = vmatpush1.bf16.msra.mxu0 %v8725_v54  ;;  %6222 = vmatpush1.bf16.msra.mxu1 %v8729_v8 }
 0x873   :  { %6192 = vmatprep.subr.bf16.mxu0 %v8743_v44  ;;  %6224 = vmatprep.subr.bf16.mxu1 %v8754_v40 }
 0x876   :  { %6194 = vmatpush1.bf16.msra.mxu0 %v8756_v60  ;;  %6226 = vmatpush1.bf16.msra.mxu1 %v8765_v42 }
 0x877   :  { %6228 = vmatprep.subr.bf16.mxu0 %v8491_v1  ;;  %6260 = vmatprep.subr.bf16.mxu1 %v8502_v30 }
 0x92c   :  { %v2872_v0 = vpop.f32.mrb[16].mxu0  ;;  %v2943_v5 = vpop.f32.mrb[16].mxu1 }
 0x92d   :  { %v6667_v17 = vadd.f32 %v2872_v0, %v8821_v10  ;;  %v2874_v19 = vpop.f32.mrb[17].mxu0  ;;  %v2945_v22 = vpop.f32.mrb[17].mxu1  ;;  %v6683_v24 = vadd.f32 %v2943_v5, %v8836_v35 }
 0x92e   :  { %v6668_v63 = vadd.f32 %v2874_v19, %v8825_v49  ;;  %v6684_v33 = vadd.f32 %v2945_v22, %v8831_v26 }
 0x92f   :  { %v4934_v45 = vmul.f32 -1.442695, %v6667_v17 }
 0x930   :  { %v4935_v23 = vmul.f32 -1.442695, %v6668_v63  ;;  %v4936_v21 = vmul.f32 -1.442695, %v6684_v33 }
 0x931   :  { %6894 = vpow2.f32 %v4934_v45 }
 0x932   :  { %6896 = vpow2.f32 %v4935_v23 }
 0x933   :  { %6898 = vpow2.f32 %v4936_v21 }
 0x934   :  { %6900 = vtanh.f32 %v6683_v24 }
 0x93b   :  { %v6895_v37 = vpop.eup %6894 }
 0x93c   :  { %v6897_v12 = vpop.eup %6896  ;;  %v2955_v38 = vadd.f32 1.0, %v6895_v37 }
 0x93d   :  { %v2961_v58 = vadd.f32 1.0, %v6897_v12  ;;  %v6899_v39 = vpop.eup %6898 }
 0x93e   :  { %6902 = vrcp.f32 %v2955_v38  ;;  %v6901_v20 = vpop.eup %6900  ;;  %v2968_v55 = vadd.f32 1.0, %v6899_v39 }
 0x93f   :  { %6904 = vrcp.f32 %v2961_v58 }
 0x940   :  { %6906 = vrcp.f32 %v2968_v55 }
 0x948   :  { %v6903_v31 = vpop.eup %6902 }
 0x949   :  { %v6905_v57 = vpop.eup %6904  ;;  %v2973_v47 = vmul.f32 %v6903_v31, %v6901_v20 }
 0x94a   :  { %v2972_v61 = vmul.f32 %v6905_v57, %v4869_v6  ;;  %v6907_v28 = vpop.eup %6906 }
 0x94c   :  { %v8842_v59 = vadd.f32 %v2973_v47, %v2972_v61 }
 0x94e   :  { %6908 = vtanh.f32 %v8842_v59 }
 0x958   :  { %v6909_v16 = vpop.eup %6908 }
 0x959   :  { %v2976_v9 = vmul.f32 %v6909_v16, %v6907_v28  ;;  %v5138_v16 = vld [vmem:[%s9412_s2 + $0x200] sm:$0xff] }
 0x95b   :  { %3113 = vmatmul.mubr.f32.vlgmr.msra.gmra.mrb[18].mxu0 %v2976_v9  ;;  %3184 = vmatmul.mubr.f32.vlgmr.msra.gmra.mrb[18].mxu1 %v2976_v9  ;;  %v5142_v9 = vld [vmem:[%s9412_s2 + $0x220] sm:$0xff] }
 0x95c   :  { %6230 = vmatpush1.bf16.msra.mxu0 %v8504_v27  ;;  %6262 = vmatpush1.bf16.msra.mxu1 %v8513_v53 }
 0x95d   :  { %6232 = vmatprep.subr.bf16.mxu0 %v8527_v56  ;;  %6264 = vmatprep.subr.bf16.mxu1 %v8538_v29 }
 0x95e   :  { %3354 = vmatprep.mubr.f32.mxu0 %v7022_v3  ;;  %3425 = vmatprep.mubr.f32.mxu1 %v7022_v3 }
 0x960   :  { %6234 = vmatpush1.bf16.msra.mxu0 %v8540_v50  ;;  %6266 = vmatpush1.bf16.msra.mxu1 %v8549_v51 }
 0x961   :  { %6236 = vmatprep.subr.bf16.mxu0 %v8563_v7  ;;  %6268 = vmatprep.subr.bf16.mxu1 %v8574_v36 }
 0x964   :  { %6238 = vmatpush1.bf16.msra.mxu0 %v8576_v48  ;;  %6270 = vmatpush1.bf16.msra.mxu1 %v8585_v25 }
 0x965   :  { %6240 = vmatprep.subr.bf16.mxu0 %v8599_v15  ;;  %6272 = vmatprep.subr.bf16.mxu1 %v8610_v14 }
 0x968   :  { %6242 = vmatpush1.bf16.msra.mxu0 %v8612_v18  ;;  %6274 = vmatpush1.bf16.msra.mxu1 %v8624_v41 }
 0x969   :  { %6244 = vmatprep.subr.bf16.mxu0 %v8637_v62  ;;  %6276 = vmatprep.subr.bf16.mxu1 %v8639_v43 }
 0x96c   :  { %6246 = vmatpush1.bf16.msra.mxu0 %v8651_v34  ;;  %6278 = vmatpush1.bf16.msra.mxu1 %v8664_v2 }
 0x96d   :  { %6248 = vmatprep.subr.bf16.mxu0 %v8666_v13  ;;  %6280 = vmatprep.subr.bf16.mxu1 %v8677_v11 }
 0x970   :  { %6250 = vmatpush1.bf16.msra.mxu0 %v8689_v46  ;;  %6282 = vmatpush1.bf16.msra.mxu1 %v8702_v32 }
 0x971   :  { %6252 = vmatprep.subr.bf16.mxu0 %v8704_v4  ;;  %6284 = vmatprep.subr.bf16.mxu1 %v8716_v52 }
 0x974   :  { %6254 = vmatpush1.bf16.msra.mxu0 %v8725_v54  ;;  %6286 = vmatpush1.bf16.msra.mxu1 %v8729_v8 }
 0x975   :  { %6256 = vmatprep.subr.bf16.mxu0 %v8743_v44  ;;  %6288 = vmatprep.subr.bf16.mxu1 %v8754_v40 }
 0x978   :  { %6258 = vmatpush1.bf16.msra.mxu0 %v8756_v60  ;;  %6290 = vmatpush1.bf16.msra.mxu1 %v8765_v42 }
 0x979   :  { %6292 = vmatprep.subr.bf16.mxu0 %v8491_v1  ;;  %6324 = vmatprep.subr.bf16.mxu1 %v8502_v30 }
 0xa2e   :  { %v3114_v0 = vpop.f32.mrb[18].mxu0  ;;  %v3185_v5 = vpop.f32.mrb[18].mxu1 }
 0xa2f   :  { %v6669_v17 = vadd.f32 %v3114_v0, %v8821_v10  ;;  %v3116_v19 = vpop.f32.mrb[19].mxu0  ;;  %v3187_v22 = vpop.f32.mrb[19].mxu1  ;;  %v6685_v24 = vadd.f32 %v3185_v5, %v8836_v35  ;;  %v8951_v5 = vpack.c.bf16 %v5142_v9, %v5138_v16  ;;  %v5181_v16 = vld [vmem:[%s9412_s2 + $0x358] sm:$0xff] }
 0xa30   :  { %v6670_v63 = vadd.f32 %v3116_v19, %v8825_v49  ;;  %v6686_v33 = vadd.f32 %v3187_v22, %v8831_v26  ;;  %v5144_v19 = vld [vmem:[%s9412_s2 + $0x230] sm:$0xff] }
 0xa31   :  { %v5001_v45 = vmul.f32 -1.442695, %v6669_v17  ;;  %v5140_v17 = vld [vmem:[%s9412_s2 + $0x210] sm:$0xff] }
 0xa32   :  { %v5002_v23 = vmul.f32 -1.442695, %v6670_v63  ;;  %v5003_v21 = vmul.f32 -1.442695, %v6686_v33  ;;  %v8960_v22 = vpack.c.bf16 %v5144_v19, %v5140_v17  ;;  %v5147_v63 = vld [vmem:[%s9412_s2 + $0x248] sm:$0xff]  ;;  %v5185_v17 = vld [vmem:[%s9412_s2 + $0x378] sm:$0xff] }
 0xa33   :  { %6910 = vpow2.f32 %v5001_v45  ;;  %v5151_v45 = vld [vmem:[%s9412_s2 + $0x268] sm:$0xff]  ;;  %v5178_v19 = vld [vmem:[%s9412_s2 + $0x340] sm:$0xff] }
 0xa34   :  { %6912 = vpow2.f32 %v5002_v23  ;;  %v5149_v23 = vld [vmem:[%s9412_s2 + $0x258] sm:$0xff]  ;;  %v8974_v33 = vpack.c.bf16 %v5151_v45, %v5147_v63  ;;  %v5182_v63 = vld [vmem:[%s9412_s2 + $0x360] sm:$0xff]  ;;  %v9129_v45 = vpack.c.bf16 %v5185_v17, %v5181_v16 }
 0xa35   :  { %6914 = vpow2.f32 %v5003_v21  ;;  %v5153_v21 = vld [vmem:[%s9412_s2 + $0x278] sm:$0xff] }
 0xa36   :  { %6916 = vtanh.f32 %v6685_v24  ;;  %v5146_v24 = vld [vmem:[%s9412_s2 + $0x240] sm:$0xff] }
 0xa3d   :  { %v6911_v1 = vpop.eup %6910 }
 0xa3e   :  { %v6913_v37 = vpop.eup %6912  ;;  %v3197_v30 = vadd.f32 1.0, %v6911_v1  ;;  %v5150_v1 = vld [vmem:[%s9412_s2 + $0x260] sm:$0xff] }
 0xa3f   :  { %v3203_v12 = vadd.f32 1.0, %v6913_v37  ;;  %v6915_v38 = vpop.eup %6914  ;;  %v8985_v37 = vpack.c.bf16 %v5153_v21, %v5149_v23  ;;  %v9131_v23 = vpack.c.bf16 %v5182_v63, %v5178_v19  ;;  %v5180_v21 = vld [vmem:[%s9412_s2 + $0x350] sm:$0xff] }
 0xa40   :  { %6918 = vrcp.f32 %v3197_v30  ;;  %v6917_v58 = vpop.eup %6916  ;;  %v3210_v31 = vadd.f32 1.0, %v6915_v38  ;;  %v8987_v30 = vpack.c.bf16 %v5150_v1, %v5146_v24  ;;  %v5152_v38 = vld [vmem:[%s9412_s2 + $0x270] sm:$0xff]  ;;  %v5187_v1 = vld [vmem:[%s9412_s2 + $0x388] sm:$0xff] }
 0xa41   :  { %6920 = vrcp.f32 %v3203_v12  ;;  %v5148_v12 = vld [vmem:[%s9412_s2 + $0x250] sm:$0xff] }
 0xa42   :  { %6922 = vrcp.f32 %v3210_v31  ;;  %v5184_v24 = vld [vmem:[%s9412_s2 + $0x370] sm:$0xff] }
 0xa4a   :  { %v6919_v39 = vpop.eup %6918 }
 0xa4b   :  { %v6921_v20 = vpop.eup %6920  ;;  %v3215_v6 = vmul.f32 %v6919_v39, %v6917_v58  ;;  %v8996_v58 = vpack.c.bf16 %v5152_v38, %v5148_v12  ;;  %v5155_v39 = vld [vmem:[%s9412_s2 + $0x288] sm:$0xff]  ;;  %v9143_v12 = vpack.c.bf16 %v5184_v24, %v5180_v21 }
 0xa4c   :  { %v3214_v57 = vmul.f32 %v6921_v20, %v8842_v59  ;;  %v6923_v55 = vpop.eup %6922  ;;  %v5145_v59 = vld [vmem:[%s9412_s2 + $0x238] sm:$0xff]  ;;  %v5159_v20 = vld [vmem:[%s9412_s2 + $0x2a8] sm:$0xff] }
 0xa4d   :  { %v9010_v31 = vpack.c.bf16 %v5159_v20, %v5155_v39  ;;  %v5191_v38 = vld [vmem:[%s9412_s2 + $0x3a8] sm:$0xff]  ;;  %v5189_v39 = vld [vmem:[%s9412_s2 + $0x398] sm:$0xff] }
 0xa4e   :  { %v8884_v47 = vadd.f32 %v3215_v6, %v3214_v57  ;;  %v5157_v6 = vld [vmem:[%s9412_s2 + $0x298] sm:$0xff] }
 0xa4f   :  { %v5161_v57 = vld [vmem:[%s9412_s2 + $0x2b8] sm:$0xff] }
 0xa50   :  { %6924 = vtanh.f32 %v8884_v47  ;;  %v5193_v20 = vld [vmem:[%s9412_s2 + $0x3b8] sm:$0xff] }
 0xa5a   :  { %v6925_v61 = vpop.eup %6924 }
 0xa5b   :  { %v3218_v28 = vmul.f32 %v6925_v61, %v6923_v55  ;;  %v5158_v55 = vld [vmem:[%s9412_s2 + $0x2a0] sm:$0xff]  ;;  %v9021_v61 = vpack.c.bf16 %v5161_v57, %v5157_v6  ;;  %v9155_v6 = vpack.c.bf16 %v5191_v38, %v5187_v1  ;;  %v9157_v57 = vpack.c.bf16 %v5193_v20, %v5189_v39 }
 0xa5d   :  { %3355 = vmatmul.mubr.f32.vlgmr.msra.gmra.mrb[20].mxu0 %v3218_v28  ;;  %3426 = vmatmul.mubr.f32.vlgmr.msra.gmra.mrb[20].mxu1 %v3218_v28 }
 0xa5e   :  { %6294 = vmatpush1.bf16.msra.mxu0 %v8504_v27  ;;  %6326 = vmatpush1.bf16.msra.mxu1 %v8513_v53 }
 0xa5f   :  { %6296 = vmatprep.subr.bf16.mxu0 %v8527_v56  ;;  %6328 = vmatprep.subr.bf16.mxu1 %v8538_v29 }
 0xa60   :  { %3596 = vmatprep.mubr.f32.mxu0 %v7022_v3  ;;  %3667 = vmatprep.mubr.f32.mxu1 %v7022_v3 }
 0xa62   :  { %6298 = vmatpush1.bf16.msra.mxu0 %v8540_v50  ;;  %6330 = vmatpush1.bf16.msra.mxu1 %v8549_v51 }
 0xa63   :  { %6300 = vmatprep.subr.bf16.mxu0 %v8563_v7  ;;  %6332 = vmatprep.subr.bf16.mxu1 %v8574_v36 }
 0xa66   :  { %6302 = vmatpush1.bf16.msra.mxu0 %v8576_v48  ;;  %6334 = vmatpush1.bf16.msra.mxu1 %v8585_v25 }
 0xa67   :  { %6304 = vmatprep.subr.bf16.mxu0 %v8599_v15  ;;  %6336 = vmatprep.subr.bf16.mxu1 %v8610_v14 }
 0xa6a   :  { %6306 = vmatpush1.bf16.msra.mxu0 %v8612_v18  ;;  %6338 = vmatpush1.bf16.msra.mxu1 %v8624_v41 }
 0xa6b   :  { %6308 = vmatprep.subr.bf16.mxu0 %v8637_v62  ;;  %6340 = vmatprep.subr.bf16.mxu1 %v8639_v43 }
 0xa6e   :  { %6310 = vmatpush1.bf16.msra.mxu0 %v8651_v34  ;;  %6342 = vmatpush1.bf16.msra.mxu1 %v8664_v2 }
 0xa6f   :  { %6312 = vmatprep.subr.bf16.mxu0 %v8666_v13  ;;  %6344 = vmatprep.subr.bf16.mxu1 %v8677_v11 }
 0xa72   :  { %6314 = vmatpush1.bf16.msra.mxu0 %v8689_v46  ;;  %6346 = vmatpush1.bf16.msra.mxu1 %v8702_v32 }
 0xa73   :  { %6316 = vmatprep.subr.bf16.mxu0 %v8704_v4  ;;  %6348 = vmatprep.subr.bf16.mxu1 %v8716_v52 }
 0xa76   :  { %6318 = vmatpush1.bf16.msra.mxu0 %v8725_v54  ;;  %6350 = vmatpush1.bf16.msra.mxu1 %v8729_v8 }
 0xa77   :  { %6320 = vmatprep.subr.bf16.mxu0 %v8743_v44  ;;  %6352 = vmatprep.subr.bf16.mxu1 %v8754_v40  ;;  %v5139_v44 = vld [vmem:[%s9412_s2 + $0x208] sm:$0xff] }
 0xa78   :  { %v5143_v40 = vld [vmem:[%s9412_s2 + $0x228] sm:$0xff] }
 0xa7a   :  { %6322 = vmatpush1.bf16.msra.mxu0 %v8756_v60  ;;  %6354 = vmatpush1.bf16.msra.mxu1 %v8765_v42  ;;  %v5141_v60 = vld [vmem:[%s9412_s2 + $0x218] sm:$0xff]  ;;  %v8938_v42 = vpack.c.bf16 %v5143_v40, %v5139_v44  ;;  %v5176_v44 = vld [vmem:[%s9412_s2 + $0x330] sm:$0xff] }
 0xa7b   :  { %v8949_v0 = vpack.c.bf16 %v5145_v59, %v5141_v60  ;;  %v5179_v60 = vld [vmem:[%s9412_s2 + $0x348] sm:$0xff] }
 0xa7c   :  { %6356 = vmatprep.subr.bf16.mxu0 %v8938_v42  ;;  %v5183_v59 = vld [vmem:[%s9412_s2 + $0x368] sm:$0xff] }
 0xa7d   :  { %6388 = vmatprep.subr.bf16.mxu1 %v8949_v0  ;;  %v9117_v9 = vpack.c.bf16 %v5183_v59, %v5179_v60 }
 0xb30   :  { %v3356_v27 = vpop.f32.mrb[20].mxu0  ;;  %v3427_v53 = vpop.f32.mrb[20].mxu1 }
 0xb31   :  { %v6671_v56 = vadd.f32 %v3356_v27, %v8821_v10  ;;  %v3358_v29 = vpop.f32.mrb[21].mxu0  ;;  %v3429_v50 = vpop.f32.mrb[21].mxu1  ;;  %v6687_v15 = vadd.f32 %v3427_v53, %v8836_v35  ;;  %v5156_v27 = vld [vmem:[%s9412_s2 + $0x290] sm:$0xff] }
 0xb32   :  { %v6672_v51 = vadd.f32 %v3358_v29, %v8825_v49  ;;  %v6688_v48 = vadd.f32 %v3429_v50, %v8831_v26  ;;  %v5160_v53 = vld [vmem:[%s9412_s2 + $0x2b0] sm:$0xff]  ;;  %v5163_v29 = vld [vmem:[%s9412_s2 + $0x2c8] sm:$0xff] }
 0xb33   :  { %v5068_v7 = vmul.f32 -1.442695, %v6671_v56  ;;  %v9032_v56 = vpack.c.bf16 %v5160_v53, %v5156_v27  ;;  %v5167_v50 = vld [vmem:[%s9412_s2 + $0x2e8] sm:$0xff]  ;;  %v5188_v27 = vld [vmem:[%s9412_s2 + $0x390] sm:$0xff] }
 0xb34   :  { %v5069_v36 = vmul.f32 -1.442695, %v6672_v51  ;;  %v5070_v25 = vmul.f32 -1.442695, %v6688_v48  ;;  %v5165_v51 = vld [vmem:[%s9412_s2 + $0x2d8] sm:$0xff]  ;;  %v5162_v48 = vld [vmem:[%s9412_s2 + $0x2c0] sm:$0xff] }
 0xb35   :  { %6926 = vpow2.f32 %v5068_v7  ;;  %v9046_v7 = vpack.c.bf16 %v5167_v50, %v5163_v29  ;;  %v5192_v29 = vld [vmem:[%s9412_s2 + $0x3b0] sm:$0xff]  ;;  %v5195_v50 = vld [vmem:[%s9412_s2 + $0x3c8] sm:$0xff] }
 0xb36   :  { %6928 = vpow2.f32 %v5069_v36  ;;  %v5169_v36 = vld [vmem:[%s9412_s2 + $0x2f8] sm:$0xff] }
 0xb37   :  { %6930 = vpow2.f32 %v5070_v25  ;;  %v5166_v25 = vld [vmem:[%s9412_s2 + $0x2e0] sm:$0xff] }
 0xb38   :  { %6932 = vtanh.f32 %v6687_v15  ;;  %v9057_v15 = vpack.c.bf16 %v5169_v36, %v5165_v51  ;;  %v5199_v51 = vld [vmem:[%s9412_s2 + $0x3e8] sm:$0xff]  ;;  %v9182_v36 = vpack.c.bf16 %v5192_v29, %v5188_v27 }
 0xb3f   :  { %v6927_v14 = vpop.eup %6926 }
 0xb40   :  { %v6929_v18 = vpop.eup %6928  ;;  %v3439_v41 = vadd.f32 1.0, %v6927_v14  ;;  %v9059_v14 = vpack.c.bf16 %v5166_v25, %v5162_v48  ;;  %v9184_v48 = vpack.c.bf16 %v5199_v51, %v5195_v50  ;;  %v5197_v25 = vld [vmem:[%s9412_s2 + $0x3d8] sm:$0xff] }
 0xb41   :  { %v3445_v62 = vadd.f32 1.0, %v6929_v18  ;;  %v6931_v43 = vpop.eup %6930  ;;  %v5164_v18 = vld [vmem:[%s9412_s2 + $0x2d0] sm:$0xff] }
 0xb42   :  { %6934 = vrcp.f32 %v3439_v41  ;;  %v6933_v34 = vpop.eup %6932  ;;  %v3452_v46 = vadd.f32 1.0, %v6931_v43  ;;  %v5168_v41 = vld [vmem:[%s9412_s2 + $0x2f0] sm:$0xff]  ;;  %v5171_v43 = vld [vmem:[%s9412_s2 + $0x308] sm:$0xff] }
 0xb43   :  { %6936 = vrcp.f32 %v3445_v62  ;;  %v9068_v62 = vpack.c.bf16 %v5168_v41, %v5164_v18  ;;  %v5201_v18 = vld [vmem:[%s9412_s2 + $0x3f8] sm:$0xff]  ;;  %v5194_v41 = vld [vmem:[%s9412_s2 + $0x3c0] sm:$0xff] }
 0xb44   :  { %6938 = vrcp.f32 %v3452_v46  ;;  %v5170_v46 = vld [vmem:[%s9412_s2 + $0x300] sm:$0xff] }
 0xb4c   :  { %v6935_v2 = vpop.eup %6934 }
 0xb4d   :  { %v6937_v13 = vpop.eup %6936  ;;  %v3457_v11 = vmul.f32 %v6935_v2, %v6933_v34  ;;  %v5175_v34 = vld [vmem:[%s9412_s2 + $0x328] sm:$0xff]  ;;  %v5173_v2 = vld [vmem:[%s9412_s2 + $0x318] sm:$0xff] }
 0xb4e   :  { %v3456_v32 = vmul.f32 %v6937_v13, %v8884_v47  ;;  %v6939_v52 = vpop.eup %6938  ;;  %v5154_v47 = vld [vmem:[%s9412_s2 + $0x280] sm:$0xff]  ;;  %v9082_v13 = vpack.c.bf16 %v5175_v34, %v5171_v43  ;;  %v9196_v43 = vpack.c.bf16 %v5201_v18, %v5197_v25 }
 0xb4f   :  { %v9023_v28 = vpack.c.bf16 %v5158_v55, %v5154_v47  ;;  %v5186_v47 = vld [vmem:[%s9412_s2 + $0x380] sm:$0xff] }
 0xb50   :  { %v8924_v4 = vadd.f32 %v3457_v11, %v3456_v32  ;;  %v5177_v11 = vld [vmem:[%s9412_s2 + $0x338] sm:$0xff]  ;;  %v5174_v32 = vld [vmem:[%s9412_s2 + $0x320] sm:$0xff] }
 0xb51   :  { %v5190_v55 = vld [vmem:[%s9412_s2 + $0x3a0] sm:$0xff] }
 0xb52   :  { %6940 = vtanh.f32 %v8924_v4  ;;  %v9169_v53 = vpack.c.bf16 %v5190_v55, %v5186_v47  ;;  %v5198_v34 = vld [vmem:[%s9412_s2 + $0x3e0] sm:$0xff] }
 0xb5c   :  { %v6941_v54 = vpop.eup %6940 }
 0xb5d   :  { %v3460_v8 = vmul.f32 %v6941_v54, %v6939_v52  ;;  %v9093_v52 = vpack.c.bf16 %v5177_v11, %v5173_v2  ;;  %v9095_v54 = vpack.c.bf16 %v5174_v32, %v5170_v46  ;;  %v5196_v2 = vld [vmem:[%s9412_s2 + $0x3d0] sm:$0xff]  ;;  %v9208_v46 = vpack.c.bf16 %v5198_v34, %v5194_v41 }
 0xb5e   :  { %v5200_v11 = vld [vmem:[%s9412_s2 + $0x3f0] sm:$0xff] }
 0xb5f   :  { %3597 = vmatmul.mubr.f32.vlgmr.msra.gmra.mrb[22].mxu0 %v3460_v8  ;;  %3668 = vmatmul.mubr.f32.vlgmr.msra.gmra.mrb[22].mxu1 %v3460_v8  ;;  %v5172_v8 = vld [vmem:[%s9412_s2 + $0x310] sm:$0xff]  ;;  %v9212_v32 = vpack.c.bf16 %v5200_v11, %v5196_v2 }
 0xb60   :  { %3838 = vmatprep.mubr.f32.mxu0 %v7022_v3  ;;  %3909 = vmatprep.mubr.f32.mxu1 %v7022_v3  ;;  %v9104_v40 = vpack.c.bf16 %v5176_v44, %v5172_v8 }
 0xb61   :  { %6358 = vmatpush1.bf16.msra.mxu0 %v8951_v5  ;;  %6390 = vmatpush1.bf16.msra.mxu1 %v8960_v22 }
 0xb62   :  { %6360 = vmatprep.subr.bf16.mxu0 %v8974_v33  ;;  %6392 = vmatprep.subr.bf16.mxu1 %v8985_v37 }
 0xb65   :  { %6362 = vmatpush1.bf16.msra.mxu0 %v8987_v30  ;;  %6394 = vmatpush1.bf16.msra.mxu1 %v8996_v58 }
 0xb66   :  { %6364 = vmatprep.subr.bf16.mxu0 %v9010_v31  ;;  %6396 = vmatprep.subr.bf16.mxu1 %v9021_v61 }
 0xb69   :  { %6366 = vmatpush1.bf16.msra.mxu0 %v9023_v28  ;;  %6398 = vmatpush1.bf16.msra.mxu1 %v9032_v56 }
 0xb6a   :  { %6368 = vmatprep.subr.bf16.mxu0 %v9046_v7  ;;  %6400 = vmatprep.subr.bf16.mxu1 %v9057_v15 }
 0xb6d   :  { %6370 = vmatpush1.bf16.msra.mxu0 %v9059_v14  ;;  %6402 = vmatpush1.bf16.msra.mxu1 %v9068_v62 }
 0xb6e   :  { %6372 = vmatprep.subr.bf16.mxu0 %v9082_v13  ;;  %6404 = vmatprep.subr.bf16.mxu1 %v9093_v52 }
 0xb71   :  { %6374 = vmatpush1.bf16.msra.mxu0 %v9095_v54  ;;  %6406 = vmatpush1.bf16.msra.mxu1 %v9104_v40 }
 0xb72   :  { %6376 = vmatprep.subr.bf16.mxu0 %v9117_v9  ;;  %6408 = vmatprep.subr.bf16.mxu1 %v9129_v45 }
 0xb75   :  { %6378 = vmatpush1.bf16.msra.mxu0 %v9131_v23  ;;  %6410 = vmatpush1.bf16.msra.mxu1 %v9143_v12 }
 0xb76   :  { %6380 = vmatprep.subr.bf16.mxu0 %v9155_v6  ;;  %6412 = vmatprep.subr.bf16.mxu1 %v9157_v57 }
 0xb79   :  { %6382 = vmatpush1.bf16.msra.mxu0 %v9169_v53  ;;  %6414 = vmatpush1.bf16.msra.mxu1 %v9182_v36 }
 0xb7a   :  { %6384 = vmatprep.subr.bf16.mxu0 %v9184_v48  ;;  %6416 = vmatprep.subr.bf16.mxu1 %v9196_v43 }
 0xb7d   :  { %6386 = vmatpush1.bf16.msra.mxu0 %v9208_v46  ;;  %6418 = vmatpush1.bf16.msra.mxu1 %v9212_v32 }
 0xb7e   :  { %6420 = vmatprep.subr.bf16.mxu0 %v8938_v42  ;;  %6452 = vmatprep.subr.bf16.mxu1 %v8949_v0 }
 0xc32   :  { %v3598_v8 = vpop.f32.mrb[22].mxu0  ;;  %v3669_v44 = vpop.f32.mrb[22].mxu1 }
 0xc33   :  { %v6673_v60 = vadd.f32 %v3598_v8, %v8821_v10  ;;  %v3600_v59 = vpop.f32.mrb[23].mxu0  ;;  %v3671_v16 = vpop.f32.mrb[23].mxu1  ;;  %v6689_v1 = vadd.f32 %v3669_v44, %v8836_v35 }
 0xc34   :  { %v6674_v17 = vadd.f32 %v3600_v59, %v8825_v49  ;;  %v6690_v21 = vadd.f32 %v3671_v16, %v8831_v26 }
 0xc35   :  { %v5135_v19 = vmul.f32 -1.442695, %v6673_v60 }
 0xc36   :  { %v5136_v63 = vmul.f32 -1.442695, %v6674_v17  ;;  %v5137_v24 = vmul.f32 -1.442695, %v6690_v21 }
 0xc37   :  { %6942 = vpow2.f32 %v5135_v19 }
 0xc38   :  { %6944 = vpow2.f32 %v5136_v63 }
 0xc39   :  { %6946 = vpow2.f32 %v5137_v24 }
 0xc3a   :  { %6948 = vtanh.f32 %v6689_v1 }
 0xc41   :  { %v6943_v38 = vpop.eup %6942 }
 0xc42   :  { %v6945_v39 = vpop.eup %6944  ;;  %v3681_v20 = vadd.f32 1.0, %v6943_v38 }
 0xc43   :  { %v3687_v47 = vadd.f32 1.0, %v6945_v39  ;;  %v6947_v55 = vpop.eup %6946 }
 0xc44   :  { %6950 = vrcp.f32 %v3681_v20  ;;  %v6949_v27 = vpop.eup %6948  ;;  %v3694_v25 = vadd.f32 1.0, %v6947_v55 }
 0xc45   :  { %6952 = vrcp.f32 %v3687_v47 }
 0xc46   :  { %6954 = vrcp.f32 %v3694_v25 }
 0xc4e   :  { %v6951_v29 = vpop.eup %6950 }
 0xc4f   :  { %v6953_v50 = vpop.eup %6952  ;;  %v3699_v51 = vmul.f32 %v6951_v29, %v6949_v27 }
 0xc50   :  { %v3698_v18 = vmul.f32 %v6953_v50, %v8924_v4  ;;  %v6955_v34 = vpop.eup %6954 }
 0xc52   :  { %v9224_v41 = vadd.f32 %v3699_v51, %v3698_v18 }
 0xc54   :  { %6956 = vtanh.f32 %v9224_v41 }
 0xc5e   :  { %v6957_v2 = vpop.eup %6956 }
 0xc5f   :  { %v3702_v11 = vmul.f32 %v6957_v2, %v6955_v34 }
 0xc61   :  { %3839 = vmatmul.mubr.f32.vlgmr.msra.gmra.mrb[24].mxu0 %v3702_v11  ;;  %3910 = vmatmul.mubr.f32.vlgmr.msra.gmra.mrb[24].mxu1 %v3702_v11 }
 0xc62   :  { %6422 = vmatpush1.bf16.msra.mxu0 %v8951_v5  ;;  %6454 = vmatpush1.bf16.msra.mxu1 %v8960_v22 }
 0xc63   :  { %6424 = vmatprep.subr.bf16.mxu0 %v8974_v33  ;;  %6456 = vmatprep.subr.bf16.mxu1 %v8985_v37 }
 0xc64   :  { %4080 = vmatprep.mubr.f32.mxu0 %v7022_v3  ;;  %4151 = vmatprep.mubr.f32.mxu1 %v7022_v3 }
 0xc66   :  { %6426 = vmatpush1.bf16.msra.mxu0 %v8987_v30  ;;  %6458 = vmatpush1.bf16.msra.mxu1 %v8996_v58 }
 0xc67   :  { %6428 = vmatprep.subr.bf16.mxu0 %v9010_v31  ;;  %6460 = vmatprep.subr.bf16.mxu1 %v9021_v61 }
 0xc6a   :  { %6430 = vmatpush1.bf16.msra.mxu0 %v9023_v28  ;;  %6462 = vmatpush1.bf16.msra.mxu1 %v9032_v56 }
 0xc6b   :  { %6432 = vmatprep.subr.bf16.mxu0 %v9046_v7  ;;  %6464 = vmatprep.subr.bf16.mxu1 %v9057_v15 }
 0xc6e   :  { %6434 = vmatpush1.bf16.msra.mxu0 %v9059_v14  ;;  %6466 = vmatpush1.bf16.msra.mxu1 %v9068_v62 }
 0xc6f   :  { %6436 = vmatprep.subr.bf16.mxu0 %v9082_v13  ;;  %6468 = vmatprep.subr.bf16.mxu1 %v9093_v52 }
 0xc72   :  { %6438 = vmatpush1.bf16.msra.mxu0 %v9095_v54  ;;  %6470 = vmatpush1.bf16.msra.mxu1 %v9104_v40 }
 0xc73   :  { %6440 = vmatprep.subr.bf16.mxu0 %v9117_v9  ;;  %6472 = vmatprep.subr.bf16.mxu1 %v9129_v45 }
 0xc76   :  { %6442 = vmatpush1.bf16.msra.mxu0 %v9131_v23  ;;  %6474 = vmatpush1.bf16.msra.mxu1 %v9143_v12 }
 0xc77   :  { %6444 = vmatprep.subr.bf16.mxu0 %v9155_v6  ;;  %6476 = vmatprep.subr.bf16.mxu1 %v9157_v57 }
 0xc7a   :  { %6446 = vmatpush1.bf16.msra.mxu0 %v9169_v53  ;;  %6478 = vmatpush1.bf16.msra.mxu1 %v9182_v36 }
 0xc7b   :  { %6448 = vmatprep.subr.bf16.mxu0 %v9184_v48  ;;  %6480 = vmatprep.subr.bf16.mxu1 %v9196_v43 }
 0xc7e   :  { %6450 = vmatpush1.bf16.msra.mxu0 %v9208_v46  ;;  %6482 = vmatpush1.bf16.msra.mxu1 %v9212_v32 }
 0xc7f   :  { %6484 = vmatprep.subr.bf16.mxu0 %v8938_v42  ;;  %6516 = vmatprep.subr.bf16.mxu1 %v8949_v0 }
 0xd34   :  { %v3840_v4 = vpop.f32.mrb[24].mxu0  ;;  %v3911_v8 = vpop.f32.mrb[24].mxu1 }
 0xd35   :  { %v6675_v44 = vadd.f32 %v3840_v4, %v8821_v10  ;;  %v3842_v60 = vpop.f32.mrb[25].mxu0  ;;  %v3913_v59 = vpop.f32.mrb[25].mxu1  ;;  %v6691_v24 = vadd.f32 %v3911_v8, %v8836_v35 }
 0xd36   :  { %v6676_v16 = vadd.f32 %v3842_v60, %v8825_v49  ;;  %v6692_v63 = vadd.f32 %v3913_v59, %v8831_v26 }
 0xd37   :  { %v5202_v17 = vmul.f32 -1.442695, %v6675_v44 }
 0xd38   :  { %v5203_v19 = vmul.f32 -1.442695, %v6676_v16  ;;  %v5204_v21 = vmul.f32 -1.442695, %v6692_v63 }
 0xd39   :  { %6958 = vpow2.f32 %v5202_v17 }
 0xd3a   :  { %6960 = vpow2.f32 %v5203_v19 }
 0xd3b   :  { %6962 = vpow2.f32 %v5204_v21 }
 0xd3c   :  { %6964 = vtanh.f32 %v6691_v24 }
 0xd43   :  { %v6959_v1 = vpop.eup %6958 }
 0xd44   :  { %v6961_v38 = vpop.eup %6960  ;;  %v3923_v39 = vadd.f32 1.0, %v6959_v1 }
 0xd45   :  { %v3929_v20 = vadd.f32 1.0, %v6961_v38  ;;  %v6963_v47 = vpop.eup %6962 }
 0xd46   :  { %6966 = vrcp.f32 %v3923_v39  ;;  %v6965_v55 = vpop.eup %6964  ;;  %v3936_v51 = vadd.f32 1.0, %v6963_v47 }
 0xd47   :  { %6968 = vrcp.f32 %v3929_v20 }
 0xd48   :  { %6970 = vrcp.f32 %v3936_v51 }
 0xd50   :  { %v6967_v27 = vpop.eup %6966 }
 0xd51   :  { %v6969_v29 = vpop.eup %6968  ;;  %v3941_v50 = vmul.f32 %v6967_v27, %v6965_v55 }
 0xd52   :  { %v3940_v25 = vmul.f32 %v6969_v29, %v9224_v41  ;;  %v6971_v34 = vpop.eup %6970 }
 0xd54   :  { %v9266_v18 = vadd.f32 %v3941_v50, %v3940_v25 }
 0xd56   :  { %6972 = vtanh.f32 %v9266_v18 }
 0xd60   :  { %v6973_v2 = vpop.eup %6972 }
 0xd61   :  { %v3944_v11 = vmul.f32 %v6973_v2, %v6971_v34  ;;  %v4677_v2 = vld [vmem:[%s9417_s6 + $0x18] sm:$0xff] }
 0xd63   :  { %4081 = vmatmul.mubr.f32.vlgmr.msra.gmra.mrb[26].mxu0 %v3944_v11  ;;  %4152 = vmatmul.mubr.f32.vlgmr.msra.gmra.mrb[26].mxu1 %v3944_v11 }
 0xd64   :  { %6486 = vmatpush1.bf16.msra.mxu0 %v8951_v5  ;;  %6518 = vmatpush1.bf16.msra.mxu1 %v8960_v22 }
 0xd65   :  { %6488 = vmatprep.subr.bf16.mxu0 %v8974_v33  ;;  %6520 = vmatprep.subr.bf16.mxu1 %v8985_v37 }
 0xd66   :  { %4322 = vmatprep.mubr.f32.mxu0 %v7022_v3  ;;  %4393 = vmatprep.mubr.f32.mxu1 %v7022_v3 }
 0xd68   :  { %6490 = vmatpush1.bf16.msra.mxu0 %v8987_v30  ;;  %6522 = vmatpush1.bf16.msra.mxu1 %v8996_v58 }
 0xd69   :  { %6492 = vmatprep.subr.bf16.mxu0 %v9010_v31  ;;  %6524 = vmatprep.subr.bf16.mxu1 %v9021_v61 }
 0xd6c   :  { %6494 = vmatpush1.bf16.msra.mxu0 %v9023_v28  ;;  %6526 = vmatpush1.bf16.msra.mxu1 %v9032_v56 }
 0xd6d   :  { %6496 = vmatprep.subr.bf16.mxu0 %v9046_v7  ;;  %6528 = vmatprep.subr.bf16.mxu1 %v9057_v15 }
 0xd70   :  { %6498 = vmatpush1.bf16.msra.mxu0 %v9059_v14  ;;  %6530 = vmatpush1.bf16.msra.mxu1 %v9068_v62 }
 0xd71   :  { %6500 = vmatprep.subr.bf16.mxu0 %v9082_v13  ;;  %6532 = vmatprep.subr.bf16.mxu1 %v9093_v52 }
 0xd74   :  { %6502 = vmatpush1.bf16.msra.mxu0 %v9095_v54  ;;  %6534 = vmatpush1.bf16.msra.mxu1 %v9104_v40 }
 0xd75   :  { %6504 = vmatprep.subr.bf16.mxu0 %v9117_v9  ;;  %6536 = vmatprep.subr.bf16.mxu1 %v9129_v45 }
 0xd78   :  { %6506 = vmatpush1.bf16.msra.mxu0 %v9131_v23  ;;  %6538 = vmatpush1.bf16.msra.mxu1 %v9143_v12 }
 0xd79   :  { %6508 = vmatprep.subr.bf16.mxu0 %v9155_v6  ;;  %6540 = vmatprep.subr.bf16.mxu1 %v9157_v57 }
 0xd7c   :  { %6510 = vmatpush1.bf16.msra.mxu0 %v9169_v53  ;;  %6542 = vmatpush1.bf16.msra.mxu1 %v9182_v36 }
 0xd7d   :  { %6512 = vmatprep.subr.bf16.mxu0 %v9184_v48  ;;  %6544 = vmatprep.subr.bf16.mxu1 %v9196_v43 }
 0xd80   :  { %6514 = vmatpush1.bf16.msra.mxu0 %v9208_v46  ;;  %6546 = vmatpush1.bf16.msra.mxu1 %v9212_v32 }
 0xd81   :  { %6548 = vmatprep.subr.bf16.mxu0 %v8938_v42  ;;  %6580 = vmatprep.subr.bf16.mxu1 %v8949_v0 }
 0xe36   :  { %v4082_v41 = vpop.f32.mrb[26].mxu0  ;;  %v4153_v4 = vpop.f32.mrb[26].mxu1 }
 0xe37   :  { %v6677_v8 = vadd.f32 %v4082_v41, %v8821_v10  ;;  %v4084_v44 = vpop.f32.mrb[27].mxu0  ;;  %v4155_v60 = vpop.f32.mrb[27].mxu1  ;;  %v6693_v21 = vadd.f32 %v4153_v4, %v8836_v35  ;;  %v4678_v41 = vld [vmem:[%s9417_s6 + $0x20] sm:$0xff]  ;;  %v4679_v4 = vld [vmem:[%s9417_s6 + $0x28] sm:$0xff] }
 0xe38   :  { %v6678_v59 = vadd.f32 %v4084_v44, %v8825_v49  ;;  %v6694_v19 = vadd.f32 %v4155_v60, %v8831_v26  ;;  %v4680_v44 = vld [vmem:[%s9417_s6 + $0x30] sm:$0xff]  ;;  %v4681_v60 = vld [vmem:[%s9417_s6 + $0x38] sm:$0xff] }
 0xe39   :  { %v5269_v16 = vmul.f32 -1.442695, %v6677_v8  ;;  %v6618_v8 = vpack.c.bf16 %v4679_v4, %v4678_v41 }
 0xe3a   :  { %v5270_v17 = vmul.f32 -1.442695, %v6678_v59  ;;  %v5271_v63 = vmul.f32 -1.442695, %v6694_v19  ;;  %v6621_v59 = vpack.c.bf16 %v4681_v60, %v4680_v44 }
 0xe3b   :  { %6974 = vpow2.f32 %v5269_v16  ;;  %v4682_v16 = vld [vmem:[%s9417_s6 + $0x40] sm:$0xff] }
 0xe3c   :  { %6976 = vpow2.f32 %v5270_v17  ;;  %v4683_v17 = vld [vmem:[%s9417_s6 + $0x48] sm:$0xff] }
 0xe3d   :  { %6978 = vpow2.f32 %v5271_v63  ;;  %v6624_v19 = vpack.c.bf16 %v4683_v17, %v4682_v16  ;;  %v4684_v63 = vld [vmem:[%s9417_s6 + $0x50] sm:$0xff] }
 0xe3e   :  { %6980 = vtanh.f32 %v6693_v21  ;;  %v4685_v21 = vld [vmem:[%s9417_s6 + $0x58] sm:$0xff] }
 0xe45   :  { %v6975_v42 = vpop.eup %6974 }
 0xe46   :  { %v6977_v24 = vpop.eup %6976  ;;  %v4165_v0 = vadd.f32 1.0, %v6975_v42  ;;  %v4686_v42 = vld [vmem:[%s9417_s6 + $0x60] sm:$0xff] }
 0xe47   :  { %v4171_v1 = vadd.f32 1.0, %v6977_v24  ;;  %v6979_v38 = vpop.eup %6978  ;;  %v6627_v24 = vpack.c.bf16 %v4685_v21, %v4684_v63 }
 0xe48   :  { %6982 = vrcp.f32 %v4165_v0  ;;  %v6981_v39 = vpop.eup %6980  ;;  %v4178_v27 = vadd.f32 1.0, %v6979_v38  ;;  %v4687_v0 = vld [vmem:[%s9417_s6 + $0x68] sm:$0xff]  ;;  %v4688_v38 = vld [vmem:[%s9417_s6 + $0x70] sm:$0xff] }
 0xe49   :  { %6984 = vrcp.f32 %v4171_v1  ;;  %v6630_v1 = vpack.c.bf16 %v4687_v0, %v4686_v42 }
 0xe4a   :  { %6986 = vrcp.f32 %v4178_v27 }
 0xe52   :  { %v6983_v20 = vpop.eup %6982 }
 0xe53   :  { %v6985_v47 = vpop.eup %6984  ;;  %v4183_v55 = vmul.f32 %v6983_v20, %v6981_v39  ;;  %v4689_v39 = vld [vmem:[%s9417_s6 + $0x78] sm:$0xff] }
 0xe54   :  { %v4182_v29 = vmul.f32 %v6985_v47, %v9266_v18  ;;  %v6987_v51 = vpop.eup %6986  ;;  %v4676_v18 = vld [vmem:[%s9417_s6 + $0x10] sm:$0xff]  ;;  %v6633_v20 = vpack.c.bf16 %v4689_v39, %v4688_v38 }
 0xe55   :  { %v6615_v11 = vpack.c.bf16 %v4677_v2, %v4676_v18 }
 0xe56   :  { %v9308_v50 = vadd.f32 %v4183_v55, %v4182_v29 }
 0xe58   :  { %6988 = vtanh.f32 %v9308_v50 }
 0xe62   :  { %v6989_v25 = vpop.eup %6988 }
 0xe63   :  { %v4186_v34 = vmul.f32 %v6989_v25, %v6987_v51 }
 0xe65   :  { %4323 = vmatmul.mubr.f32.vlgmr.msra.gmra.mrb[28].mxu0 %v4186_v34  ;;  %4394 = vmatmul.mubr.f32.vlgmr.msra.gmra.mrb[28].mxu1 %v4186_v34 }
 0xe66   :  { %6550 = vmatpush1.bf16.msra.mxu0 %v8951_v5  ;;  %6582 = vmatpush1.bf16.msra.mxu1 %v8960_v22 }
 0xe67   :  { %6552 = vmatprep.subr.bf16.mxu0 %v8974_v33  ;;  %6584 = vmatprep.subr.bf16.mxu1 %v8985_v37 }
 0xe68   :  { %4564 = vmatprep.mubr.f32.mxu0 %v7022_v3  ;;  %4635 = vmatprep.mubr.f32.mxu1 %v7022_v3 }
 0xe6a   :  { %6554 = vmatpush1.bf16.msra.mxu0 %v8987_v30  ;;  %6586 = vmatpush1.bf16.msra.mxu1 %v8996_v58 }
 0xe6b   :  { %6556 = vmatprep.subr.bf16.mxu0 %v9010_v31  ;;  %6588 = vmatprep.subr.bf16.mxu1 %v9021_v61 }
 0xe6e   :  { %6558 = vmatpush1.bf16.msra.mxu0 %v9023_v28  ;;  %6590 = vmatpush1.bf16.msra.mxu1 %v9032_v56 }
 0xe6f   :  { %6560 = vmatprep.subr.bf16.mxu0 %v9046_v7  ;;  %6592 = vmatprep.subr.bf16.mxu1 %v9057_v15 }
 0xe72   :  { %6562 = vmatpush1.bf16.msra.mxu0 %v9059_v14  ;;  %6594 = vmatpush1.bf16.msra.mxu1 %v9068_v62 }
 0xe73   :  { %6564 = vmatprep.subr.bf16.mxu0 %v9082_v13  ;;  %6596 = vmatprep.subr.bf16.mxu1 %v9093_v52 }
 0xe76   :  { %6566 = vmatpush1.bf16.msra.mxu0 %v9095_v54  ;;  %6598 = vmatpush1.bf16.msra.mxu1 %v9104_v40 }
 0xe77   :  { %6568 = vmatprep.subr.bf16.mxu0 %v9117_v9  ;;  %6600 = vmatprep.subr.bf16.mxu1 %v9129_v45 }
 0xe7a   :  { %6570 = vmatpush1.bf16.msra.mxu0 %v9131_v23  ;;  %6602 = vmatpush1.bf16.msra.mxu1 %v9143_v12 }
 0xe7b   :  { %6572 = vmatprep.subr.bf16.mxu0 %v9155_v6  ;;  %6604 = vmatprep.subr.bf16.mxu1 %v9157_v57 }
 0xe7e   :  { %6574 = vmatpush1.bf16.msra.mxu0 %v9169_v53  ;;  %6606 = vmatpush1.bf16.msra.mxu1 %v9182_v36 }
 0xe7f   :  { %6576 = vmatprep.subr.bf16.mxu0 %v9184_v48  ;;  %6608 = vmatprep.subr.bf16.mxu1 %v9196_v43  ;;  %v4674_v48 = vld [vmem:[%s9417_s6] sm:$0xff]  ;;  %v4675_v43 = vld [vmem:[%s9417_s6 + $0x8] sm:$0xff] }
 0xe82   :  { %6578 = vmatpush1.bf16.msra.mxu0 %v9208_v46  ;;  %6610 = vmatpush1.bf16.msra.mxu1 %v9212_v32  ;;  %v6612_v46 = vpack.c.bf16 %v4675_v43, %v4674_v48  ;;  %v7023_v32 = vmov 0.0|0.0  }
 0xe83   :  { %6611 = vmatprep.subr.bf16.mxu0 %v7023_v32 }
 0xf38   :  { %v4324_v5 = vpop.f32.mrb[28].mxu0  ;;  %v4395_v22 = vpop.f32.mrb[28].mxu1 }
 0xf39   :  { %v6679_v33 = vadd.f32 %v4324_v5, %v8821_v10  ;;  %v4326_v37 = vpop.f32.mrb[29].mxu0  ;;  %v4397_v30 = vpop.f32.mrb[29].mxu1  ;;  %v6695_v7 = vadd.f32 %v4395_v22, %v8836_v35 }
 0xf3a   :  { %v6680_v58 = vadd.f32 %v4326_v37, %v8825_v49  ;;  %v6696_v28 = vadd.f32 %v4397_v30, %v8831_v26 }
 0xf3b   :  { %v5336_v31 = vmul.f32 -1.442695, %v6679_v33 }
 0xf3c   :  { %v5337_v61 = vmul.f32 -1.442695, %v6680_v58  ;;  %v5338_v56 = vmul.f32 -1.442695, %v6696_v28 }
 0xf3d   :  { %6990 = vpow2.f32 %v5336_v31 }
 0xf3e   :  { %6992 = vpow2.f32 %v5337_v61 }
 0xf3f   :  { %6994 = vpow2.f32 %v5338_v56 }
 0xf40   :  { %6996 = vtanh.f32 %v6695_v7 }
 0xf47   :  { %v6991_v15 = vpop.eup %6990 }
 0xf48   :  { %v6993_v14 = vpop.eup %6992  ;;  %v4407_v62 = vadd.f32 1.0, %v6991_v15 }
 0xf49   :  { %v4413_v13 = vadd.f32 1.0, %v6993_v14  ;;  %v6995_v52 = vpop.eup %6994 }
 0xf4a   :  { %6998 = vrcp.f32 %v4407_v62  ;;  %v6997_v54 = vpop.eup %6996  ;;  %v4420_v23 = vadd.f32 1.0, %v6995_v52  ;;  %v5406_v62 = vld [vmem:[%s9418_s7] ss:$0 sm:$0xff] }
 0xf4b   :  { %7000 = vrcp.f32 %v4413_v13 }
 0xf4c   :  { %7002 = vrcp.f32 %v4420_v23 }
 0xf54   :  { %v6999_v40 = vpop.eup %6998 }
 0xf55   :  { %v7001_v9 = vpop.eup %7000  ;;  %v4425_v45 = vmul.f32 %v6999_v40, %v6997_v54 }
 0xf56   :  { %v4424_v12 = vmul.f32 %v7001_v9, %v9308_v50  ;;  %v7003_v57 = vpop.eup %7002 }
 0xf58   :  { %v9348_v6 = vadd.f32 %v4425_v45, %v4424_v12 }
 0xf5a   :  { %7004 = vtanh.f32 %v9348_v6 }
 0xf64   :  { %v7005_v53 = vpop.eup %7004 }
 0xf65   :  { %v4428_v36 = vmul.f32 %v7005_v53, %v7003_v57 }
 0xf67   :  { %4565 = vmatmul.mubr.f32.vlgmr.msra.gmra.mrb[30].mxu0 %v4428_v36  ;;  %4636 = vmatmul.mubr.f32.vlgmr.msra.gmra.mrb[30].mxu1 %v4428_v36 }
 0xf68   :  { %6613 = vmatpush3.bf16.msra.mxu0 %v6612_v46  ;;  %5456 = vmatprep.mubr.msk.f32.mxu0 %vm7024_vm0, %v7022_v3 }
 0xf69   :  { %6614 = vmatprep.subr.bf16.mxu0 %v7023_v32 }
 0xf6c   :  { %6616 = vmatpush3.bf16.msra.mxu0 %v6615_v11 }
 0xf6d   :  { %6617 = vmatprep.subr.bf16.mxu0 %v7023_v32 }
 0xf70   :  { %6619 = vmatpush3.bf16.msra.mxu0 %v6618_v8 }
 0xf71   :  { %6620 = vmatprep.subr.bf16.mxu0 %v7023_v32 }
 0xf74   :  { %6622 = vmatpush3.bf16.msra.mxu0 %v6621_v59 }
 0xf75   :  { %6623 = vmatprep.subr.bf16.mxu0 %v7023_v32 }
 0xf78   :  { %6625 = vmatpush3.bf16.msra.mxu0 %v6624_v19 }
 0xf79   :  { %6626 = vmatprep.subr.bf16.mxu0 %v7023_v32 }
 0xf7c   :  { %6628 = vmatpush3.bf16.msra.mxu0 %v6627_v24 }
 0xf7d   :  { %6629 = vmatprep.subr.bf16.mxu0 %v7023_v32 }
 0xf80   :  { %6631 = vmatpush3.bf16.msra.mxu0 %v6630_v1 }
 0xf81   :  { %6632 = vmatprep.subr.bf16.mxu0 %v7023_v32 }
 0xf84   :  { %6634 = vmatpush3.bf16.msra.mxu0 %v6633_v20 }
0x103a   :  { %v4566_v47 = vpop.f32.mrb[30].mxu0  ;;  %v4637_v55 = vpop.f32.mrb[30].mxu1 }
0x103b   :  { %v6681_v27 = vadd.f32 %v4566_v47, %v8821_v10  ;;  %v4568_v3 = vpop.f32.mrb[31].mxu0  ;;  %v4639_v29 = vpop.f32.mrb[31].mxu1  ;;  %v6697_v22 = vadd.f32 %v4637_v55, %v8836_v35 }
0x103c   :  { %v6682_v50 = vadd.f32 %v4568_v3, %v8825_v49  ;;  %v6698_v34 = vadd.f32 %v4639_v29, %v8831_v26 }
0x103d   :  { %v5403_v51 = vmul.f32 -1.442695, %v6681_v27 }
0x103e   :  { %v5404_v25 = vmul.f32 -1.442695, %v6682_v50  ;;  %v5405_v5 = vmul.f32 -1.442695, %v6698_v34 }
0x103f   :  { %7006 = vpow2.f32 %v5403_v51 }
0x1040   :  { %7008 = vpow2.f32 %v5404_v25 }
0x1041   :  { %7010 = vpow2.f32 %v5405_v5 }
0x1042   :  { %7012 = vtanh.f32 %v6697_v22 }
0x1049   :  { %v7007_v33 = vpop.eup %7006 }
0x104a   :  { %v7009_v37 = vpop.eup %7008  ;;  %v4649_v30 = vadd.f32 1.0, %v7007_v33 }
0x104b   :  { %v4655_v58 = vadd.f32 1.0, %v7009_v37  ;;  %v7011_v10 = vpop.eup %7010 }
0x104c   :  { %7014 = vrcp.f32 %v4649_v30  ;;  %v7013_v31 = vpop.eup %7012  ;;  %v4662_v56 = vadd.f32 1.0, %v7011_v10 }
0x104d   :  { %7016 = vrcp.f32 %v4655_v58 }
0x104e   :  { %7018 = vrcp.f32 %v4662_v56 }
0x1056   :  { %v7015_v49 = vpop.eup %7014 }
0x1057   :  { %v7017_v61 = vpop.eup %7016  ;;  %v4667_v28 = vmul.f32 %v7015_v49, %v7013_v31 }
0x1058   :  { %v4666_v7 = vmul.f32 %v7017_v61, %v9348_v6  ;;  %v7019_v35 = vpop.eup %7018 }
0x105a   :  { %v4668_v26 = vadd.f32 %v4667_v28, %v4666_v7 }
0x105c   :  { %7020 = vtanh.f32 %v4668_v26 }
0x1066   :  { %v7021_v15 = vpop.eup %7020 }
0x1067   :  { %v4670_v14 = vmul.f32 %v7021_v15, %v7019_v35 }
0x1069   :  { %5457 = vmatmul.mubr.f32.vlgmr.msra.gmra.mrb[32].mxu0 %v4670_v14 }
0x113c   :  { %v4763_v13 = vpop.f32.mrb[32].mxu0 }
0x113d   :  { %v4764_v52 = vadd.f32 %v5406_v62, %v4763_v13  ;;  %v5458_v54 = vpop.f32.mrb[33].mxu0 }
0x113f   :  { %4767 = vst [vmem:[%s9419_s8] sm:$0xff] %v4764_v52 }

</bundles_post_ra>
